<compile_context>
chip_gen: v7x
topology: tpu7x:2x2x1
jax: 0.10.0
libtpu: 0.0.40
codegen_flags: <defaults>
</compile_context>

<pallas_src>
import functools

import jax
import jax.numpy as jnp
from jax import lax
from jax.experimental import pallas as pl
from jax.experimental.pallas import tpu as pltpu


def _bottleneck_kernel(x_ref, s1_ref, b1_ref, w1_ref, s2_ref, b2_ref,
                       w2_ref, s3_ref, b3_ref, w3_ref, s4_ref, b4_ref,
                       out_ref, pad_ref, *, H, W, Cp, Pp):
    bf16 = jnp.bfloat16

    x = x_ref[0].astype(jnp.float32)                     # (H, W, Cp), lane-padded
    xf = x.reshape(H * W, Cp)

    # bn1 (inference affine; scale/bias folded in the wrapper)
    h = xf * s1_ref[...] + b1_ref[...]                   # (H*W, Cp) f32

    # conv1: 1x1, Cp -> Pp, one 2D MXU matmul (bf16 operands, f32 accumulate)
    h = jnp.dot(h.astype(bf16), w1_ref[...],
                preferred_element_type=jnp.float32)      # (H*W, Pp)

    # bn2 + relu
    h = jnp.maximum(h * s2_ref[...] + b2_ref[...], 0.0)

    # conv2: 3x3, stride 1, padding 1, as a single im2col matmul.
    # Zero-padded VMEM scratch; it is re-zeroed each step (scratch is per-core
    # and uninitialized under "parallel" grid semantics; cost ~40 unmasked vst).
    pad_ref[...] = jnp.zeros_like(pad_ref)
    pad_ref[1:H + 1, 1:W + 1, :] = h.reshape(H, W, Pp)
    cols = [pad_ref[ky:ky + H, kx:kx + W, :].astype(bf16).reshape(H * W, Pp)
            for ky in range(3) for kx in range(3)]
    col = jnp.concatenate(cols, axis=-1)                 # (H*W, 9*Pp) bf16
    h = jnp.dot(col, w2_ref[...],
                preferred_element_type=jnp.float32)      # (H*W, Pp)

    # bn3 + relu
    h = jnp.maximum(h * s3_ref[...] + b3_ref[...], 0.0)

    # conv3: 1x1, Pp -> Cp
    h = jnp.dot(h.astype(bf16), w3_ref[...],
                preferred_element_type=jnp.float32)      # (H*W, Cp)

    # bn4 (prob already folded into scale/bias) + residual add.  x was
    # zero-padded along channels in the wrapper, so this is one full-lane add
    # followed by one unmasked full-width store.
    out = h * s4_ref[...] + b4_ref[...] + xf
    out_ref[0] = out.reshape(H, W, Cp).astype(out_ref.dtype)


def _round_up(x, m):
    return (x + m - 1) // m * m


def _pad_params(params, Cin, P, Cout, Cp, Pp, prob):
    """Zero-pad channels to lane-dense widths, fold prob, cast weights bf16."""
    (s1, b1, w1, s2, b2, w2, s3, b3, w3, s4, b4) = params
    f32, bf16 = jnp.float32, jnp.bfloat16

    def vec(v, c, cp):
        v = v.reshape(1, c).astype(f32)
        return jnp.pad(v, ((0, 0), (0, cp - c)))

    s1p, b1p = vec(s1, Cin, Cp), vec(b1, Cin, Cp)
    s2p, b2p = vec(s2, P, Pp), vec(b2, P, Pp)
    s3p, b3p = vec(s3, P, Pp), vec(b3, P, Pp)
    # fold the survival prob into the bn4 affine (out*s4+b4)*prob == out*s4p+b4p
    s4p, b4p = vec(s4 * prob, Cout, Cp), vec(b4 * prob, Cout, Cp)

    w1p = jnp.pad(w1.astype(f32), ((0, Cp - Cin), (0, Pp - P))).astype(bf16)
    w2p = jnp.pad(w2.astype(f32),
                  ((0, 0), (0, 0), (0, Pp - P), (0, Pp - P)))
    w2p = w2p.reshape(9 * Pp, Pp).astype(bf16)   # rows ordered (ky, kx, cin)
    w3p = jnp.pad(w3.astype(f32), ((0, Pp - P), (0, Cp - Cout))).astype(bf16)
    return (s1p, b1p, w1p, s2p, b2p, w2p, s3p, b3p, w3p, s4p, b4p)


def bottleneck_forward(x_nchw, params, *, prob=1.0):
    N, Cin, H, W = x_nchw.shape
    P = params[2].shape[1]
    Cout = params[8].shape[1]
    assert Cout >= Cin, "PyramidNet shortcut zero-pad assumes Cout >= Cin"
    LANE = 128
    Cp = _round_up(Cout, LANE)       # lane-dense channel width (input & output)
    Pp = _round_up(P, LANE)          # lane-dense bottleneck width

    # NCHW -> NHWC, zero-pad channels up to Cp; this also builds the
    # channel-zero-padded shortcut consumed by the in-kernel residual add.
    x = jnp.transpose(x_nchw, (0, 2, 3, 1)).astype(jnp.float32)
    x = jnp.pad(x, ((0, 0), (0, 0), (0, 0), (0, Cp - Cin)))

    pp = _pad_params(params, Cin, P, Cout, Cp, Pp, float(prob))

    kernel = functools.partial(_bottleneck_kernel, H=H, W=W, Cp=Cp, Pp=Pp)
    vec2 = lambda n: (0, 0)

    out = pl.pallas_call(
        kernel,
        out_shape=jax.ShapeDtypeStruct((N, H, W, Cp), jnp.float32),
        grid_spec=pltpu.PrefetchScalarGridSpec(
            num_scalar_prefetch=0,
            grid=(N,),
            in_specs=[
                pl.BlockSpec((1, H, W, Cp), lambda n: (n, 0, 0, 0)),
                pl.BlockSpec((1, Cp), vec2), pl.BlockSpec((1, Cp), vec2),
                pl.BlockSpec((Cp, Pp), vec2),
                pl.BlockSpec((1, Pp), vec2), pl.BlockSpec((1, Pp), vec2),
                pl.BlockSpec((9 * Pp, Pp), vec2),
                pl.BlockSpec((1, Pp), vec2), pl.BlockSpec((1, Pp), vec2),
                pl.BlockSpec((Pp, Cp), vec2),
                pl.BlockSpec((1, Cp), vec2), pl.BlockSpec((1, Cp), vec2),
            ],
            out_specs=pl.BlockSpec((1, H, W, Cp), lambda n: (n, 0, 0, 0)),
            scratch_shapes=[pltpu.VMEM((H + 2, W + 2, Pp), jnp.float32)],
        ),
        compiler_params=pltpu.CompilerParams(
            dimension_semantics=("parallel",)),
    )(x, *pp)

    out = out[..., :Cout]                                # drop lane padding
    return jnp.transpose(out, (0, 3, 1, 2)).astype(x_nchw.dtype)  # -> NCHW


def make_params(key, inplanes, planes, dtype=jnp.float32):
    """Deterministic synthetic parameters (BN folded to scale/bias)."""
    Cout = 4 * planes
    ks = jax.random.split(key, 19)

    def bn(kg, kb, km, kv, c):
        gamma = jax.random.uniform(kg, (c,), dtype, 0.5, 1.5)
        beta = 0.1 * jax.random.normal(kb, (c,), dtype)
        mean = 0.1 * jax.random.normal(km, (c,), dtype)
        var = jax.random.uniform(kv, (c,), dtype, 0.5, 1.5)
        eps = 1e-5
        scale = gamma / jnp.sqrt(var + eps)
        bias = beta - mean * scale
        return scale.reshape(1, c), bias.reshape(1, c)

    s1, b1 = bn(ks[0], ks[1], ks[2], ks[3], inplanes)
    w1 = 0.1 * jax.random.normal(ks[4], (inplanes, planes), dtype)      # 1x1 IO
    s2, b2 = bn(ks[5], ks[6], ks[7], ks[8], planes)
    w2 = 0.1 * jax.random.normal(ks[9], (3, 3, planes, planes), dtype)  # HWIO
    s3, b3 = bn(ks[10], ks[11], ks[12], ks[13], planes)
    w3 = 0.1 * jax.random.normal(ks[14], (planes, Cout), dtype)         # 1x1 IO
    s4, b4 = bn(ks[15], ks[16], ks[17], ks[18], Cout)
    return (s1, b1, w1, s2, b2, w2, s3, b3, w3, s4, b4)


def bottleneck_reference(x_nchw, params, *, prob=1.0):
    """Pure-JAX/XLA reference mirroring the kernel's bf16 matmul operands."""
    (s1, b1, w1, s2, b2, w2, s3, b3, w3, s4, b4) = params
    r = lambda a: a.astype(jnp.bfloat16).astype(jnp.float32)  # kernel cast points
    x = jnp.transpose(x_nchw, (0, 2, 3, 1)).astype(jnp.float32)
    dn = ('NHWC', 'HWIO', 'NHWC')
    hp = lax.Precision.HIGHEST
    h = x * s1 + b1
    h = lax.conv_general_dilated(r(h), r(w1).reshape(1, 1, *w1.shape), (1, 1),
                                 'VALID', dimension_numbers=dn, precision=hp)
    h = jnp.maximum(h * s2 + b2, 0.0)
    h = lax.conv_general_dilated(r(h), r(w2), (1, 1), ((1, 1), (1, 1)),
                                 dimension_numbers=dn, precision=hp)
    h = jnp.maximum(h * s3 + b3, 0.0)
    h = lax.conv_general_dilated(r(h), r(w3).reshape(1, 1, *w3.shape), (1, 1),
                                 'VALID', dimension_numbers=dn, precision=hp)
    h = (h * s4 + b4) * prob
    Cin, Cout = x.shape[-1], h.shape[-1]
    shortcut = x
    if Cout != Cin:
        shortcut = jnp.concatenate(
            [x, jnp.zeros(x.shape[:-1] + (Cout - Cin,), x.dtype)], axis=-1)
    out = h + shortcut
    return jnp.transpose(out, (0, 3, 1, 2))


if __name__ == "__main__":
    key = jax.random.PRNGKey(0)
    kx, kp = jax.random.split(key)

    N, inplanes, planes, H, W = 2, 8, 4, 16, 16
    prob = 0.9

    x = jax.random.normal(kx, (N, inplanes, H, W), jnp.float32)   # NCHW input
    params = make_params(kp, inplanes, planes)

    out = bottleneck_forward(x, params, prob=prob)
    out = jax.block_until_ready(out)
    assert out.shape == (N, 4 * planes, H, W), out.shape

    ref = bottleneck_reference(x, params, prob=prob)
    err = float(jnp.max(jnp.abs(out - ref)))
    assert err < 2e-3, f"max abs error vs reference: {err}"

    print("KERNEL_OK")
</pallas_src>

<mosaic_0001>
module attributes {stable_mosaic.version = 11 : i64} {
  func.func @_bottleneck_kernel(%arg0: i32, %arg1: memref<1x16x16x128xf32, #tpu.memory_space<vmem>>, %arg2: memref<1x128xf32, #tpu.memory_space<vmem>>, %arg3: memref<1x128xf32, #tpu.memory_space<vmem>>, %arg4: memref<128x128xbf16, #tpu.memory_space<vmem>>, %arg5: memref<1x128xf32, #tpu.memory_space<vmem>>, %arg6: memref<1x128xf32, #tpu.memory_space<vmem>>, %arg7: memref<1152x128xbf16, #tpu.memory_space<vmem>>, %arg8: memref<1x128xf32, #tpu.memory_space<vmem>>, %arg9: memref<1x128xf32, #tpu.memory_space<vmem>>, %arg10: memref<128x128xbf16, #tpu.memory_space<vmem>>, %arg11: memref<1x128xf32, #tpu.memory_space<vmem>>, %arg12: memref<1x128xf32, #tpu.memory_space<vmem>>, %arg13: memref<1x16x16x128xf32, #tpu.memory_space<vmem>>, %arg14: memref<18x18x128xf32, #tpu.memory_space<vmem>>) attributes {dimension_semantics = [#tpu.dimension_semantics<parallel>], iteration_bounds = array<i64: 2>, scalar_prefetch = 0 : i64, scratch_operands = 1 : i64, tpu.core_type = #tpu.core_type<tc>, window_params = [{transform_indices = @transform_0, window_bounds = array<i64: 1, 16, 16, 128>}, {pipeline_mode = #tpu.pipeline_mode<synchronous>, transform_indices = @transform_1, window_bounds = array<i64: 1, 128>}, {pipeline_mode = #tpu.pipeline_mode<synchronous>, transform_indices = @transform_2, window_bounds = array<i64: 1, 128>}, {pipeline_mode = #tpu.pipeline_mode<synchronous>, transform_indices = @transform_3, window_bounds = array<i64: 128, 128>}, {pipeline_mode = #tpu.pipeline_mode<synchronous>, transform_indices = @transform_4, window_bounds = array<i64: 1, 128>}, {pipeline_mode = #tpu.pipeline_mode<synchronous>, transform_indices = @transform_5, window_bounds = array<i64: 1, 128>}, {pipeline_mode = #tpu.pipeline_mode<synchronous>, transform_indices = @transform_6, window_bounds = array<i64: 1152, 128>}, {pipeline_mode = #tpu.pipeline_mode<synchronous>, transform_indices = @transform_7, window_bounds = array<i64: 1, 128>}, {pipeline_mode = #tpu.pipeline_mode<synchronous>, transform_indices = @transform_8, window_bounds = array<i64: 1, 128>}, {pipeline_mode = #tpu.pipeline_mode<synchronous>, transform_indices = @transform_9, window_bounds = array<i64: 128, 128>}, {pipeline_mode = #tpu.pipeline_mode<synchronous>, transform_indices = @transform_10, window_bounds = array<i64: 1, 128>}, {pipeline_mode = #tpu.pipeline_mode<synchronous>, transform_indices = @transform_11, window_bounds = array<i64: 1, 128>}, {transform_indices = @transform_12, window_bounds = array<i64: 1, 16, 16, 128>}]} {
    %c0 = arith.constant 0 : index
    %c0_0 = arith.constant 0 : index
    %c0_1 = arith.constant 0 : index
    %c0_2 = arith.constant 0 : index
    %0 = vector.load %arg1[%c0, %c0_0, %c0_1, %c0_2] : memref<1x16x16x128xf32, #tpu.memory_space<vmem>>, vector<1x16x16x128xf32>
    %1 = vector.shape_cast %0 : vector<1x16x16x128xf32> to vector<16x16x128xf32>
    %2 = vector.shape_cast %1 : vector<16x16x128xf32> to vector<256x128xf32>
    %c0_3 = arith.constant 0 : index
    %c0_4 = arith.constant 0 : index
    %3 = vector.load %arg2[%c0_3, %c0_4] : memref<1x128xf32, #tpu.memory_space<vmem>>, vector<1x128xf32>
    %4 = vector.broadcast %3 : vector<1x128xf32> to vector<256x128xf32>
    %5 = arith.mulf %2, %4 : vector<256x128xf32>
    %c0_5 = arith.constant 0 : index
    %c0_6 = arith.constant 0 : index
    %6 = vector.load %arg3[%c0_5, %c0_6] : memref<1x128xf32, #tpu.memory_space<vmem>>, vector<1x128xf32>
    %7 = vector.broadcast %6 : vector<1x128xf32> to vector<256x128xf32>
    %8 = arith.addf %5, %7 : vector<256x128xf32>
    %9 = arith.truncf %8 : vector<256x128xf32> to vector<256x128xbf16>
    %c0_7 = arith.constant 0 : index
    %c0_8 = arith.constant 0 : index
    %10 = vector.load %arg4[%c0_7, %c0_8] : memref<128x128xbf16, #tpu.memory_space<vmem>>, vector<128x128xbf16>
    %cst = arith.constant dense<0.000000e+00> : vector<256x128xf32>
    %11 = tpu.matmul %9, %10, %cst {dimension_numbers = #tpu.dot_dimension_numbers<[1], [0], [0], [1], [0, 0, 1, 1], [], []>} : vector<256x128xbf16>, vector<128x128xbf16>, vector<256x128xf32> -> vector<256x128xf32>
    %c0_9 = arith.constant 0 : index
    %c0_10 = arith.constant 0 : index
    %12 = vector.load %arg5[%c0_9, %c0_10] : memref<1x128xf32, #tpu.memory_space<vmem>>, vector<1x128xf32>
    %13 = vector.broadcast %12 : vector<1x128xf32> to vector<256x128xf32>
    %14 = arith.mulf %11, %13 : vector<256x128xf32>
    %c0_11 = arith.constant 0 : index
    %c0_12 = arith.constant 0 : index
    %15 = vector.load %arg6[%c0_11, %c0_12] : memref<1x128xf32, #tpu.memory_space<vmem>>, vector<1x128xf32>
    %16 = vector.broadcast %15 : vector<1x128xf32> to vector<256x128xf32>
    %17 = arith.addf %14, %16 : vector<256x128xf32>
    %cst_13 = arith.constant 0.000000e+00 : f32
    %18 = vector.broadcast %cst_13 : f32 to vector<256x128xf32>
    %19 = arith.maximumf %17, %18 : vector<256x128xf32>
    %cst_14 = arith.constant 0.000000e+00 : f32
    %20 = vector.broadcast %cst_14 : f32 to vector<18x18x128xf32>
    %c0_15 = arith.constant 0 : index
    %c0_16 = arith.constant 0 : index
    %c0_17 = arith.constant 0 : index
    %21 = vector.load %arg14[%c0_15, %c0_16, %c0_17] : memref<18x18x128xf32, #tpu.memory_space<vmem>>, vector<18x18x128xf32>
    tpu.vector_store %arg14[%c0_15, %c0_16, %c0_17], %20 {strides = array<i32>} : memref<18x18x128xf32, #tpu.memory_space<vmem>>, vector<18x18x128xf32>,
    %22 = vector.shape_cast %19 : vector<256x128xf32> to vector<16x16x128xf32>
    %c1 = arith.constant 1 : index
    %c1_18 = arith.constant 1 : index
    %c0_19 = arith.constant 0 : index
    %23 = vector.load %arg14[%c1, %c1_18, %c0_19] : memref<18x18x128xf32, #tpu.memory_space<vmem>>, vector<16x16x128xf32>
    tpu.vector_store %arg14[%c1, %c1_18, %c0_19], %22 {strides = array<i32>} : memref<18x18x128xf32, #tpu.memory_space<vmem>>, vector<16x16x128xf32>,
    %c0_20 = arith.constant 0 : index
    %c0_21 = arith.constant 0 : index
    %c0_22 = arith.constant 0 : index
    %24 = vector.load %arg14[%c0_20, %c0_21, %c0_22] : memref<18x18x128xf32, #tpu.memory_space<vmem>>, vector<16x16x128xf32>
    %25 = arith.truncf %24 : vector<16x16x128xf32> to vector<16x16x128xbf16>
    %26 = vector.shape_cast %25 : vector<16x16x128xbf16> to vector<256x128xbf16>
    %c0_23 = arith.constant 0 : index
    %c1_24 = arith.constant 1 : index
    %c0_25 = arith.constant 0 : index
    %27 = vector.load %arg14[%c0_23, %c1_24, %c0_25] : memref<18x18x128xf32, #tpu.memory_space<vmem>>, vector<16x16x128xf32>
    %28 = arith.truncf %27 : vector<16x16x128xf32> to vector<16x16x128xbf16>
    %29 = vector.shape_cast %28 : vector<16x16x128xbf16> to vector<256x128xbf16>
    %c0_26 = arith.constant 0 : index
    %c2 = arith.constant 2 : index
    %c0_27 = arith.constant 0 : index
    %30 = vector.load %arg14[%c0_26, %c2, %c0_27] : memref<18x18x128xf32, #tpu.memory_space<vmem>>, vector<16x16x128xf32>
    %31 = arith.truncf %30 : vector<16x16x128xf32> to vector<16x16x128xbf16>
    %32 = vector.shape_cast %31 : vector<16x16x128xbf16> to vector<256x128xbf16>
    %c1_28 = arith.constant 1 : index
    %c0_29 = arith.constant 0 : index
    %c0_30 = arith.constant 0 : index
    %33 = vector.load %arg14[%c1_28, %c0_29, %c0_30] : memref<18x18x128xf32, #tpu.memory_space<vmem>>, vector<16x16x128xf32>
    %34 = arith.truncf %33 : vector<16x16x128xf32> to vector<16x16x128xbf16>
    %35 = vector.shape_cast %34 : vector<16x16x128xbf16> to vector<256x128xbf16>
    %c1_31 = arith.constant 1 : index
    %c1_32 = arith.constant 1 : index
    %c0_33 = arith.constant 0 : index
    %36 = vector.load %arg14[%c1_31, %c1_32, %c0_33] : memref<18x18x128xf32, #tpu.memory_space<vmem>>, vector<16x16x128xf32>
    %37 = arith.truncf %36 : vector<16x16x128xf32> to vector<16x16x128xbf16>
    %38 = vector.shape_cast %37 : vector<16x16x128xbf16> to vector<256x128xbf16>
    %c1_34 = arith.constant 1 : index
    %c2_35 = arith.constant 2 : index
    %c0_36 = arith.constant 0 : index
    %39 = vector.load %arg14[%c1_34, %c2_35, %c0_36] : memref<18x18x128xf32, #tpu.memory_space<vmem>>, vector<16x16x128xf32>
    %40 = arith.truncf %39 : vector<16x16x128xf32> to vector<16x16x128xbf16>
    %41 = vector.shape_cast %40 : vector<16x16x128xbf16> to vector<256x128xbf16>
    %c2_37 = arith.constant 2 : index
    %c0_38 = arith.constant 0 : index
    %c0_39 = arith.constant 0 : index
    %42 = vector.load %arg14[%c2_37, %c0_38, %c0_39] : memref<18x18x128xf32, #tpu.memory_space<vmem>>, vector<16x16x128xf32>
    %43 = arith.truncf %42 : vector<16x16x128xf32> to vector<16x16x128xbf16>
    %44 = vector.shape_cast %43 : vector<16x16x128xbf16> to vector<256x128xbf16>
    %c2_40 = arith.constant 2 : index
    %c1_41 = arith.constant 1 : index
    %c0_42 = arith.constant 0 : index
    %45 = vector.load %arg14[%c2_40, %c1_41, %c0_42] : memref<18x18x128xf32, #tpu.memory_space<vmem>>, vector<16x16x128xf32>
    %46 = arith.truncf %45 : vector<16x16x128xf32> to vector<16x16x128xbf16>
    %47 = vector.shape_cast %46 : vector<16x16x128xbf16> to vector<256x128xbf16>
    %c2_43 = arith.constant 2 : index
    %c2_44 = arith.constant 2 : index
    %c0_45 = arith.constant 0 : index
    %48 = vector.load %arg14[%c2_43, %c2_44, %c0_45] : memref<18x18x128xf32, #tpu.memory_space<vmem>>, vector<16x16x128xf32>
    %49 = arith.truncf %48 : vector<16x16x128xf32> to vector<16x16x128xbf16>
    %50 = vector.shape_cast %49 : vector<16x16x128xbf16> to vector<256x128xbf16>
    %51 = tpu.concatenate %26, %29, %32, %35, %38, %41, %44, %47, %50 in 1 : vector<256x128xbf16>, vector<256x128xbf16>, vector<256x128xbf16>, vector<256x128xbf16>, vector<256x128xbf16>, vector<256x128xbf16>, vector<256x128xbf16>, vector<256x128xbf16>, vector<256x128xbf16> -> vector<256x1152xbf16>
    %c0_46 = arith.constant 0 : index
    %c0_47 = arith.constant 0 : index
    %52 = vector.load %arg7[%c0_46, %c0_47] : memref<1152x128xbf16, #tpu.memory_space<vmem>>, vector<1152x128xbf16>
    %cst_48 = arith.constant dense<0.000000e+00> : vector<256x128xf32>
    %53 = tpu.matmul %51, %52, %cst_48 {dimension_numbers = #tpu.dot_dimension_numbers<[1], [0], [0], [1], [0, 0, 1, 1], [], []>} : vector<256x1152xbf16>, vector<1152x128xbf16>, vector<256x128xf32> -> vector<256x128xf32>
    %c0_49 = arith.constant 0 : index
    %c0_50 = arith.constant 0 : index
    %54 = vector.load %arg8[%c0_49, %c0_50] : memref<1x128xf32, #tpu.memory_space<vmem>>, vector<1x128xf32>
    %55 = vector.broadcast %54 : vector<1x128xf32> to vector<256x128xf32>
    %56 = arith.mulf %53, %55 : vector<256x128xf32>
    %c0_51 = arith.constant 0 : index
    %c0_52 = arith.constant 0 : index
    %57 = vector.load %arg9[%c0_51, %c0_52] : memref<1x128xf32, #tpu.memory_space<vmem>>, vector<1x128xf32>
    %58 = vector.broadcast %57 : vector<1x128xf32> to vector<256x128xf32>
    %59 = arith.addf %56, %58 : vector<256x128xf32>
    %cst_53 = arith.constant 0.000000e+00 : f32
    %60 = vector.broadcast %cst_53 : f32 to vector<256x128xf32>
    %61 = arith.maximumf %59, %60 : vector<256x128xf32>
    %62 = arith.truncf %61 : vector<256x128xf32> to vector<256x128xbf16>
    %c0_54 = arith.constant 0 : index
    %c0_55 = arith.constant 0 : index
    %63 = vector.load %arg10[%c0_54, %c0_55] : memref<128x128xbf16, #tpu.memory_space<vmem>>, vector<128x128xbf16>
    %cst_56 = arith.constant dense<0.000000e+00> : vector<256x128xf32>
    %64 = tpu.matmul %62, %63, %cst_56 {dimension_numbers = #tpu.dot_dimension_numbers<[1], [0], [0], [1], [0, 0, 1, 1], [], []>} : vector<256x128xbf16>, vector<128x128xbf16>, vector<256x128xf32> -> vector<256x128xf32>
    %c0_57 = arith.constant 0 : index
    %c0_58 = arith.constant 0 : index
    %65 = vector.load %arg11[%c0_57, %c0_58] : memref<1x128xf32, #tpu.memory_space<vmem>>, vector<1x128xf32>
    %66 = vector.broadcast %65 : vector<1x128xf32> to vector<256x128xf32>
    %67 = arith.mulf %64, %66 : vector<256x128xf32>
    %c0_59 = arith.constant 0 : index
    %c0_60 = arith.constant 0 : index
    %68 = vector.load %arg12[%c0_59, %c0_60] : memref<1x128xf32, #tpu.memory_space<vmem>>, vector<1x128xf32>
    %69 = vector.broadcast %68 : vector<1x128xf32> to vector<256x128xf32>
    %70 = arith.addf %67, %69 : vector<256x128xf32>
    %71 = arith.addf %70, %2 : vector<256x128xf32>
    %72 = vector.shape_cast %71 : vector<256x128xf32> to vector<16x16x128xf32>
    %c0_61 = arith.constant 0 : index
    %c0_62 = arith.constant 0 : index
    %c0_63 = arith.constant 0 : index
    %c0_64 = arith.constant 0 : index
    %73 = vector.load %arg13[%c0_61, %c0_62, %c0_63, %c0_64] : memref<1x16x16x128xf32, #tpu.memory_space<vmem>>, vector<1x16x16x128xf32>
    %74 = vector.shape_cast %73 : vector<1x16x16x128xf32> to vector<16x16x128xf32>
    %75 = vector.shape_cast %72 : vector<16x16x128xf32> to vector<1x16x16x128xf32>
    tpu.vector_store %arg13[%c0_61, %c0_62, %c0_63, %c0_64], %75 {strides = array<i32>} : memref<1x16x16x128xf32, #tpu.memory_space<vmem>>, vector<1x16x16x128xf32>,
    return
  }
  func.func @transform_0(%arg0: i32) -> (i32, i32, i32, i32) {
    %c0_i32 = arith.constant 0 : i32
    %c0_i32_0 = arith.constant 0 : i32
    %c0_i32_1 = arith.constant 0 : i32
    %c0_i32_2 = arith.constant 0 : i32
    return %arg0, %c0_i32, %c0_i32_0, %c0_i32_1 : i32, i32, i32, i32
  }
  func.func @transform_1(%arg0: i32) -> (i32, i32) {
    %c0_i32 = arith.constant 0 : i32
    %c0_i32_0 = arith.constant 0 : i32
    %c0_i32_1 = arith.constant 0 : i32
    return %c0_i32, %c0_i32_0 : i32, i32
  }
  func.func @transform_2(%arg0: i32) -> (i32, i32) {
    %c0_i32 = arith.constant 0 : i32
    %c0_i32_0 = arith.constant 0 : i32
    %c0_i32_1 = arith.constant 0 : i32
    return %c0_i32, %c0_i32_0 : i32, i32
  }
  func.func @transform_3(%arg0: i32) -> (i32, i32) {
    %c0_i32 = arith.constant 0 : i32
    %c0_i32_0 = arith.constant 0 : i32
    %c0_i32_1 = arith.constant 0 : i32
    return %c0_i32, %c0_i32_0 : i32, i32
  }
  func.func @transform_4(%arg0: i32) -> (i32, i32) {
    %c0_i32 = arith.constant 0 : i32
    %c0_i32_0 = arith.constant 0 : i32
    %c0_i32_1 = arith.constant 0 : i32
    return %c0_i32, %c0_i32_0 : i32, i32
  }
  func.func @transform_5(%arg0: i32) -> (i32, i32) {
    %c0_i32 = arith.constant 0 : i32
    %c0_i32_0 = arith.constant 0 : i32
    %c0_i32_1 = arith.constant 0 : i32
    return %c0_i32, %c0_i32_0 : i32, i32
  }
  func.func @transform_6(%arg0: i32) -> (i32, i32) {
    %c0_i32 = arith.constant 0 : i32
    %c0_i32_0 = arith.constant 0 : i32
    %c0_i32_1 = arith.constant 0 : i32
    return %c0_i32, %c0_i32_0 : i32, i32
  }
  func.func @transform_7(%arg0: i32) -> (i32, i32) {
    %c0_i32 = arith.constant 0 : i32
    %c0_i32_0 = arith.constant 0 : i32
    %c0_i32_1 = arith.constant 0 : i32
    return %c0_i32, %c0_i32_0 : i32, i32
  }
  func.func @transform_8(%arg0: i32) -> (i32, i32) {
    %c0_i32 = arith.constant 0 : i32
    %c0_i32_0 = arith.constant 0 : i32
    %c0_i32_1 = arith.constant 0 : i32
    return %c0_i32, %c0_i32_0 : i32, i32
  }
  func.func @transform_9(%arg0: i32) -> (i32, i32) {
    %c0_i32 = arith.constant 0 : i32
    %c0_i32_0 = arith.constant 0 : i32
    %c0_i32_1 = arith.constant 0 : i32
    return %c0_i32, %c0_i32_0 : i32, i32
  }
  func.func @transform_10(%arg0: i32) -> (i32, i32) {
    %c0_i32 = arith.constant 0 : i32
    %c0_i32_0 = arith.constant 0 : i32
    %c0_i32_1 = arith.constant 0 : i32
    return %c0_i32, %c0_i32_0 : i32, i32
  }
  func.func @transform_11(%arg0: i32) -> (i32, i32) {
    %c0_i32 = arith.constant 0 : i32
    %c0_i32_0 = arith.constant 0 : i32
    %c0_i32_1 = arith.constant 0 : i32
    return %c0_i32, %c0_i32_0 : i32, i32
  }
  func.func @transform_12(%arg0: i32) -> (i32, i32, i32, i32) {
    %c0_i32 = arith.constant 0 : i32
    %c0_i32_0 = arith.constant 0 : i32
    %c0_i32_1 = arith.constant 0 : i32
    %c0_i32_2 = arith.constant 0 : i32
    return %arg0, %c0_i32, %c0_i32_0, %c0_i32_1 : i32, i32, i32, i32
  }
}

</mosaic_0001>

<bundles_post_ra>
// kernel: tpu_custom_call.1
= control target key start
LH: loop header
LB: loop body
LE: loop exit
PB: predicated region body
PF: predicated region fallthrough
CT: control target
= control target key end

     0   :  { %s5824_s0 = inlined_call_operand.hbm [shape: f32[2,16,16,128], index: 0, kind: input, shape index: {}]   ;;  %s5825_s1 = inlined_call_operand.vmem [shape: f32[1,128], index: 1, kind: input, shape index: {}]   ;;  %s5826_s2 = inlined_call_operand.vmem [shape: f32[1,128], index: 2, kind: input, shape index: {}]   ;;  %s5827_s3 = inlined_call_operand.hbm [shape: bf16[128,128], index: 3, kind: input, shape index: {}]   ;;  %s5828_s4 = inlined_call_operand.vmem [shape: f32[1,128], index: 4, kind: input, shape index: {}]   ;;  %s5829_s5 = inlined_call_operand.vmem [shape: f32[1,128], index: 5, kind: input, shape index: {}]   ;;  %s5830_s6 = inlined_call_operand.hbm [shape: bf16[1152,128], index: 6, kind: input, shape index: {}]   ;;  %s5831_s7 = inlined_call_operand.vmem [shape: f32[1,128], index: 7, kind: input, shape index: {}]   ;;  %s5832_s8 = inlined_call_operand.vmem [shape: f32[1,128], index: 8, kind: input, shape index: {}]   ;;  %s5833_s9 = inlined_call_operand.hbm [shape: bf16[128,128], index: 9, kind: input, shape index: {}]   ;;  %s5834_s10 = inlined_call_operand.vmem [shape: f32[1,128], index: 10, kind: input, shape index: {}]   ;;  %s5835_s11 = inlined_call_operand.vmem [shape: f32[1,128], index: 11, kind: input, shape index: {}]   ;;  %s5836_s12 = inlined_call_operand.hbm [shape: f32[2,16,16,128], index: 12, kind: output, shape index: {}]  }
   0x1   :  { %5843 = sst [smem:[#allocation18_spill]] %s5832_s8 }
   0x2   :  { %5844 = sst [smem:[#allocation19_spill]] %s5834_s10 }
   0x3   :  { %5845 = sst [smem:[#allocation20_spill]] %s5835_s11 }
   0x4   :  { %5846 = sst [smem:[#allocation21_spill]] %s5836_s12 }
   0x5   :  { %17 = vsyncpa [#allocation4], 0 }
   0x6   :  { %19 = vsyncpa [#allocation4 + $0x1], 0 }
   0x7   :  { %20 = vsyncpa [#allocation7], 0 }
   0x8   :  { %21 = vsyncpa [#allocation10], 0 }
   0x9   :  { %22 = vsyncpa [#allocation5], 0 }
   0xa   :  { %24 = vsyncpa [#allocation5 + $0x1], 0  ;;  %s4719_s21 = smov 0   ;;  %s4721_s22 = smov 0  }
   0xb   :  { %s4723_s23 = smov 0   ;;  %s4725_s24 = smov 0  }
   0xc LB: > { %5847 = sst [smem:[#allocation16_spill]] %s4627_s21  ;;  %s4740_s25 = sadd.s32 4294967295, %s4639_s24   ;;  %s4639_s24 = sphi %s4725_s24, %s5875_s24   ;;  %s4635_s23 = sphi %s4723_s23, %s5874_s23   ;;  %s4631_s22 = sphi %s4721_s22, %s5873_s22   ;;  %s4627_s21 = sphi %s4719_s21, %s5872_s21  }
   0xd   : > { %s3448_s26 = sadd.s32 4294967294, %s4639_s24   ;;  %p50_p0 = scmp.ne.s32.totalorder %s4631_s22, %s4627_s21 }
   0xe   : > { %p5839_p1 = scmp.eq.s32.totalorder %s4740_s25, 0  ;;  %p311_p3 = scmp.eq.s32.totalorder %s3448_s26, 1 }
   0xf   : > { %p3449_p5 = scmp.ge.s32.totalorder %s4639_s24, 1  ;;  %p318_p7 = scmp.lt.s32.totalorder %s4639_s24, 3 }
  0x10   : > { %p4749_p4 = por %p5839_p1, %p50_p0  ;;  %p4754_p6 = por %p311_p3, %p50_p0 }
  0x11   : > { %p4759_p8 = pnand %p3449_p5, %p318_p7  ;;  %s4641_s30 = smov [#allocation6]  }
  0x12   : > { %s5848_s27 = scalar_select %p4749_p4, 1, 0 }
  0x13   : > { %s5849_s28 = scalar_select %p4754_p6, 1, 0 }
  0x14   : > { %s5851_s29 = scalar_select %p4759_p8, 1, 0 }
  0x15   : > { %5850 = sst [smem:[#allocation17_spill]] %s5849_s28  ;;  %s336_s13 = sshll.u32 %s4641_s30, 4  ;;  %s4763_s13 = int_to_ptr.vmem [resolvable:$true] %s336_s13 }
  0x16   : > { %p4262_p9 = pneg %p4759_p8  ;;  %s4642_s15 = smov [#allocation8]  }
  0x17   : > { %s355_s16 = sshll.u32 %s4642_s15, 4  ;;  %s4643_s17 = smov [#allocation9]   ;;  %s4774_s16 = int_to_ptr.vmem [resolvable:$true] %s355_s16 }
  0x18   : > { %p4770_p11 = pnand %p4262_p9, %p5839_p1  ;;  %s4776_s18 = sshll.u32 %s4643_s17, 4  ;;  %s375_s18 = int_to_ptr.vmem [resolvable:$true] %s4776_s18 }
  0x19   : > { %s4451_s26 = scalar_lea.hbm %s5827_s3, 1024 }
  0x1a   : > { %p4452_p12 = scmp.ne.s32.totalorder %s5827_s3, %s4451_s26  ;;  %p4786_p13 = pneg %p4770_p11 }
  0x1b   : > { %p4458_p5 = scmp.lt.u32.totalorder %s4451_s26, %s5827_s3 }
  0x1c   : > { %p4454_p0 = pnand %p4786_p13, %p4452_p12 }
  0x1e   : > { %p4455_p3 = pneg %p4454_p0 }
  0x20   : > { %p4460_p7 = pnand %p4458_p5, %p4455_p3 }
  0x22   : > { %4463 = shalt.err (!%p4460_p7)
}
  0x23   : > { %s4464_s28 = scalar_lea.vmem %s4763_s13, 1024  ;;  %p4472_p2 = scmp.lt.s32.totalorder %s4763_s13, %s4763_s13 }
  0x24   : > { %p4465_p9 = scmp.ne.s32.totalorder %s4763_s13, %s4464_s28  ;;  %p4473_p6 = scmp.lt.s32.totalorder %s4464_s28, %s4464_s28 }
  0x26   : > { %p4467_p10 = pnand %p4465_p9, %p4786_p13  ;;  %p4474_p12 = por %p4473_p6, %p4472_p2 }
  0x28   : > { %p4468_p1 = pneg %p4467_p10 }
  0x2a   : > { %p4475_p0 = pnand %p4474_p12, %p4468_p1 }
  0x2c   : > { %4478 = shalt.err (!%p4475_p0)
}
  0x2d   : > { %s4644_s19 = smov 64   ;;  %s4645_s20 = smov 4  }
  0x2e   : > { %4265 = dma.hbm_to_vmem [thread:$0]  (!%p4770_p11), %s5827_s3, 1024, %s4763_s13, [#allocation7], %s4644_s19, %s4644_s19, %s4645_s20  }
  0x2f   : > { %s4479_s28 = scalar_lea.hbm %s5830_s6, 9216 }
  0x30   : > { %p4480_p1 = scmp.ne.s32.totalorder %s5830_s6, %s4479_s28  ;;  %p4486_p10 = scmp.lt.u32.totalorder %s4479_s28, %s5830_s6 }
  0x32   : > { %p4482_p2 = pnand %p4480_p1, %p4786_p13 }
  0x34   : > { %p4483_p6 = pneg %p4482_p2 }
  0x36   : > { %p4488_p3 = pnand %p4486_p10, %p4483_p6 }
  0x38   : > { %4491 = shalt.err (!%p4488_p3)
}
  0x39   : > { %s4492_s13 = scalar_lea.vmem %s4774_s16, 9216  ;;  %p4500_p12 = scmp.lt.s32.totalorder %s4774_s16, %s4774_s16 }
  0x3a   : > { %p4493_p5 = scmp.ne.s32.totalorder %s4774_s16, %s4492_s13  ;;  %p4501_p0 = scmp.lt.s32.totalorder %s4492_s13, %s4492_s13 }
  0x3c   : > { %p4495_p7 = pnand %p4493_p5, %p4786_p13  ;;  %p4502_p1 = por %p4501_p0, %p4500_p12 }
  0x3e   : > { %p4496_p9 = pneg %p4495_p7 }
  0x40   : > { %p4503_p2 = pnand %p4502_p1, %p4496_p9 }
  0x42   : > { %4506 = shalt.err (!%p4503_p2)
}
  0x43   : > { %4268 = dma.hbm_to_vmem [thread:$0]  (!%p4770_p11), %s5830_s6, 9216, %s4774_s16, [#allocation7], %s4644_s19, %s4644_s19, %s4645_s20  }
  0x44   : > { %s4507_s26 = scalar_lea.hbm %s5833_s9, 1024 }
  0x45   : > { %p4508_p6 = scmp.ne.s32.totalorder %s5833_s9, %s4507_s26  ;;  %p4514_p5 = scmp.lt.u32.totalorder %s4507_s26, %s5833_s9 }
  0x47   : > { %p4510_p10 = pnand %p4508_p6, %p4786_p13 }
  0x49   : > { %p4511_p3 = pneg %p4510_p10 }
  0x4b   : > { %p4516_p7 = pnand %p4514_p5, %p4511_p3 }
  0x4d   : > { %4519 = shalt.err (!%p4516_p7)
}
  0x4e   : > { %s4520_s13 = scalar_lea.vmem %s375_s18, 1024  ;;  %p4528_p1 = scmp.lt.s32.totalorder %s375_s18, %s375_s18 }
  0x4f   : > { %p4521_p9 = scmp.ne.s32.totalorder %s375_s18, %s4520_s13  ;;  %p4529_p2 = scmp.lt.s32.totalorder %s4520_s13, %s4520_s13 }
  0x51   : > { %p4523_p12 = pnand %p4521_p9, %p4786_p13  ;;  %p4530_p4 = por %p4529_p2, %p4528_p1 }
  0x53   : > { %p4524_p0 = pneg %p4523_p12 }
  0x55   : > { %p4531_p8 = pnand %p4530_p4, %p4524_p0 }
  0x57   : > { %4534 = shalt.err (!%p4531_p8)
}
  0x58   : > { %4271 = dma.hbm_to_vmem [thread:$0]  (!%p4770_p11), %s5833_s9, 1024, %s375_s18, [#allocation10], %s4644_s19, %s4644_s19, %s4645_s20  }
  0x59   : > { %s4859_s21 = sadd.s32 1, %s4639_s24   ;;  %s37_s10 = sadd.s32 1, %s4635_s23 }
  0x5a   : > { %s34_s14 = ssub.s32 %s4639_s24, %s4859_s21  ;;  %p44_p8 = scmp.ne.s32.totalorder %s4635_s23, %s4631_s22 }
  0x5b   : > { %p35_p4 = scmp.eq.s32.totalorder %s34_s14, 0  ;;  %p45_p13 = scmp.eq.s32.totalorder %s4639_s24, 0 }
  0x5c   : > { %p4283_p6 = scmp.lt.s32.totalorder %s4639_s24, 2  ;;  %p5854_p3 = scmp.eq.s32.totalorder %s4740_s25, 1 }
  0x5d   : > { %s4869_s11 = scalar_select %p35_p4, %s4635_s23, %s37_s10  }
  0x5e   : > { %p46_p10 = por %p45_p13, %p44_p8  ;;  %p4873_p5 = por %p5854_p3, %p44_p8 }
  0x5f   : > { %s394_s26 = sand.u32 1, %s4635_s23   ;;  %s3564_s30 = sshll.u32 %s4639_s24, 12 }
  0x60   : > { %s3454_s18 = sshll.u32 %s394_s26, 8  ;;  %s4882_s15 = scalar_lea.hbm %s5824_s0, %s3564_s30 }
  0x61   : > { %s398_s17 = scalar_lea.vmem [#allocation3], %s3454_s18  ;;  %p4884_p11 = pnand %p4283_p6, %p46_p10 }
  0x62   : > { %s405_s28 = sshll.u32 %s398_s17, 4  ;;  %s4890_s16 = scalar_lea.sflag [#allocation4], %s394_s26  ;;  %s4888_s28 = int_to_ptr.vmem [resolvable:$true] %s405_s28 }
  0x63   : > { %s4535_s8 = scalar_lea.hbm %s4882_s15, 4096  ;;  %p4537_p9 = pneg %p4884_p11 }
  0x64   : > { %p4536_p7 = scmp.ne.s32.totalorder %s4882_s15, %s4535_s8  ;;  %s4540_s30 = scalar_lea.hbm %s5824_s0, 8192 }
  0x65   : > { %p4541_p1 = scmp.lt.u32.totalorder %s4882_s15, %s5824_s0  ;;  %p4542_p2 = scmp.lt.u32.totalorder %s4540_s30, %s4535_s8 }
  0x66   : > { %p4538_p12 = pnand %p4537_p9, %p4536_p7  ;;  %p4544_p8 = scmp.lt.u32.totalorder %s4535_s8, %s4882_s15 }
  0x67   : > { %p4543_p4 = por %p4542_p2, %p4541_p1 }
  0x68   : > { %p4539_p0 = pneg %p4538_p12 }
  0x69   : > { %p4545_p13 = por %p4544_p8, %p4543_p4 }
  0x6b   : > { %p4546_p6 = pnand %p4545_p13, %p4539_p0 }
  0x6d   : > { %4549 = shalt.err (!%p4546_p6)
}
  0x6e   : > { %s4550_s26 = scalar_lea.vmem %s4888_s28, 4096  ;;  %s4646_s20 = smov [#allocation3]  }
  0x6f   : > { %p4551_p10 = scmp.ne.s32.totalorder %s4888_s28, %s4550_s26  ;;  %s4555_s17 = sshll.u32 %s4646_s20, 4  ;;  %s4556_s17 = int_to_ptr.vmem [resolvable:$false] %s4555_s17 }
  0x70   : > { %s4557_s14 = scalar_lea.vmem %s4556_s17, 8192  ;;  %p4558_p12 = scmp.lt.s32.totalorder %s4888_s28, %s4556_s17 }
  0x71   : > { %p4553_p3 = pnand %p4551_p10, %p4537_p9  ;;  %p4559_p1 = scmp.lt.s32.totalorder %s4557_s14, %s4550_s26 }
  0x73   : > { %p4554_p7 = pneg %p4553_p3  ;;  %p4560_p2 = por %p4559_p1, %p4558_p12 }
  0x75   : > { %p4561_p4 = pnand %p4560_p2, %p4554_p7 }
  0x77   : > { %4564 = shalt.err (!%p4561_p4)
}
  0x78   : > { %s4647_s8 = smov 128   ;;  %s4648_s10 = smov 8  }
  0x79   : > { %4275 = dma.hbm_to_vmem [thread:$0]  (!%p4884_p11), %s4882_s15, 4096, %s4888_s28, %s4890_s16, %s4647_s8, %s4647_s8, %s4648_s10  }
  0x7a   : > { %p5857_p9 = scmp.ne.s32.totalorder %s5851_s29, 0 }
  0x7b   : > { %s4921_s30 = sand.u32 (!%p5857_p9), 1, %s4631_s22   ;;  %p5858_p0 = scmp.ne.s32.totalorder (!%p5857_p9), %s5848_s27, 0 }
  0x7c   : > { %417 = sbr.rel (%p5857_p9) target bundleno = 1169 (0x491), region = 68  ;;  %s3458_s18 = sshll.u32 (!%p5857_p9), %s4921_s30, 8 }
  0x7d   : > { %s420_s19 = scalar_lea.sflag (!%p5857_p9), [#allocation4], %s4921_s30  ;;  %s4927_s26 = scalar_lea.vmem (!%p5857_p9), [#allocation3], %s3458_s18 }
  0x83   : > { %4610 = dma.done.wait (%p5858_p0), %s420_s19, 4096  }
  0x84   : > { %4612 = vsyncadd (%p5858_p0), %s420_s19, 4294963200  ;;  %p5859_p11 = scmp.eq.s32.totalorder %s4740_s25, 0 }
  0x86   : > { %4614 = dma.done.wait (%p5859_p11), [#allocation7], 10240   ;;  %p5860_p8 = pmov %p5859_p11 }
  0x88   : > { %4616 = vsyncadd (%p5860_p8), [#allocation7], 4294957056  ;;  %p5861_p13 = pmov %p5860_p8 }
  0x89   : > { %p5862_p6 = pmov %p5860_p8 }
  0x8a   : > { %4618 = dma.done.wait (%p5861_p13), [#allocation10], 1024  }
  0x8b   : > { %4620 = vsyncadd (%p5862_p6), [#allocation10], 4294966272  ;;  %v4330_v0 = vld [vmem:[#allocation6] sm:$0xff]   ;;  %v4331_v1 = vld [vmem:[#allocation6 + $0x8] sm:$0xff]   ;;  %s5863_s27 = sld [smem:[#allocation18_spill]]  ;;  %s5864_s28 = sld [smem:[#allocation19_spill]] }
  0x8c   : > { %4086 = vmatprep.subr.bf16.mxu0 %v4330_v0  ;;  %4230 = vmatprep.subr.bf16.mxu1 %v4330_v0  ;;  %v4332_v2 = vld [vmem:[#allocation6 + $0x10] sm:$0xff]   ;;  %v4333_v3 = vld [vmem:[#allocation6 + $0x18] sm:$0xff]   ;;  %v477_v4 = vld [vmem:[%s4927_s26] sm:$0xff]  ;;  %s5865_s20 = sld [smem:[#allocation20_spill]]  ;;  %s5653_s17 = scalar_lea.vmem [#allocation11], %s3458_s18 }
  0x8d   : > { %4087 = vmatpush3.bf16.msra.mxu0 %v4330_v0  ;;  %4238 = vmatpush3.bf16.msra.mxu1 %v4330_v0  ;;  %v478_v5 = vld [vmem:[%s4927_s26 + $0x8] sm:$0xff]  ;;  %v4946_v6 = vld [vmem:[%s5825_s1] ss:$0 sm:$0xff]  ;;  %v4334_v12 = vld [vmem:[#allocation6 + $0x20] sm:$0xff]   ;;  %s3565_s18 = sshll.u32 %s4740_s25, 12  ;;  %s3346_s14 = sshll.u32 %s5653_s17, 4  ;;  %s5776_s14 = int_to_ptr.vmem [resolvable:$true] %s3346_s14 }
  0x8e   : > { %4088 = vmatprep.subr.bf16.mxu0 %v4331_v1  ;;  %4231 = vmatprep.subr.bf16.mxu1 %v4331_v1  ;;  %v516_v7 = vmul.f32 %v4946_v6, %v477_v4  ;;  %v517_v8 = vmul.f32 %v4946_v6, %v478_v5  ;;  %v4953_v9 = vld [vmem:[%s5826_s2] ss:$0 sm:$0xff]  ;;  %v493_v14 = vld [vmem:[%s4927_s26 + $0x80] sm:$0xff]  ;;  %v4335_v15 = vld [vmem:[#allocation6 + $0x28] sm:$0xff]   ;;  %s5866_s19 = sld [smem:[#allocation21_spill]]  ;;  %s4565_s29 = scalar_lea.vmem %s5776_s14, 4096 }
  0x8f   : > { %v494_v16 = vld [vmem:[%s4927_s26 + $0x88] sm:$0xff]  ;;  %v479_v17 = vld [vmem:[%s4927_s26 + $0x10] sm:$0xff]  ;;  %v480_v19 = vld [vmem:[%s4927_s26 + $0x18] sm:$0xff]  ;;  %v532_v22 = vmul.f32 %v4946_v6, %v493_v14  ;;  %p4566_p10 = scmp.ne.s32.totalorder %s5776_s14, %s4565_s29  ;;  %s4651_s15 = smov [#allocation11]  }
  0x90   : > { %v555_v10 = vadd.f32 %v4953_v9, %v516_v7  ;;  %v556_v11 = vadd.f32 %v4953_v9, %v517_v8  ;;  %v4336_v18 = vld [vmem:[#allocation6 + $0x30] sm:$0xff]   ;;  %v481_v20 = vld [vmem:[%s4927_s26 + $0x20] sm:$0xff]  ;;  %v482_v21 = vld [vmem:[%s4927_s26 + $0x28] sm:$0xff]  ;;  %v533_v23 = vmul.f32 %v4946_v6, %v494_v16  ;;  %v518_v29 = vmul.f32 %v4946_v6, %v479_v17 }
  0x91   : > { %4089 = vmatpush3.bf16.msra.mxu0 %v4331_v1  ;;  %4239 = vmatpush3.bf16.msra.mxu1 %v4331_v1  ;;  %v495_v24 = vld [vmem:[%s4927_s26 + $0x90] sm:$0xff]  ;;  %v571_v25 = vadd.f32 %v4953_v9, %v532_v22  ;;  %v496_v26 = vld [vmem:[%s4927_s26 + $0x98] sm:$0xff]  ;;  %v497_v28 = vld [vmem:[%s4927_s26 + $0xa0] sm:$0xff]  ;;  %v519_v30 = vmul.f32 %v4946_v6, %v480_v19  ;;  %v520_v32 = vmul.f32 %v4946_v6, %v481_v20  ;;  %p4567_p3 = pnand %p4566_p10, %p4873_p5 }
  0x92   : > { %4090 = vmatprep.subr.bf16.mxu0 %v4332_v2  ;;  %4232 = vmatprep.subr.bf16.mxu1 %v4332_v2  ;;  %v587_v13 = vpack.c.bf16 %v556_v11, %v555_v10  ;;  %v572_v27 = vadd.f32 %v4953_v9, %v533_v23  ;;  %v498_v31 = vld [vmem:[%s4927_s26 + $0xa8] sm:$0xff]  ;;  %v521_v33 = vmul.f32 %v4946_v6, %v482_v21  ;;  %v4337_v35 = vld [vmem:[#allocation6 + $0x38] sm:$0xff]   ;;  %v483_v38 = vld [vmem:[%s4927_s26 + $0x30] sm:$0xff] }
  0x93   : > { %v534_v36 = vmul.f32 %v4946_v6, %v495_v24  ;;  %v535_v37 = vmul.f32 %v4946_v6, %v496_v26  ;;  %v484_v39 = vld [vmem:[%s4927_s26 + $0x38] sm:$0xff]  ;;  %v536_v40 = vmul.f32 %v4946_v6, %v497_v28  ;;  %v537_v41 = vmul.f32 %v4946_v6, %v498_v31  ;;  %v485_v44 = vld [vmem:[%s4927_s26 + $0x40] sm:$0xff]  ;;  %v486_v45 = vld [vmem:[%s4927_s26 + $0x48] sm:$0xff]  ;;  %p4568_p7 = pneg %p4567_p3 }
  0x94   : > { %4102 = vmatprep.mubr.bf16.mxu0 %v587_v13  ;;  %v595_v34 = vpack.c.bf16 %v572_v27, %v571_v25  ;;  %v557_v42 = vadd.f32 %v4953_v9, %v518_v29  ;;  %v558_v43 = vadd.f32 %v4953_v9, %v519_v30  ;;  %v559_v46 = vadd.f32 %v4953_v9, %v520_v32  ;;  %v499_v48 = vld [vmem:[%s4927_s26 + $0xb0] sm:$0xff]  ;;  %v500_v49 = vld [vmem:[%s4927_s26 + $0xb8] sm:$0xff]  ;;  %v501_v52 = vld [vmem:[%s4927_s26 + $0xc0] sm:$0xff]  ;;  %s5774_s25 = scalar_lea.hbm %s5866_s19, %s3565_s18 }
  0x95   : > { %4091 = vmatpush3.bf16.msra.mxu0 %v4332_v2  ;;  %4240 = vmatpush3.bf16.msra.mxu1 %v4332_v2  ;;  %v560_v47 = vadd.f32 %v4953_v9, %v521_v33  ;;  %v573_v50 = vadd.f32 %v4953_v9, %v534_v36  ;;  %v574_v51 = vadd.f32 %v4953_v9, %v535_v37  ;;  %v4344_v53 = vld [vmem:[#allocation8 + $0xc0] sm:$0xff]   ;;  %v502_v56 = vld [vmem:[%s4927_s26 + $0xc8] sm:$0xff]  ;;  %v487_v5 = vld [vmem:[%s4927_s26 + $0x50] sm:$0xff] }
  0x96   : > { %4092 = vmatprep.subr.bf16.mxu0 %v4333_v3  ;;  %4233 = vmatprep.subr.bf16.mxu1 %v4333_v3  ;;  %v575_v54 = vadd.f32 %v4953_v9, %v536_v40  ;;  %v576_v55 = vadd.f32 %v4953_v9, %v537_v41  ;;  %v588_v57 = vpack.c.bf16 %v558_v43, %v557_v42  ;;  %v4338_v60 = vld [vmem:[#allocation8 + $0x40] sm:$0xff]   ;;  %v4348_v4 = vld [vmem:[#allocation8 + $0xc8] sm:$0xff]   ;;  %v488_v7 = vld [vmem:[%s4927_s26 + $0x58] sm:$0xff] }
  0x97   : > { %4118 = vmatprep.mubr.bf16.mxu1 %v595_v34  ;;  %v522_v58 = vmul.f32 %v4946_v6, %v483_v38  ;;  %v523_v59 = vmul.f32 %v4946_v6, %v484_v39  ;;  %v589_v61 = vpack.c.bf16 %v560_v47, %v559_v46  ;;  %v524_v62 = vmul.f32 %v4946_v6, %v485_v44  ;;  %v4346_v0 = vld [vmem:[#allocation8 + $0x80] sm:$0xff]   ;;  %v490_v16 = vld [vmem:[%s4927_s26 + $0x68] sm:$0xff]  ;;  %v503_v20 = vld [vmem:[%s4927_s26 + $0xd0] sm:$0xff] }
  0x98   : > { %v525_v63 = vmul.f32 %v4946_v6, %v486_v45  ;;  %v596_v1 = vpack.c.bf16 %v574_v51, %v573_v50  ;;  %v538_v2 = vmul.f32 %v4946_v6, %v499_v48  ;;  %v597_v8 = vpack.c.bf16 %v576_v55, %v575_v54  ;;  %v4340_v17 = vld [vmem:[#allocation8 + $0x48] sm:$0xff]   ;;  %v504_v21 = vld [vmem:[%s4927_s26 + $0xd8] sm:$0xff]  ;;  %v505_v26 = vld [vmem:[%s4927_s26 + $0xe0] sm:$0xff] }
  0x99   : > { %4093 = vmatpush3.bf16.msra.mxu0 %v4333_v3  ;;  %4241 = vmatpush3.bf16.msra.mxu1 %v4333_v3  ;;  %v539_v3 = vmul.f32 %v4946_v6, %v500_v49  ;;  %v540_v10 = vmul.f32 %v4946_v6, %v501_v52  ;;  %v541_v11 = vmul.f32 %v4946_v6, %v502_v56  ;;  %v4341_v22 = vld [vmem:[#allocation8 + $0x8] sm:$0xff]   ;;  %v4342_v28 = vld [vmem:[#allocation8 + $0x50] sm:$0xff]   ;;  %v4345_v43 = vld [vmem:[#allocation8 + $0x58] sm:$0xff]  }
  0x9a   : > { %4094 = vmatprep.subr.bf16.mxu0 %v4334_v12  ;;  %4234 = vmatprep.subr.bf16.mxu1 %v4334_v12  ;;  %v561_v13 = vadd.f32 %v4953_v9, %v522_v58  ;;  %v562_v14 = vadd.f32 %v4953_v9, %v523_v59  ;;  %v564_v19 = vadd.f32 %v4953_v9, %v525_v63  ;;  %v4350_v23 = vld [vmem:[#allocation8 + $0x88] sm:$0xff]   ;;  %v4352_v29 = vld [vmem:[#allocation8 + $0xd0] sm:$0xff]   ;;  %v492_v45 = vld [vmem:[%s4927_s26 + $0x78] sm:$0xff] }
  0x9b   : > { %v577_v24 = vadd.f32 %v4953_v9, %v538_v2  ;;  %v578_v25 = vadd.f32 %v4953_v9, %v539_v3  ;;  %v506_v27 = vld [vmem:[%s4927_s26 + $0xe8] sm:$0xff]  ;;  %v579_v30 = vadd.f32 %v4953_v9, %v540_v10  ;;  %v580_v31 = vadd.f32 %v4953_v9, %v541_v11  ;;  %v4354_v32 = vld [vmem:[#allocation8 + $0x90] sm:$0xff]   ;;  %v508_v54 = vld [vmem:[%s4927_s26 + $0xf8] sm:$0xff] }
  0x9c   : > { %v590_v33 = vpack.c.bf16 %v562_v14, %v561_v13  ;;  %v526_v34 = vmul.f32 %v4946_v6, %v487_v5  ;;  %v529_v38 = vmul.f32 %v4946_v6, %v490_v16  ;;  %v4343_v39 = vld [vmem:[#allocation8 + $0x10] sm:$0xff]   ;;  %v542_v41 = vmul.f32 %v4946_v6, %v503_v20  ;;  %v4347_v55 = vld [vmem:[#allocation8 + $0x18] sm:$0xff]   ;;  %v4349_v58 = vld [vmem:[#allocation8 + $0x60] sm:$0xff]  }
  0x9d   : > { %4095 = vmatpush3.bf16.msra.mxu0 %v4334_v12  ;;  %4242 = vmatpush3.bf16.msra.mxu1 %v4334_v12  ;;  %v4339_v12 = vld [vmem:[#allocation8] sm:$0xff]   ;;  %v598_v40 = vpack.c.bf16 %v578_v25, %v577_v24  ;;  %v543_v42 = vmul.f32 %v4946_v6, %v504_v21  ;;  %v491_v44 = vld [vmem:[%s4927_s26 + $0x70] sm:$0xff]  ;;  %v599_v46 = vpack.c.bf16 %v580_v31, %v579_v30  ;;  %v4353_v5 = vld [vmem:[#allocation8 + $0x68] sm:$0xff]  }
  0x9e   : > { %4096 = vmatprep.subr.bf16.mxu0 %v4335_v15  ;;  %4235 = vmatprep.subr.bf16.mxu1 %v4335_v15  ;;  %v544_v47 = vmul.f32 %v4946_v6, %v505_v26  ;;  %v545_v48 = vmul.f32 %v4946_v6, %v506_v27  ;;  %v565_v49 = vadd.f32 %v4953_v9, %v526_v34  ;;  %v4355_v11 = vld [vmem:[#allocation8 + $0x28] sm:$0xff]   ;;  %v4357_v16 = vld [vmem:[#allocation8 + $0x70] sm:$0xff]   ;;  %v4361_v20 = vld [vmem:[#allocation8 + $0x78] sm:$0xff]  }
  0x9f   : > { %v568_v52 = vadd.f32 %v4953_v9, %v529_v38  ;;  %v581_v56 = vadd.f32 %v4953_v9, %v542_v41  ;;  %v531_v63 = vmul.f32 %v4946_v6, %v492_v45  ;;  %v4362_v21 = vld [vmem:[#allocation8 + $0xa0] sm:$0xff]   ;;  %v4364_v26 = vld [vmem:[#allocation8 + $0xe8] sm:$0xff]   ;;  %v4367_v30 = vld [vmem:[#allocation8 + $0xf0] sm:$0xff]  }
  0xa0   : > { %v583_v59 = vadd.f32 %v4953_v9, %v544_v47  ;;  %v4365_v27 = vld [vmem:[#allocation8 + $0xa8] sm:$0xff]   ;;  %v4369_v31 = vld [vmem:[#allocation8 + $0xb0] sm:$0xff]   ;;  %v4371_v34 = vld [vmem:[#allocation8 + $0xb8] sm:$0xff]  }
  0xa1   : > { %4097 = vmatpush3.bf16.msra.mxu0 %v4335_v15  ;;  %4243 = vmatpush3.bf16.msra.mxu1 %v4335_v15  ;;  %v489_v15 = vld [vmem:[%s4927_s26 + $0x60] sm:$0xff]  ;;  %v570_v10 = vadd.f32 %v4953_v9, %v531_v63  ;;  %v4375_v38 = vld [vmem:[#allocation8 + $0x110] sm:$0xff]   ;;  %v4385_v45 = vld [vmem:[#allocation8 + $0x128] sm:$0xff]  }
  0xa2   : > { %4098 = vmatprep.subr.bf16.mxu0 %v4336_v18  ;;  %4236 = vmatprep.subr.bf16.mxu1 %v4336_v18  ;;  %v528_v37 = vmul.f32 %v4946_v6, %v489_v15  ;;  %v4649_v15 = vmov 0.0   ;;  %v4378_v41 = vld [vmem:[#allocation8 + $0x1c0] sm:$0xff]   ;;  %v4389_v47 = vld [vmem:[#allocation8 + $0x130] sm:$0xff]  }
  0xa3   : > { %944 = vst [vmem:[#allocation2 + $0x30] sm:$0xff] %v4649_v15  ;;  %945 = vst [vmem:[#allocation2 + $0x38] sm:$0xff] %v4649_v15 }
  0xa4   : > { %v567_v51 = vadd.f32 %v4953_v9, %v528_v37  ;;  %938 = vst [vmem:[#allocation2] sm:$0xff] %v4649_v15  ;;  %939 = vst [vmem:[#allocation2 + $0x8] sm:$0xff] %v4649_v15  ;;  %v4374_v37 = vld [vmem:[#allocation8 + $0x150] sm:$0xff]  }
  0xa5   : > { %4099 = vmatpush3.bf16.msra.mxu0 %v4336_v18  ;;  %4244 = vmatpush3.bf16.msra.mxu1 %v4336_v18  ;;  %v563_v18 = vadd.f32 %v4953_v9, %v524_v62  ;;  %v530_v62 = vmul.f32 %v4946_v6, %v491_v44  ;;  %940 = vst [vmem:[#allocation2 + $0x10] sm:$0x3] %v4649_v15  ;;  %941 = vst [vmem:[#allocation2 + $0x18] sm:$0xff] %v4649_v15  ;;  %v4384_v44 = vld [vmem:[#allocation8 + $0x168] sm:$0xff]  }
  0xa6   : > { %4100 = vmatprep.subr.bf16.mxu0 %v4337_v35  ;;  %4237 = vmatprep.subr.bf16.mxu1 %v4337_v35  ;;  %942 = vst [vmem:[#allocation2 + $0x20] sm:$0xff] %v4649_v15  ;;  %943 = vst [vmem:[#allocation2 + $0x28] sm:$0x3] %v4649_v15 }
  0xa7   : > { %v591_v36 = vpack.c.bf16 %v564_v19, %v563_v18  ;;  %946 = vst [vmem:[#allocation2 + $0x40] sm:$0x3] %v4649_v15  ;;  %947 = vst [vmem:[#allocation2 + $0x48] sm:$0xff] %v4649_v15  ;;  %v4359_v18 = vld [vmem:[#allocation8 + $0x30] sm:$0xff]   ;;  %v4360_v19 = vld [vmem:[#allocation8 + $0xe0] sm:$0xff]  }
  0xa8   : > { %948 = vst [vmem:[#allocation2 + $0x50] sm:$0xff] %v4649_v15  ;;  %949 = vst [vmem:[#allocation2 + $0x58] sm:$0x3] %v4649_v15 }
  0xa9   : > { %4101 = vmatpush3.bf16.msra.mxu0 %v4337_v35  ;;  %4245 = vmatpush3.bf16.msra.mxu1 %v4337_v35  ;;  %v527_v35 = vmul.f32 %v4946_v6, %v488_v7  ;;  %950 = vst [vmem:[#allocation2 + $0x60] sm:$0xff] %v4649_v15  ;;  %951 = vst [vmem:[#allocation2 + $0x68] sm:$0xff] %v4649_v15 }
  0xaa   : > { %3702 = vmatprep.subr.bf16.mxu0 %v4344_v53  ;;  %3590 = vmatprep.subr.bf16.mxu1 %v4338_v60  ;;  %v507_v53 = vld [vmem:[%s4927_s26 + $0xf0] sm:$0xff]  ;;  %v584_v60 = vadd.f32 %v4953_v9, %v545_v48  ;;  %952 = vst [vmem:[#allocation2 + $0x70] sm:$0x3] %v4649_v15  ;;  %953 = vst [vmem:[#allocation2 + $0x78] sm:$0xff] %v4649_v15  ;;  %v4392_v48 = vld [vmem:[#allocation8 + $0x178] sm:$0xff]  }
  0xab   : > { %v566_v50 = vadd.f32 %v4953_v9, %v527_v35  ;;  %v546_v3 = vmul.f32 %v4946_v6, %v507_v53  ;;  %954 = vst [vmem:[#allocation2 + $0x80] sm:$0xff] %v4649_v15  ;;  %955 = vst [vmem:[#allocation2 + $0x88] sm:$0x3] %v4649_v15  ;;  %v4372_v35 = vld [vmem:[#allocation8 + $0x148] sm:$0xff]  }
  0xac   : > { %4103 = vmatmul.mubr.bf16.vlgmr.msra.gmra.mrb[0].mxu0 %v588_v57  ;;  %4119 = vmatmul.mubr.bf16.vlgmr.msra.gmra.mrb[0].mxu1 %v596_v1  ;;  %v582_v57 = vadd.f32 %v4953_v9, %v543_v42  ;;  %v4351_v1 = vld [vmem:[#allocation8 + $0x20] sm:$0xff]   ;;  %v601_v7 = vpack.c.bf16 %v584_v60, %v583_v59  ;;  %956 = vst [vmem:[#allocation2 + $0x90] sm:$0xff] %v4649_v15  ;;  %957 = vst [vmem:[#allocation2 + $0x98] sm:$0xff] %v4649_v15 }
  0xad   : > { %4106 = vmatprep.mubr.bf16.mxu0 %v589_v61  ;;  %3703 = vmatpush3.bf16.msra.mxu0 %v4346_v0  ;;  %v592_v61 = vpack.c.bf16 %v566_v50, %v565_v49  ;;  %v593_v0 = vpack.c.bf16 %v568_v52, %v567_v51  ;;  %958 = vst [vmem:[#allocation2 + $0xa0] sm:$0x3] %v4649_v15  ;;  %959 = vst [vmem:[#allocation2 + $0xa8] sm:$0xff] %v4649_v15  ;;  %v1074_v24 = vld [vmem:[#allocation2 + $0x9] sm:$0xff]  ;;  %v5050_v50 = vld [vmem:[%s5828_s4] ss:$0 sm:$0xff] }
  0xae   : > { %3704 = vmatprep.subr.bf16.mxu0 %v4348_v4  ;;  %4122 = vmatprep.mubr.bf16.mxu1 %v597_v8  ;;  %v600_v2 = vpack.c.bf16 %v582_v57, %v581_v56  ;;  %v547_v4 = vmul.f32 %v4946_v6, %v508_v54  ;;  %v569_v8 = vadd.f32 %v4953_v9, %v530_v62  ;;  %v4380_v42 = vld [vmem:[#allocation8 + $0x160] sm:$0xff]   ;;  %v4393_v49 = vld [vmem:[#allocation8 + $0x138] sm:$0xff]   ;;  %v5055_v52 = vld [vmem:[%s5829_s5] ss:$0 sm:$0xff] }
  0xaf   : > { %3591 = vmatpush3.bf16.msra.mxu1 %v4339_v12  ;;  %v585_v12 = vadd.f32 %v4953_v9, %v546_v3  ;;  %960 = vst [vmem:[#allocation2 + $0xb0] sm:$0xff] %v4649_v15  ;;  %961 = vst [vmem:[#allocation2 + $0xb8] sm:$0x3] %v4649_v15 }
  0xb0   : > { %3592 = vmatprep.subr.bf16.mxu1 %v4340_v17  ;;  %v586_v13 = vadd.f32 %v4953_v9, %v547_v4  ;;  %v594_v14 = vpack.c.bf16 %v570_v10, %v569_v8  ;;  %962 = vst [vmem:[#allocation2 + $0xc0] sm:$0xff] %v4649_v15  ;;  %963 = vst [vmem:[#allocation2 + $0xc8] sm:$0xff] %v4649_v15  ;;  %v4356_v9 = vld [vmem:[#allocation8 + $0xd8] sm:$0xff]  }
  0xb1   : > { %3705 = vmatpush3.bf16.msra.mxu0 %v4350_v23  ;;  %964 = vst [vmem:[#allocation2 + $0xd0] sm:$0x3] %v4649_v15  ;;  %965 = vst [vmem:[#allocation2 + $0xd8] sm:$0xff] %v4649_v15  ;;  %v4358_v17 = vld [vmem:[#allocation8 + $0x98] sm:$0xff]  }
  0xb2   : > { %3706 = vmatprep.subr.bf16.mxu0 %v4352_v29  ;;  %v602_v6 = vpack.c.bf16 %v586_v13, %v585_v12  ;;  %966 = vst [vmem:[#allocation2 + $0xe0] sm:$0xff] %v4649_v15  ;;  %967 = vst [vmem:[#allocation2 + $0xe8] sm:$0x3] %v4649_v15  ;;  %v1073_v23 = vld [vmem:[#allocation2 + $0x1] sm:$0xff]  ;;  %v4366_v29 = vld [vmem:[#allocation8 + $0x140] sm:$0xff]  }
  0xb3   : > { %3593 = vmatpush3.bf16.msra.mxu1 %v4341_v22  ;;  %968 = vst [vmem:[#allocation2 + $0xf0] sm:$0xff] %v4649_v15  ;;  %969 = vst [vmem:[#allocation2 + $0xf8] sm:$0xff] %v4649_v15  ;;  %v4363_v22 = vld [vmem:[#allocation8 + $0x38] sm:$0xff]   ;;  %v1105_v25 = vpack.c.bf16 %v1074_v24, %v1073_v23 }
  0xb4   : > { %4107 = vmatmul.mubr.bf16.gmra.mrb[4].mxu0 %v590_v33  ;;  %3594 = vmatprep.subr.bf16.mxu1 %v4342_v28  ;;  %970 = vst [vmem:[#allocation2 + $0x100] sm:$0x3] %v4649_v15  ;;  %971 = vst [vmem:[#allocation2 + $0x108] sm:$0xff] %v4649_v15  ;;  %v4650_v28 = vmov 0.0|0.0   ;;  %v4370_v33 = vld [vmem:[#allocation8 + $0xf8] sm:$0xff]  }
  0xb5   : > { %4110 = vmatprep.mubr.bf16.mxu0 %v591_v36  ;;  %3707 = vmatpush3.bf16.msra.mxu0 %v4354_v32  ;;  %972 = vst [vmem:[#allocation2 + $0x110] sm:$0xff] %v4649_v15  ;;  %973 = vst [vmem:[#allocation2 + $0x118] sm:$0x3] %v4649_v15  ;;  %v4368_v32 = vld [vmem:[#allocation8 + $0x100] sm:$0xff]   ;;  %v4373_v36 = vld [vmem:[#allocation8 + $0x108] sm:$0xff]  }
  0xb6   : > { %4123 = vmatmul.mubr.bf16.gmra.mrb[4].mxu1 %v598_v40  ;;  %974 = vst [vmem:[#allocation2 + $0x120] sm:$0xff] %v4649_v15  ;;  %975 = vst [vmem:[#allocation2 + $0x128] sm:$0xff] %v4649_v15  ;;  %3708 = vmatprep.subr.bf16.mxu0 %v4356_v9  ;;  %v4377_v40 = vld [vmem:[#allocation8 + $0x118] sm:$0xff]  }
  0xb7   : > { %4126 = vmatprep.mubr.bf16.mxu1 %v599_v46  ;;  %3595 = vmatpush3.bf16.msra.mxu1 %v4343_v39  ;;  %976 = vst [vmem:[#allocation2 + $0x130] sm:$0x3] %v4649_v15  ;;  %977 = vst [vmem:[#allocation2 + $0x138] sm:$0xff] %v4649_v15  ;;  %v4376_v39 = vld [vmem:[#allocation8 + $0x158] sm:$0xff]   ;;  %v4388_v46 = vld [vmem:[#allocation8 + $0x170] sm:$0xff]  }
  0xb8   : > { %3596 = vmatprep.subr.bf16.mxu1 %v4345_v43  ;;  %978 = vst [vmem:[#allocation2 + $0x140] sm:$0xff] %v4649_v15  ;;  %979 = vst [vmem:[#allocation2 + $0x148] sm:$0x3] %v4649_v15  ;;  %v4381_v43 = vld [vmem:[#allocation8 + $0x120] sm:$0xff]  }
  0xb9   : > { %980 = vst [vmem:[#allocation2 + $0x150] sm:$0xff] %v4649_v15  ;;  %981 = vst [vmem:[#allocation2 + $0x158] sm:$0xff] %v4649_v15  ;;  %3709 = vmatpush3.bf16.msra.mxu0 %v4358_v17 }
  0xba   : > { %982 = vst [vmem:[#allocation2 + $0x160] sm:$0x3] %v4649_v15  ;;  %983 = vst [vmem:[#allocation2 + $0x168] sm:$0xff] %v4649_v15  ;;  %3710 = vmatprep.subr.bf16.mxu0 %v4360_v19 }
  0xbb   : > { %3597 = vmatpush3.bf16.msra.mxu1 %v4347_v55  ;;  %984 = vst [vmem:[#allocation2 + $0x170] sm:$0xff] %v4649_v15  ;;  %985 = vst [vmem:[#allocation2 + $0x178] sm:$0x3] %v4649_v15 }
  0xbc   : > { %4111 = vmatmul.mubr.bf16.gmra.mrb[8].mxu0 %v592_v61  ;;  %3598 = vmatprep.subr.bf16.mxu1 %v4349_v58  ;;  %986 = vst [vmem:[#allocation2 + $0x180] sm:$0xff] %v4649_v15  ;;  %987 = vst [vmem:[#allocation2 + $0x188] sm:$0xff] %v4649_v15 }
  0xbd   : > { %4114 = vmatprep.mubr.bf16.mxu0 %v593_v0  ;;  %988 = vst [vmem:[#allocation2 + $0x190] sm:$0x3] %v4649_v15  ;;  %989 = vst [vmem:[#allocation2 + $0x198] sm:$0xff] %v4649_v15  ;;  %3711 = vmatpush3.bf16.msra.mxu0 %v4362_v21 }
  0xbe   : > { %4127 = vmatmul.mubr.bf16.gmra.mrb[8].mxu1 %v600_v2  ;;  %990 = vst [vmem:[#allocation2 + $0x1a0] sm:$0xff] %v4649_v15  ;;  %991 = vst [vmem:[#allocation2 + $0x1a8] sm:$0x3] %v4649_v15  ;;  %3712 = vmatprep.subr.bf16.mxu0 %v4364_v26 }
  0xbf   : > { %4130 = vmatprep.mubr.bf16.mxu1 %v601_v7  ;;  %3599 = vmatpush3.bf16.msra.mxu1 %v4351_v1 }
  0xc0   : > { %3600 = vmatprep.subr.bf16.mxu1 %v4353_v5 }
  0xc1   : > { %3713 = vmatpush3.bf16.msra.mxu0 %v4365_v27 }
  0xc2   : > { %3714 = vmatprep.subr.bf16.mxu0 %v4367_v30 }
  0xc3   : > { %3601 = vmatpush3.bf16.msra.mxu1 %v4355_v11 }
  0xc4   : > { %4115 = vmatmul.mubr.bf16.gmra.mrb[12].mxu0 %v594_v14  ;;  %3602 = vmatprep.subr.bf16.mxu1 %v4357_v16  ;;  %v5071_v14 = vld [vmem:[#allocation8 + $0x200] sm:$0xff]  }
  0xc5   : > { %3715 = vmatpush3.bf16.msra.mxu0 %v4369_v31 }
  0xc6   : > { %4131 = vmatmul.mubr.bf16.gmra.mrb[12].mxu1 %v602_v6  ;;  %3716 = vmatprep.subr.bf16.mxu0 %v4370_v33 }
  0xc7   : > { %3603 = vmatpush3.bf16.msra.mxu1 %v4359_v18  ;;  %2066 = vmatprep.mubr.bf16.mxu1 %v1105_v25 }
  0xc8   : > { %3604 = vmatprep.subr.bf16.mxu1 %v4361_v20 }
  0xc9   : > { %3717 = vmatpush3.bf16.msra.mxu0 %v4371_v34 }
  0xca   : > { %3926 = vmatprep.subr.bf16.mxu0 %v4378_v41 }
  0xcb   : > { %3605 = vmatpush3.bf16.msra.mxu1 %v4363_v22 }
  0xcc   : > { %3814 = vmatprep.subr.bf16.mxu1 %v4366_v29 }
  0xce   : > { %2067 = vmatmul.mubr.bf16.vlgmr.msra.gmra.mrb[16].mxu1 %v4650_v28 }
  0xcf   : > { %3815 = vmatpush3.bf16.msra.mxu1 %v4368_v32 }
  0xd0   : > { %3816 = vmatprep.subr.bf16.mxu1 %v4372_v35 }
  0xd3   : > { %3817 = vmatpush3.bf16.msra.mxu1 %v4373_v36 }
  0xd4   : > { %3818 = vmatprep.subr.bf16.mxu1 %v4374_v37 }
  0xd7   : > { %3819 = vmatpush3.bf16.msra.mxu1 %v4375_v38 }
  0xd8   : > { %3820 = vmatprep.subr.bf16.mxu1 %v4376_v39 }
  0xdb   : > { %3821 = vmatpush3.bf16.msra.mxu1 %v4377_v40 }
  0xdc   : > { %3822 = vmatprep.subr.bf16.mxu1 %v4380_v42 }
  0xdf   : > { %3823 = vmatpush3.bf16.msra.mxu1 %v4381_v43 }
  0xe0   : > { %3824 = vmatprep.subr.bf16.mxu1 %v4384_v44 }
  0xe3   : > { %3825 = vmatpush3.bf16.msra.mxu1 %v4385_v45 }
  0xe4   : > { %3826 = vmatprep.subr.bf16.mxu1 %v4388_v46 }
  0xe7   : > { %3827 = vmatpush3.bf16.msra.mxu1 %v4389_v47  ;;  %v1121_v47 = vld [vmem:[#allocation2 + $0x2] sm:$0xff] }
  0xe8   : > { %3828 = vmatprep.subr.bf16.mxu1 %v4392_v48  ;;  %v1122_v48 = vld [vmem:[#allocation2 + $0xa] sm:$0xff] }
  0xeb   : > { %3829 = vmatpush3.bf16.msra.mxu1 %v4393_v49 }
  0xec   : > { %4134 = vmatprep.subr.bf16.mxu1 %v5071_v14 }
 0x17f   : > { %v4104_v51 = vpop.f32.mrb[0].mxu0  ;;  %v4120_v57 = vpop.f32.mrb[0].mxu1 }
 0x180   : > { %v837_v53 = vmul.f32 %v4104_v51, %v5050_v50  ;;  %v701_v54 = vpop.f32.mrb[1].mxu0  ;;  %v853_v61 = vmul.f32 %v4120_v57, %v5050_v50  ;;  %v765_v62 = vpop.f32.mrb[1].mxu1 }
 0x181   : > { %v835_v55 = vmul.f32 %v5050_v50, %v701_v54  ;;  %v4105_v56 = vpop.f32.mrb[2].mxu0  ;;  %v851_v1 = vmul.f32 %v5050_v50, %v765_v62  ;;  %v4121_v2 = vpop.f32.mrb[2].mxu1  ;;  %v1153_v62 = vpack.c.bf16 %v1122_v48, %v1121_v47 }
 0x182   : > { %v876_v58 = vadd.f32 %v5055_v52, %v837_v53  ;;  %v838_v59 = vmul.f32 %v4105_v56, %v5050_v50  ;;  %v704_v60 = vpop.f32.mrb[3].mxu0  ;;  %v892_v5 = vadd.f32 %v5055_v52, %v853_v61  ;;  %v854_v7 = vmul.f32 %v4121_v2, %v5050_v50  ;;  %v768_v8 = vpop.f32.mrb[3].mxu1 }
 0x183   : > { %v874_v63 = vadd.f32 %v5055_v52, %v835_v55  ;;  %v836_v0 = vmul.f32 %v5050_v50, %v704_v60  ;;  %v890_v12 = vadd.f32 %v5055_v52, %v851_v1  ;;  %v852_v13 = vmul.f32 %v5050_v50, %v768_v8  ;;  %v4379_v8 = vld [vmem:[#allocation8 + $0x180] sm:$0xff]  }
 0x184   : > { %v908_v3 = vmax.f32 %v876_v58, 0.0  ;;  %v877_v4 = vadd.f32 %v5055_v52, %v838_v59  ;;  %v924_v15 = vmax.f32 %v892_v5, 0.0  ;;  %v893_v9 = vadd.f32 %v5055_v52, %v854_v7 }
 0x185   : > { %v906_v10 = vmax.f32 %v874_v63, 0.0  ;;  %v875_v11 = vadd.f32 %v5055_v52, %v836_v0  ;;  %v922_v18 = vmax.f32 %v890_v12, 0.0  ;;  %v891_v19 = vadd.f32 %v5055_v52, %v852_v13 }
 0x186   : > { %995 = vst [vmem:[#allocation2 + $0x31] sm:$0xff] %v908_v3  ;;  %v909_v6 = vmax.f32 %v877_v4, 0.0  ;;  %1011 = vst [vmem:[#allocation2 + $0xf1] sm:$0xff] %v924_v15  ;;  %v925_v23 = vmax.f32 %v893_v9, 0.0 }
 0x187   : > { %993 = vst [vmem:[#allocation2 + $0x19] sm:$0xff] %v906_v10  ;;  %v907_v16 = vmax.f32 %v875_v11, 0.0  ;;  %v4108_v17 = vpop.f32.mrb[4].mxu0  ;;  %1009 = vst [vmem:[#allocation2 + $0xd9] sm:$0xff] %v922_v18  ;;  %v923_v27 = vmax.f32 %v891_v19, 0.0 }
 0x188   : > { %996 = vst [vmem:[#allocation2 + $0x39] sm:$0xff] %v909_v6  ;;  %v841_v20 = vmul.f32 %v4108_v17, %v5050_v50  ;;  %v717_v21 = vpop.f32.mrb[5].mxu0  ;;  %v5077_v22 = vpack.c.bf16 %v909_v6, %v908_v3  ;;  %1012 = vst [vmem:[#allocation2 + $0xf9] sm:$0xff] %v925_v23  ;;  %v5083_v34 = vpack.c.bf16 %v925_v23, %v924_v15 }
 0x189   : > { %994 = vst [vmem:[#allocation2 + $0x21] sm:$0xff] %v907_v16  ;;  %v839_v24 = vmul.f32 %v5050_v50, %v717_v21  ;;  %v4109_v25 = vpop.f32.mrb[6].mxu0  ;;  %v1106_v26 = vpack.c.bf16 %v907_v16, %v906_v10  ;;  %v4124_v28 = vpop.f32.mrb[4].mxu1  ;;  %1010 = vst [vmem:[#allocation2 + $0xe1] sm:$0xff] %v923_v27  ;;  %v5088_v39 = vpack.c.bf16 %v923_v27, %v922_v18  ;;  %v4382_v16 = vld [vmem:[#allocation8 + $0x1c8] sm:$0xff]  }
 0x18a   : > { %v880_v29 = vadd.f32 %v5055_v52, %v841_v20  ;;  %v842_v30 = vmul.f32 %v4109_v25, %v5050_v50  ;;  %v720_v31 = vpop.f32.mrb[7].mxu0  ;;  %v857_v32 = vmul.f32 %v4124_v28, %v5050_v50  ;;  %v781_v33 = vpop.f32.mrb[5].mxu1  ;;  %v4383_v28 = vld [vmem:[#allocation8 + $0x188] sm:$0xff]  }
 0x18b   : > { %v878_v35 = vadd.f32 %v5055_v52, %v839_v24  ;;  %v840_v36 = vmul.f32 %v5050_v50, %v720_v31  ;;  %2074 = vmatprep.mubr.bf16.mxu1 %v1106_v26  ;;  %v855_v37 = vmul.f32 %v5050_v50, %v781_v33  ;;  %v4125_v38 = vpop.f32.mrb[6].mxu1 }
 0x18c   : > { %v912_v40 = vmax.f32 %v880_v29, 0.0  ;;  %v881_v41 = vadd.f32 %v5055_v52, %v842_v30  ;;  %v5092_v42 = vadd.f32 %v5055_v52, %v857_v32  ;;  %v858_v43 = vmul.f32 %v4125_v38, %v5050_v50  ;;  %v784_v44 = vpop.f32.mrb[7].mxu1  ;;  %v4386_v30 = vld [vmem:[#allocation8 + $0x1d0] sm:$0xff]  }
 0x18d   : > { %v910_v45 = vmax.f32 %v878_v35, 0.0  ;;  %v879_v46 = vadd.f32 %v5055_v52, %v840_v36  ;;  %v5097_v49 = vadd.f32 %v5055_v52, %v855_v37  ;;  %v856_v51 = vmul.f32 %v5050_v50, %v784_v44  ;;  %v1171_v11 = vld [vmem:[#allocation2 + $0x30] sm:$0xff] }
 0x18e   : > { %999 = vst [vmem:[#allocation2 + $0x61] sm:$0xff] %v912_v40  ;;  %v913_v53 = vmax.f32 %v881_v41, 0.0  ;;  %v928_v54 = vmax.f32 %v5092_v42, 0.0  ;;  %v5102_v55 = vadd.f32 %v5055_v52, %v858_v43  ;;  %v1169_v60 = vld [vmem:[#allocation2 + $0x18] sm:$0xff] }
 0x18f   : > { %997 = vst [vmem:[#allocation2 + $0x49] sm:$0xff] %v910_v45  ;;  %v911_v56 = vmax.f32 %v879_v46, 0.0  ;;  %v4112_v57 = vpop.f32.mrb[8].mxu0  ;;  %v926_v58 = vmax.f32 %v5097_v49, 0.0  ;;  %v895_v59 = vadd.f32 %v5055_v52, %v856_v51  ;;  %v1172_v63 = vld [vmem:[#allocation2 + $0x38] sm:$0xff] }
 0x190   : > { %1000 = vst [vmem:[#allocation2 + $0x69] sm:$0xff] %v913_v53  ;;  %v1170_v61 = vld [vmem:[#allocation2 + $0x20] sm:$0xff]  ;;  %v845_v0 = vmul.f32 %v4112_v57, %v5050_v50  ;;  %v733_v1 = vpop.f32.mrb[9].mxu0  ;;  %v5107_v2 = vpack.c.bf16 %v913_v53, %v912_v40  ;;  %1015 = vst [vmem:[#allocation2 + $0x121] sm:$0xff] %v928_v54  ;;  %v929_v15 = vmax.f32 %v5102_v55, 0.0  ;;  %v5117_v17 = vpack.c.bf16 %v1172_v63, %v1171_v11 }
 0x191   : > { %998 = vst [vmem:[#allocation2 + $0x51] sm:$0xff] %v911_v56  ;;  %v1201_v3 = vpack.c.bf16 %v1170_v61, %v1169_v60  ;;  %v843_v4 = vmul.f32 %v5050_v50, %v733_v1  ;;  %v4113_v5 = vpop.f32.mrb[10].mxu0  ;;  %v5112_v7 = vpack.c.bf16 %v911_v56, %v910_v45  ;;  %1013 = vst [vmem:[#allocation2 + $0x109] sm:$0xff] %v926_v58  ;;  %v4128_v10 = vpop.f32.mrb[8].mxu1  ;;  %v927_v9 = vmax.f32 %v895_v59, 0.0  ;;  %v1123_v31 = vld [vmem:[#allocation2 + $0x1a] sm:$0xff] }
 0x192   : > { %v884_v12 = vadd.f32 %v5055_v52, %v845_v0  ;;  %v846_v13 = vmul.f32 %v4113_v5, %v5050_v50  ;;  %v736_v6 = vpop.f32.mrb[11].mxu0  ;;  %v797_v20 = vpop.f32.mrb[9].mxu1  ;;  %1016 = vst [vmem:[#allocation2 + $0x129] sm:$0xff] %v929_v15  ;;  %v861_v24 = vmul.f32 %v4128_v10, %v5050_v50  ;;  %v1124_v32 = vld [vmem:[#allocation2 + $0x22] sm:$0xff] }
 0x193   : > { %2227 = vmatprep.mubr.bf16.mxu0 %v1201_v3  ;;  %2075 = vmatmul.mubr.bf16.gmra.mrb[20].mxu1 %v1201_v3  ;;  %v882_v18 = vadd.f32 %v5055_v52, %v843_v4  ;;  %v844_v19 = vmul.f32 %v5050_v50, %v736_v6  ;;  %1014 = vst [vmem:[#allocation2 + $0x111] sm:$0xff] %v927_v9  ;;  %v4129_v25 = vpop.f32.mrb[10].mxu1  ;;  %v4390_v3 = vld [vmem:[#allocation8 + $0x1d8] sm:$0xff]  }
 0x194   : > { %2228 = vmatmul.mubr.bf16.vlgmr.msra.gmra.mrb[16].mxu0 %v1153_v62  ;;  %2082 = vmatprep.mubr.bf16.mxu1 %v5077_v22  ;;  %v916_v21 = vmax.f32 %v884_v12, 0.0  ;;  %v885_v23 = vadd.f32 %v5055_v52, %v846_v13  ;;  %v859_v29 = vmul.f32 %v5050_v50, %v797_v20  ;;  %v800_v22 = vpop.f32.mrb[11].mxu1  ;;  %v5130_v36 = vadd.f32 %v5055_v52, %v861_v24 }
 0x195   : > { %2235 = vmatprep.mubr.bf16.mxu0 %v5117_v17  ;;  %v914_v26 = vmax.f32 %v882_v18, 0.0  ;;  %v883_v27 = vadd.f32 %v5055_v52, %v844_v19  ;;  %3927 = vmatpush3.bf16.msra.mxu0 %v4379_v8  ;;  %v862_v37 = vmul.f32 %v4129_v25, %v5050_v50  ;;  %v860_v43 = vmul.f32 %v5050_v50, %v800_v22 }
 0x196   : > { %1003 = vst [vmem:[#allocation2 + $0x91] sm:$0xff] %v916_v21  ;;  %v917_v33 = vmax.f32 %v885_v23, 0.0  ;;  %v1173_v35 = vld [vmem:[#allocation2 + $0x48] sm:$0xff]  ;;  %3928 = vmatprep.subr.bf16.mxu0 %v4382_v16  ;;  %v5136_v41 = vadd.f32 %v5055_v52, %v859_v29  ;;  %v5139_v44 = vpack.c.bf16 %v927_v9, %v926_v58  ;;  %v5144_v49 = vpack.c.bf16 %v1124_v32, %v1123_v31  ;;  %v4387_v58 = vld [vmem:[#allocation8 + $0x190] sm:$0xff]  }
 0x197   : > { %1001 = vst [vmem:[#allocation2 + $0x79] sm:$0xff] %v914_v26  ;;  %v5133_v38 = vmax.f32 %v883_v27, 0.0  ;;  %v4116_v40 = vpop.f32.mrb[12].mxu0  ;;  %v932_v63 = vmax.f32 %v5130_v36, 0.0  ;;  %v901_v8 = vadd.f32 %v5055_v52, %v862_v37  ;;  %v899_v10 = vadd.f32 %v5055_v52, %v860_v43  ;;  %v1126_v23 = vld [vmem:[#allocation2 + $0x3a] sm:$0xff] }
 0x198   : > { %1004 = vst [vmem:[#allocation2 + $0x99] sm:$0xff] %v917_v33  ;;  %v1174_v45 = vld [vmem:[#allocation2 + $0x50] sm:$0xff]  ;;  %v849_v46 = vmul.f32 %v4116_v40, %v5050_v50  ;;  %v749_v47 = vpop.f32.mrb[13].mxu0  ;;  %v5142_v48 = vpack.c.bf16 %v917_v33, %v916_v21  ;;  %v930_v0 = vmax.f32 %v5136_v41, 0.0  ;;  %v5169_v6 = vpack.c.bf16 %v929_v15, %v928_v54  ;;  %v1175_v27 = vld [vmem:[#allocation2 + $0x60] sm:$0xff]  ;;  %v4396_v40 = vld [vmem:[#allocation8 + $0x1e8] sm:$0xff]  }
 0x199   : > { %1002 = vst [vmem:[#allocation2 + $0x81] sm:$0xff] %v5133_v38  ;;  %v5147_v51 = vpack.c.bf16 %v1174_v45, %v1173_v35  ;;  %v847_v53 = vmul.f32 %v5050_v50, %v749_v47  ;;  %v4117_v56 = vpop.f32.mrb[14].mxu0  ;;  %v5151_v57 = vpack.c.bf16 %v5133_v38, %v914_v26  ;;  %3929 = vmatpush3.bf16.msra.mxu0 %v4383_v28  ;;  %v4132_v59 = vpop.f32.mrb[12].mxu1  ;;  %1019 = vst [vmem:[#allocation2 + $0x151] sm:$0xff] %v932_v63  ;;  %v1125_v21 = vld [vmem:[#allocation2 + $0x32] sm:$0xff]  ;;  %v1176_v28 = vld [vmem:[#allocation2 + $0x68] sm:$0xff] }
 0x19a   : > { %v888_v60 = vadd.f32 %v5055_v52, %v849_v46  ;;  %v850_v61 = vmul.f32 %v4117_v56, %v5050_v50  ;;  %v752_v62 = vpop.f32.mrb[15].mxu0  ;;  %3930 = vmatprep.subr.bf16.mxu0 %v4386_v30  ;;  %v813_v1 = vpop.f32.mrb[13].mxu1  ;;  %1017 = vst [vmem:[#allocation2 + $0x139] sm:$0xff] %v930_v0  ;;  %v933_v19 = vmax.f32 %v901_v8, 0.0  ;;  %v931_v20 = vmax.f32 %v899_v10, 0.0  ;;  %v4394_v54 = vld [vmem:[#allocation8 + $0x1e0] sm:$0xff]  }
 0x19b   : > { %2083 = vmatmul.mubr.bf16.gmra.mrb[24].mxu1 %v5117_v17  ;;  %v886_v4 = vadd.f32 %v5055_v52, %v847_v53  ;;  %v848_v5 = vmul.f32 %v5050_v50, %v752_v62  ;;  %v4133_v11 = vpop.f32.mrb[14].mxu1  ;;  %v865_v42 = vmul.f32 %v4132_v59, %v5050_v50  ;;  %v863_v15 = vmul.f32 %v5050_v50, %v813_v1  ;;  %v4395_v33 = vld [vmem:[#allocation8 + $0x1a0] sm:$0xff]   ;;  %v4399_v59 = vld [vmem:[#allocation8 + $0x1f0] sm:$0xff]   ;;  %v4401_v1 = vld [vmem:[#allocation8 + $0x1f8] sm:$0xff]  }
 0x19c   : > { %2236 = vmatmul.mubr.bf16.gmra.mrb[20].mxu0 %v5144_v49  ;;  %2090 = vmatprep.mubr.bf16.mxu1 %v5112_v7  ;;  %v920_v12 = vmax.f32 %v888_v60, 0.0  ;;  %v889_v13 = vadd.f32 %v5055_v52, %v850_v61  ;;  %v816_v9 = vpop.f32.mrb[15].mxu1  ;;  %v4391_v7 = vld [vmem:[#allocation8 + $0x198] sm:$0xff]   ;;  %1020 = vst [vmem:[#allocation2 + $0x159] sm:$0xff] %v933_v19  ;;  %1018 = vst [vmem:[#allocation2 + $0x141] sm:$0xff] %v931_v20  ;;  %v866_v25 = vmul.f32 %v4133_v11, %v5050_v50 }
 0x19d   : > { %2243 = vmatprep.mubr.bf16.mxu0 %v5147_v51  ;;  %v918_v16 = vmax.f32 %v886_v4, 0.0  ;;  %v887_v18 = vadd.f32 %v5055_v52, %v848_v5  ;;  %3931 = vmatpush3.bf16.msra.mxu0 %v4387_v58  ;;  %v864_v26 = vmul.f32 %v5050_v50, %v816_v9  ;;  %v904_v22 = vadd.f32 %v5055_v52, %v865_v42  ;;  %v1127_v61 = vld [vmem:[#allocation2 + $0x4a] sm:$0xff]  ;;  %v1129_v4 = vld [vmem:[#allocation2 + $0x62] sm:$0xff] }
 0x19e   : > { %1007 = vst [vmem:[#allocation2 + $0xc1] sm:$0xff] %v920_v12  ;;  %v5173_v24 = vmax.f32 %v889_v13, 0.0  ;;  %3932 = vmatprep.subr.bf16.mxu0 %v4390_v3  ;;  %v5184_v30 = vpack.c.bf16 %v1126_v23, %v1125_v21  ;;  %v902_v32 = vadd.f32 %v5055_v52, %v863_v15  ;;  %v905_v50 = vadd.f32 %v5055_v52, %v866_v25  ;;  %v1177_v53 = vld [vmem:[#allocation2 + $0x78] sm:$0xff]  ;;  %v4402_v3 = vld [vmem:[#allocation8 + $0x1b8] sm:$0xff]   ;;  %v1179_v8 = vld [vmem:[#allocation2 + $0x90] sm:$0xff] }
 0x19f   : > { %1005 = vst [vmem:[#allocation2 + $0xa9] sm:$0xff] %v918_v16  ;;  %v919_v55 = vmax.f32 %v887_v18, 0.0  ;;  %v936_v35 = vmax.f32 %v904_v22, 0.0  ;;  %v903_v36 = vadd.f32 %v5055_v52, %v864_v26  ;;  %v5191_v37 = vpack.c.bf16 %v931_v20, %v930_v0  ;;  %v4397_v52 = vld [vmem:[#allocation8 + $0x1a8] sm:$0xff]   ;;  %v1130_v5 = vld [vmem:[#allocation2 + $0x6a] sm:$0xff]  ;;  %v1186_v15 = vld [vmem:[#allocation2 + $0xe0] sm:$0xff] }
 0x1a0   : > { %1008 = vst [vmem:[#allocation2 + $0xc9] sm:$0xff] %v5173_v24  ;;  %v5181_v29 = vpack.c.bf16 %v5173_v24, %v920_v12  ;;  %v5194_v41 = vpack.c.bf16 %v1176_v28, %v1175_v27  ;;  %v934_v43 = vmax.f32 %v902_v32, 0.0  ;;  %v5196_v45 = vpack.c.bf16 %v933_v19, %v932_v63  ;;  %v1178_v56 = vld [vmem:[#allocation2 + $0x80] sm:$0xff]  ;;  %v1180_v10 = vld [vmem:[#allocation2 + $0x98] sm:$0xff]  ;;  %v1187_v32 = vld [vmem:[#allocation2 + $0xf0] sm:$0xff] }
 0x1a1   : > { %1006 = vst [vmem:[#allocation2 + $0xb1] sm:$0xff] %v919_v55  ;;  %v5186_v31 = vpack.c.bf16 %v919_v55, %v918_v16  ;;  %3933 = vmatpush3.bf16.msra.mxu0 %v4391_v7  ;;  %1023 = vst [vmem:[#allocation2 + $0x181] sm:$0xff] %v936_v35  ;;  %v937_v46 = vmax.f32 %v905_v50, 0.0  ;;  %v935_v47 = vmax.f32 %v903_v36, 0.0  ;;  %v5205_v62 = vpack.c.bf16 %v1178_v56, %v1177_v53  ;;  %v4400_v63 = vld [vmem:[#allocation8 + $0x1b0] sm:$0xff]   ;;  %v1133_v7 = vld [vmem:[#allocation2 + $0x92] sm:$0xff] }
 0x1a2   : > { %3934 = vmatprep.subr.bf16.mxu0 %v4394_v54  ;;  %1021 = vst [vmem:[#allocation2 + $0x169] sm:$0xff] %v934_v43  ;;  %v5213_v11 = vpack.c.bf16 %v1130_v5, %v1129_v4  ;;  %v5216_v12 = vpack.c.bf16 %v1180_v10, %v1179_v8  ;;  %v1131_v16 = vld [vmem:[#allocation2 + $0x7a] sm:$0xff]  ;;  %v1132_v18 = vld [vmem:[#allocation2 + $0x82] sm:$0xff]  ;;  %v3606_v53 = vpop.f32.mrb[16].mxu1 }
 0x1a3   : > { %2091 = vmatmul.mubr.bf16.gmra.mrb[28].mxu1 %v5147_v51  ;;  %1024 = vst [vmem:[#allocation2 + $0x189] sm:$0xff] %v937_v46  ;;  %1022 = vst [vmem:[#allocation2 + $0x171] sm:$0xff] %v935_v47  ;;  %v5201_v58 = vpack.c.bf16 %v935_v47, %v934_v43  ;;  %v5203_v60 = vpack.c.bf16 %v937_v46, %v936_v35  ;;  %v5223_v20 = vpack.c.bf16 %v1132_v18, %v1131_v16  ;;  %v1185_v55 = vld [vmem:[#allocation2 + $0xd8] sm:$0xff]  ;;  %v1189_v36 = vld [vmem:[#allocation2 + $0x108] sm:$0xff]  ;;  %v3607_v56 = vpop.f32.mrb[17].mxu1 }
 0x1a4   : > { %2244 = vmatmul.mubr.bf16.gmra.mrb[24].mxu0 %v5184_v30  ;;  %2098 = vmatprep.mubr.bf16.mxu1 %v5107_v2  ;;  %v1128_v2 = vld [vmem:[#allocation2 + $0x52] sm:$0xff]  ;;  %v5237_v27 = vpack.c.bf16 %v1186_v15, %v1185_v55  ;;  %v1139_v43 = vld [vmem:[#allocation2 + $0xda] sm:$0xff]  ;;  %v1140_v46 = vld [vmem:[#allocation2 + $0xe2] sm:$0xff] }
 0x1a5   : > { %2251 = vmatprep.mubr.bf16.mxu0 %v5194_v41  ;;  %3935 = vmatpush3.bf16.msra.mxu0 %v4395_v33  ;;  %v5207_v0 = vpack.c.bf16 %v1128_v2, %v1127_v61  ;;  %v1183_v21 = vld [vmem:[#allocation2 + $0xc0] sm:$0xff]  ;;  %v1188_v33 = vld [vmem:[#allocation2 + $0xf8] sm:$0xff]  ;;  %v3609_v61 = vpop.f32.mrb[18].mxu1  ;;  %v1192_v5 = vld [vmem:[#allocation2 + $0x128] sm:$0xff] }
 0x1a6   : > { %3936 = vmatprep.subr.bf16.mxu0 %v4396_v40  ;;  %v1181_v13 = vld [vmem:[#allocation2 + $0xa8] sm:$0xff]  ;;  %v5248_v50 = vpack.c.bf16 %v1188_v33, %v1187_v32  ;;  %v1190_v40 = vld [vmem:[#allocation2 + $0x110] sm:$0xff]  ;;  %v3610_v2 = vpop.f32.mrb[19].mxu1  ;;  %v1191_v4 = vld [vmem:[#allocation2 + $0x120] sm:$0xff] }
 0x1a7   : > { %v1184_v23 = vld [vmem:[#allocation2 + $0xc8] sm:$0xff]  ;;  %v5253_v47 = vpack.c.bf16 %v1190_v40, %v1189_v36  ;;  %v5268_v10 = vpack.c.bf16 %v1192_v5, %v1191_v4  ;;  %v1144_v18 = vld [vmem:[#allocation2 + $0x112] sm:$0xff]  ;;  %v1147_v32 = vld [vmem:[#allocation2 + $0x13a] sm:$0xff] }
 0x1a8   : > { %v1182_v9 = vld [vmem:[#allocation2 + $0xb0] sm:$0xff]  ;;  %v5232_v54 = vpack.c.bf16 %v1184_v23, %v1183_v21  ;;  %v1137_v22 = vld [vmem:[#allocation2 + $0xc2] sm:$0xff]  ;;  %v1196_v15 = vld [vmem:[#allocation2 + $0x158] sm:$0xff] }
 0x1a9   : > { %3937 = vmatpush3.bf16.msra.mxu0 %v4397_v52  ;;  %v5221_v19 = vpack.c.bf16 %v1182_v9, %v1181_v13  ;;  %v1135_v25 = vld [vmem:[#allocation2 + $0xaa] sm:$0xff]  ;;  %v1136_v26 = vld [vmem:[#allocation2 + $0xb2] sm:$0xff]  ;;  %v5255_v52 = vpack.c.bf16 %v1140_v46, %v1139_v43  ;;  %v1194_v9 = vld [vmem:[#allocation2 + $0x140] sm:$0xff] }
 0x1aa   : > { %3938 = vmatprep.subr.bf16.mxu0 %v4399_v59  ;;  %v5239_v28 = vpack.c.bf16 %v1136_v26, %v1135_v25  ;;  %v5261_v59 = vadd.f32 %v3607_v56, %v3606_v53  ;;  %v1193_v13 = vld [vmem:[#allocation2 + $0x138] sm:$0xff]  ;;  %v1143_v16 = vld [vmem:[#allocation2 + $0x10a] sm:$0xff]  ;;  %v1145_v21 = vld [vmem:[#allocation2 + $0x122] sm:$0xff] }
 0x1ab   : > { %2099 = vmatmul.mubr.bf16.gmra.mrb[32].mxu1 %v5194_v41  ;;  %v1146_v23 = vld [vmem:[#allocation2 + $0x12a] sm:$0xff]  ;;  %v1148_v33 = vld [vmem:[#allocation2 + $0x142] sm:$0xff]  ;;  %v1149_v43 = vld [vmem:[#allocation2 + $0x152] sm:$0xff] }
 0x1ac   : > { %2252 = vmatmul.mubr.bf16.gmra.mrb[28].mxu0 %v5207_v0  ;;  %2106 = vmatprep.mubr.bf16.mxu1 %v5151_v57  ;;  %v1195_v55 = vld [vmem:[#allocation2 + $0x150] sm:$0xff]  ;;  %v5281_v25 = vpack.c.bf16 %v1146_v23, %v1145_v21  ;;  %v5291_v40 = vpack.c.bf16 %v1148_v33, %v1147_v32  ;;  %v1150_v46 = vld [vmem:[#allocation2 + $0x15a] sm:$0xff]  ;;  %v1200_v56 = vld [vmem:[#allocation2 + $0x188] sm:$0xff] }
 0x1ad   : > { %2259 = vmatprep.mubr.bf16.mxu0 %v5205_v62  ;;  %3939 = vmatpush3.bf16.msra.mxu0 %v4400_v63  ;;  %v1141_v63 = vld [vmem:[#allocation2 + $0xf2] sm:$0xff]  ;;  %v5284_v26 = vpack.c.bf16 %v1196_v15, %v1195_v55  ;;  %v1199_v53 = vld [vmem:[#allocation2 + $0x180] sm:$0xff]  ;;  %v1364_v55 = vld [vmem:[#allocation2 + $0x49] sm:$0xff] }
 0x1ae   : > { %3940 = vmatprep.subr.bf16.mxu0 %v4401_v1  ;;  %v1142_v1 = vld [vmem:[#allocation2 + $0xfa] sm:$0xff]  ;;  %v1152_v4 = vld [vmem:[#allocation2 + $0x172] sm:$0xff] }
 0x1af   : > { %v5265_v8 = vpack.c.bf16 %v1142_v1, %v1141_v63  ;;  %v1218_v63 = vld [vmem:[#allocation2 + $0x21] sm:$0xff]  ;;  %v1151_v1 = vld [vmem:[#allocation2 + $0x16a] sm:$0xff]  ;;  %v1217_v5 = vld [vmem:[#allocation2 + $0x19] sm:$0xff] }
 0x1b0   : > { %v4403_v21 = vld [vmem:[#allocation8 + $0x208] sm:$0xff]   ;;  %v1366_v32 = vld [vmem:[#allocation2 + $0x61] sm:$0xff] }
 0x1b1   : > { %3941 = vmatpush3.bf16.msra.mxu0 %v4402_v3  ;;  %v5263_v3 = vadd.f32 %v3610_v2, %v3609_v61  ;;  %v5297_v61 = vpack.c.bf16 %v1150_v46, %v1149_v43  ;;  %v5300_v2 = vpack.c.bf16 %v1200_v56, %v1199_v53  ;;  %v1365_v15 = vld [vmem:[#allocation2 + $0x51] sm:$0xff]  ;;  %v1225_v46 = vld [vmem:[#allocation2 + $0x79] sm:$0xff] }
 0x1b2   : > { %v4407_v33 = vld [vmem:[#allocation8 + $0x228] sm:$0xff]  }
 0x1b3   : > { %2107 = vmatmul.mubr.bf16.gmra.mrb[36].mxu1 %v5205_v62  ;;  %v1371_v53 = vld [vmem:[#allocation2 + $0x99] sm:$0xff] }
 0x1b4   : > { %2260 = vmatmul.mubr.bf16.gmra.mrb[32].mxu0 %v5213_v11  ;;  %2114 = vmatprep.mubr.bf16.mxu1 %v5142_v48  ;;  %v1134_v48 = vld [vmem:[#allocation2 + $0x9a] sm:$0xff] }
 0x1b5   : > { %2267 = vmatprep.mubr.bf16.mxu0 %v5216_v12  ;;  %v5229_v42 = vpack.c.bf16 %v1134_v48, %v1133_v7  ;;  %v5273_v7 = vpack.c.bf16 %v1194_v9, %v1193_v13  ;;  %v5275_v48 = vpack.c.bf16 %v1144_v18, %v1143_v16  ;;  %v1363_v13 = vld [vmem:[#allocation2 + $0x39] sm:$0xff]  ;;  %v1249_v9 = vpack.c.bf16 %v1218_v63, %v1217_v5  ;;  %v1362_v18 = vld [vmem:[#allocation2 + $0x31] sm:$0xff]  ;;  %v1295_v5 = vld [vmem:[#allocation2 + $0x182] sm:$0xff] }
 0x1b6   : > { %v5305_v16 = vpack.c.bf16 %v1152_v4, %v1151_v1  ;;  %v1394_v23 = vpack.c.bf16 %v1363_v13, %v1362_v18  ;;  %v1296_v13 = vld [vmem:[#allocation2 + $0x18a] sm:$0xff] }
 0x1bb   : > { %2115 = vmatmul.mubr.bf16.gmra.mrb[40].mxu1 %v5216_v12 }
 0x1bc   : > { %2268 = vmatmul.mubr.bf16.gmra.mrb[36].mxu0 %v5223_v20  ;;  %2122 = vmatprep.mubr.bf16.mxu1 %v5186_v31 }
 0x1bd   : > { %2275 = vmatprep.mubr.bf16.mxu0 %v5221_v19 }
 0x1c3   : > { %2123 = vmatmul.mubr.bf16.gmra.mrb[44].mxu1 %v5221_v19 }
 0x1c4   : > { %2276 = vmatmul.mubr.bf16.gmra.mrb[40].mxu0 %v5229_v42  ;;  %2130 = vmatprep.mubr.bf16.mxu1 %v5181_v29  ;;  %v1138_v29 = vld [vmem:[#allocation2 + $0xca] sm:$0xff] }
 0x1c5   : > { %2283 = vmatprep.mubr.bf16.mxu0 %v5232_v54  ;;  %v5245_v35 = vpack.c.bf16 %v1138_v29, %v1137_v22  ;;  %v1197_v22 = vld [vmem:[#allocation2 + $0x168] sm:$0xff]  ;;  %v1198_v29 = vld [vmem:[#allocation2 + $0x170] sm:$0xff] }
 0x1c6   : > { %v5289_v36 = vpack.c.bf16 %v1198_v29, %v1197_v22  ;;  %v4405_v22 = vld [vmem:[#allocation8 + $0x218] sm:$0xff]   ;;  %v1395_v29 = vpack.c.bf16 %v1365_v15, %v1364_v55 }
 0x1cb   : > { %2131 = vmatmul.mubr.bf16.gmra.mrb[48].mxu1 %v5232_v54 }
 0x1cc   : > { %2284 = vmatmul.mubr.bf16.gmra.mrb[44].mxu0 %v5239_v28  ;;  %2138 = vmatprep.mubr.bf16.mxu1 %v5088_v39 }
 0x1cd   : > { %2291 = vmatprep.mubr.bf16.mxu0 %v5237_v27 }
 0x1d3   : > { %2139 = vmatmul.mubr.bf16.gmra.mrb[52].mxu1 %v5237_v27 }
 0x1d4   : > { %2292 = vmatmul.mubr.bf16.gmra.mrb[48].mxu0 %v5245_v35  ;;  %2146 = vmatprep.mubr.bf16.mxu1 %v5083_v34 }
 0x1d5   : > { %2299 = vmatprep.mubr.bf16.mxu0 %v5248_v50 }
 0x1db   : > { %2147 = vmatmul.mubr.bf16.gmra.mrb[56].mxu1 %v5248_v50 }
 0x1dc   : > { %2300 = vmatmul.mubr.bf16.gmra.mrb[52].mxu0 %v5255_v52  ;;  %2154 = vmatprep.mubr.bf16.mxu1 %v5139_v44 }
 0x1dd   : > { %2307 = vmatprep.mubr.bf16.mxu0 %v5253_v47 }
 0x1e3   : > { %2155 = vmatmul.mubr.bf16.gmra.mrb[60].mxu1 %v5253_v47 }
 0x1e4   : > { %2308 = vmatmul.mubr.bf16.gmra.mrb[56].mxu0 %v5265_v8  ;;  %2162 = vmatprep.mubr.bf16.mxu1 %v5169_v6 }
 0x1e5   : > { %2315 = vmatprep.mubr.bf16.mxu0 %v5268_v10 }
 0x1eb   : > { %2163 = vmatmul.mubr.bf16.gmra.mrb[64].mxu1 %v5268_v10 }
 0x1ec   : > { %2316 = vmatmul.mubr.bf16.gmra.mrb[60].mxu0 %v5275_v48  ;;  %2170 = vmatprep.mubr.bf16.mxu1 %v5191_v37 }
 0x1ed   : > { %2323 = vmatprep.mubr.bf16.mxu0 %v5273_v7 }
 0x1f3   : > { %2171 = vmatmul.mubr.bf16.gmra.mrb[68].mxu1 %v5273_v7 }
 0x1f4   : > { %2324 = vmatmul.mubr.bf16.gmra.mrb[64].mxu0 %v5281_v25  ;;  %2178 = vmatprep.mubr.bf16.mxu1 %v5196_v45 }
 0x1f5   : > { %2331 = vmatprep.mubr.bf16.mxu0 %v5284_v26 }
 0x1fb   : > { %2179 = vmatmul.mubr.bf16.gmra.mrb[72].mxu1 %v5284_v26 }
 0x1fc   : > { %2332 = vmatmul.mubr.bf16.gmra.mrb[68].mxu0 %v5291_v40  ;;  %2186 = vmatprep.mubr.bf16.mxu1 %v5201_v58 }
 0x1fd   : > { %2339 = vmatprep.mubr.bf16.mxu0 %v5289_v36 }
 0x203   : > { %2187 = vmatmul.mubr.bf16.gmra.mrb[76].mxu1 %v5289_v36 }
 0x204   : > { %2340 = vmatmul.mubr.bf16.gmra.mrb[72].mxu0 %v5297_v61  ;;  %2388 = vmatprep.mubr.bf16.mxu1 %v5144_v49  ;;  %v4404_v49 = vld [vmem:[#allocation8 + $0x210] sm:$0xff]  }
 0x205   : > { %2347 = vmatprep.mubr.bf16.mxu0 %v5300_v2 }
 0x20b   : > { %2389 = vmatmul.mubr.bf16.vlgmr.msra.gmra.mrb[80].mxu1 %v1249_v9 }
 0x20c   : > { %2348 = vmatmul.mubr.bf16.gmra.mrb[76].mxu0 %v5305_v16  ;;  %4135 = vmatpush3.bf16.msra.mxu1 %v5071_v14  ;;  %v4406_v14 = vld [vmem:[#allocation8 + $0x220] sm:$0xff]  }
 0x20d   : > { %2396 = vmatprep.mubr.bf16.mxu1 %v5184_v30  ;;  %2549 = vmatprep.mubr.bf16.mxu0 %v1394_v23  ;;  %v1367_v30 = vld [vmem:[#allocation2 + $0x69] sm:$0xff] }
 0x20e   : > { %4136 = vmatprep.subr.bf16.mxu1 %v4403_v21  ;;  %v1396_v43 = vpack.c.bf16 %v1367_v30, %v1366_v32  ;;  %v1392_v30 = vld [vmem:[#allocation2 + $0x199] sm:$0xff] }
 0x210   : > { %4137 = vmatpush3.bf16.msra.mxu1 %v4403_v21 }
 0x211   : > { %4138 = vmatprep.subr.bf16.mxu1 %v4404_v49 }
 0x213   : > { %2397 = vmatmul.mubr.bf16.gmra.mrb[84].mxu1 %v1394_v23 }
 0x214   : > { %2550 = vmatmul.mubr.bf16.vlgmr.msra.gmra.mrb[80].mxu0 %v5117_v17  ;;  %2404 = vmatprep.mubr.bf16.mxu1 %v5207_v0  ;;  %v4408_v17 = vld [vmem:[#allocation8 + $0x230] sm:$0xff]   ;;  %v4409_v0 = vld [vmem:[#allocation8 + $0x238] sm:$0xff]  }
 0x215   : > { %2557 = vmatprep.mubr.bf16.mxu0 %v1395_v29  ;;  %4139 = vmatpush3.bf16.msra.mxu1 %v4404_v49 }
 0x216   : > { %4140 = vmatprep.subr.bf16.mxu1 %v4405_v22 }
 0x219   : > { %4141 = vmatpush3.bf16.msra.mxu1 %v4405_v22 }
 0x21a   : > { %4142 = vmatprep.subr.bf16.mxu1 %v4406_v14 }
 0x21b   : > { %2405 = vmatmul.mubr.bf16.gmra.mrb[88].mxu1 %v1395_v29  ;;  %v4411_v29 = vld [vmem:[#allocation9 + $0x8] sm:$0xff]  }
 0x21c   : > { %2558 = vmatmul.mubr.bf16.gmra.mrb[84].mxu0 %v5147_v51  ;;  %2412 = vmatprep.mubr.bf16.mxu1 %v5213_v11  ;;  %v1370_v51 = vld [vmem:[#allocation2 + $0x91] sm:$0xff]  ;;  %v1253_v11 = vpack.c.bf16 %v5133_v38, %v1225_v46  ;;  %v1411_v46 = vld [vmem:[#allocation2 + $0x3a] sm:$0xff] }
 0x21d   : > { %2565 = vmatprep.mubr.bf16.mxu0 %v1396_v43  ;;  %4143 = vmatpush3.bf16.msra.mxu1 %v4406_v14  ;;  %v1398_v56 = vpack.c.bf16 %v1371_v53, %v1370_v51 }
 0x21e   : > { %4144 = vmatprep.subr.bf16.mxu1 %v4407_v33 }
 0x221   : > { %4145 = vmatpush3.bf16.msra.mxu1 %v4407_v33  ;;  %v1393_v33 = vld [vmem:[#allocation2 + $0x1a1] sm:$0xff] }
 0x222   : > { %4146 = vmatprep.subr.bf16.mxu1 %v4408_v17 }
 0x223   : > { %2413 = vmatmul.mubr.bf16.gmra.mrb[92].mxu1 %v1396_v43 }
 0x224   : > { %2566 = vmatmul.mubr.bf16.gmra.mrb[88].mxu0 %v5194_v41  ;;  %2420 = vmatprep.mubr.bf16.mxu1 %v5223_v20 }
 0x225   : > { %2573 = vmatprep.mubr.bf16.mxu0 %v5151_v57  ;;  %4147 = vmatpush3.bf16.msra.mxu1 %v4408_v17  ;;  %v1374_v57 = vld [vmem:[#allocation2 + $0xc1] sm:$0xff] }
 0x226   : > { %4148 = vmatprep.subr.bf16.mxu1 %v4409_v0  ;;  %v1400_v38 = vpack.c.bf16 %v5173_v24, %v1374_v57  ;;  %v1409_v57 = vpack.c.bf16 %v1393_v33, %v1392_v30 }
 0x229   : > { %4149 = vmatpush3.bf16.msra.mxu1 %v4409_v0  ;;  %v1410_v0 = vld [vmem:[#allocation2 + $0x32] sm:$0xff] }
 0x22b   : > { %2421 = vmatmul.mubr.bf16.gmra.mrb[96].mxu1 %v1253_v11 }
 0x22c   : > { %2574 = vmatmul.mubr.bf16.gmra.mrb[92].mxu0 %v5205_v62  ;;  %2428 = vmatprep.mubr.bf16.mxu1 %v5229_v42 }
 0x22d   : > { %2581 = vmatprep.mubr.bf16.mxu0 %v1398_v56 }
 0x233   : > { %2429 = vmatmul.mubr.bf16.gmra.mrb[100].mxu1 %v1398_v56 }
 0x234   : > { %2582 = vmatmul.mubr.bf16.gmra.mrb[96].mxu0 %v5216_v12  ;;  %2436 = vmatprep.mubr.bf16.mxu1 %v5239_v28 }
 0x235   : > { %2589 = vmatprep.mubr.bf16.mxu0 %v5186_v31 }
 0x23b   : > { %2437 = vmatmul.mubr.bf16.gmra.mrb[104].mxu1 %v5186_v31 }
 0x23c   : > { %2590 = vmatmul.mubr.bf16.gmra.mrb[100].mxu0 %v5221_v19  ;;  %2444 = vmatprep.mubr.bf16.mxu1 %v5245_v35 }
 0x23d   : > { %2597 = vmatprep.mubr.bf16.mxu0 %v1400_v38 }
 0x243   : > { %2445 = vmatmul.mubr.bf16.gmra.mrb[108].mxu1 %v1400_v38 }
 0x244   : > { %2598 = vmatmul.mubr.bf16.gmra.mrb[104].mxu0 %v5232_v54  ;;  %2452 = vmatprep.mubr.bf16.mxu1 %v5255_v52 }
 0x245   : > { %2605 = vmatprep.mubr.bf16.mxu0 %v5088_v39 }
 0x24b   : > { %2453 = vmatmul.mubr.bf16.gmra.mrb[112].mxu1 %v5088_v39 }
 0x24c   : > { %2606 = vmatmul.mubr.bf16.gmra.mrb[108].mxu0 %v5237_v27  ;;  %2460 = vmatprep.mubr.bf16.mxu1 %v5265_v8  ;;  %v4410_v27 = vld [vmem:[#allocation9] sm:$0xff]  }
 0x24d   : > { %2613 = vmatprep.mubr.bf16.mxu0 %v5083_v34  ;;  %4182 = vmatprep.subr.bf16.mxu0 %v4410_v27 }
 0x24e   : > { %4183 = vmatpush3.bf16.msra.mxu0 %v4410_v27 }
 0x24f   : > { %4184 = vmatprep.subr.bf16.mxu0 %v4411_v29 }
 0x252   : > { %4185 = vmatpush3.bf16.msra.mxu0 %v4411_v29 }
 0x253   : > { %2461 = vmatmul.mubr.bf16.gmra.mrb[116].mxu1 %v5083_v34 }
 0x254   : > { %2614 = vmatmul.mubr.bf16.gmra.mrb[112].mxu0 %v5248_v50  ;;  %2468 = vmatprep.mubr.bf16.mxu1 %v5275_v48 }
 0x255   : > { %2621 = vmatprep.mubr.bf16.mxu0 %v5139_v44 }
 0x25b   : > { %2469 = vmatmul.mubr.bf16.gmra.mrb[120].mxu1 %v5139_v44 }
 0x25c   : > { %2622 = vmatmul.mubr.bf16.gmra.mrb[116].mxu0 %v5253_v47  ;;  %2476 = vmatprep.mubr.bf16.mxu1 %v5281_v25 }
 0x25d   : > { %2629 = vmatprep.mubr.bf16.mxu0 %v5169_v6 }
 0x263   : > { %2477 = vmatmul.mubr.bf16.gmra.mrb[124].mxu1 %v5169_v6 }
 0x264   : > { %2630 = vmatmul.mubr.bf16.gmra.mrb[120].mxu0 %v5268_v10  ;;  %2484 = vmatprep.mubr.bf16.mxu1 %v5291_v40 }
 0x265   : > { %2637 = vmatprep.mubr.bf16.mxu0 %v5191_v37 }
 0x266   : > { %v3612_v34 = vpop.f32.mrb[20].mxu1 }
 0x267   : > { %v3718_v39 = vpop.f32.mrb[16].mxu0  ;;  %v3613_v24 = vpop.f32.mrb[21].mxu1 }
 0x268   : > { %v3614_v31 = vadd.f32 %v3613_v24, %v3612_v34  ;;  %v3719_v41 = vpop.f32.mrb[17].mxu0  ;;  %v3615_v44 = vpop.f32.mrb[22].mxu1 }
 0x269   : > { %v3720_v62 = vadd.f32 %v3719_v41, %v3718_v39  ;;  %v3721_v12 = vpop.f32.mrb[18].mxu0  ;;  %v3616_v19 = vpop.f32.mrb[23].mxu1  ;;  %v1442_v39 = vpack.c.bf16 %v1411_v46, %v1410_v0 }
 0x26a   : > { %v3617_v20 = vadd.f32 %v3616_v19, %v3615_v44  ;;  %v3722_v42 = vpop.f32.mrb[19].mxu0 }
 0x26b   : > { %v5347_v54 = vadd.f32 %v3720_v62, %v5261_v59  ;;  %v3723_v6 = vadd.f32 %v3722_v42, %v3721_v12  ;;  %2485 = vmatmul.mubr.bf16.gmra.mrb[128].mxu1 %v5191_v37  ;;  %v1412_v62 = vld [vmem:[#allocation2 + $0x4a] sm:$0xff]  ;;  %v1413_v12 = vld [vmem:[#allocation2 + $0x52] sm:$0xff]  ;;  %v1414_v42 = vld [vmem:[#allocation2 + $0x62] sm:$0xff] }
 0x26c   : > { %2638 = vmatmul.mubr.bf16.gmra.mrb[124].mxu0 %v5273_v7  ;;  %2492 = vmatprep.mubr.bf16.mxu1 %v5297_v61 }
 0x26d   : > { %v5353_v28 = vadd.f32 %v3723_v6, %v5263_v3  ;;  %2645 = vmatprep.mubr.bf16.mxu0 %v5196_v45  ;;  %v1415_v6 = vld [vmem:[#allocation2 + $0x6a] sm:$0xff] }
 0x26e   : > { %v3618_v35 = vpop.f32.mrb[24].mxu1 }
 0x26f   : > { %v3724_v50 = vpop.f32.mrb[20].mxu0  ;;  %v3619_v47 = vpop.f32.mrb[25].mxu1 }
 0x270   : > { %v3620_v52 = vadd.f32 %v3619_v47, %v3618_v35  ;;  %v3725_v59 = vpop.f32.mrb[21].mxu0  ;;  %v3621_v8 = vpop.f32.mrb[26].mxu1  ;;  %v4418_v47 = vld [vmem:[#allocation2] sm:$0xff] }
 0x271   : > { %v3726_v10 = vadd.f32 %v3725_v59, %v3724_v50  ;;  %v3727_v37 = vpop.f32.mrb[22].mxu0  ;;  %v3622_v48 = vpop.f32.mrb[27].mxu1 }
 0x272   : > { %v3623_v7 = vadd.f32 %v3622_v48, %v3621_v8  ;;  %v3728_v25 = vpop.f32.mrb[23].mxu0  ;;  %v1444_v48 = vpack.c.bf16 %v1415_v6, %v1414_v42 }
 0x273   : > { %v5356_v40 = vadd.f32 %v3726_v10, %v3614_v31  ;;  %v3729_v61 = vadd.f32 %v3728_v25, %v3727_v37  ;;  %2493 = vmatmul.mubr.bf16.gmra.mrb[132].mxu1 %v5196_v45 }
 0x274   : > { %2646 = vmatmul.mubr.bf16.gmra.mrb[128].mxu0 %v5284_v26  ;;  %2500 = vmatprep.mubr.bf16.mxu1 %v5305_v16  ;;  %v5364_v26 = vpack.c.bf16 %v1296_v13, %v1295_v5  ;;  %v1417_v5 = vld [vmem:[#allocation2 + $0x82] sm:$0xff] }
 0x275   : > { %v5361_v3 = vadd.f32 %v3729_v61, %v3617_v20  ;;  %2653 = vmatprep.mubr.bf16.mxu0 %v5201_v58  ;;  %v4412_v61 = vld [vmem:[#allocation9 + $0x10] sm:$0xff]  }
 0x276   : > { %v3624_v63 = vpop.f32.mrb[28].mxu1  ;;  %4186 = vmatprep.subr.bf16.mxu0 %v4412_v61 }
 0x277   : > { %v3730_v1 = vpop.f32.mrb[24].mxu0  ;;  %v3625_v4 = vpop.f32.mrb[29].mxu1  ;;  %4187 = vmatpush3.bf16.msra.mxu0 %v4412_v61 }
 0x278   : > { %v3626_v9 = vadd.f32 %v3625_v4, %v3624_v63  ;;  %v3731_v18 = vpop.f32.mrb[25].mxu0  ;;  %v3627_v21 = vpop.f32.mrb[30].mxu1  ;;  %v1416_v4 = vld [vmem:[#allocation2 + $0x7a] sm:$0xff] }
 0x279   : > { %v3732_v23 = vadd.f32 %v3731_v18, %v3730_v1  ;;  %v3733_v49 = vpop.f32.mrb[26].mxu0  ;;  %v3628_v55 = vpop.f32.mrb[31].mxu1  ;;  %v1418_v18 = vld [vmem:[#allocation2 + $0x92] sm:$0xff]  ;;  %v1445_v29 = vpack.c.bf16 %v1417_v5, %v1416_v4 }
 0x27a   : > { %v3629_v45 = vadd.f32 %v3628_v55, %v3627_v21  ;;  %v3734_v15 = vpop.f32.mrb[27].mxu0  ;;  %v1419_v21 = vld [vmem:[#allocation2 + $0x9a] sm:$0xff] }
 0x27b   : > { %v5366_v16 = vadd.f32 %v3732_v23, %v3620_v52  ;;  %v3735_v22 = vadd.f32 %v3734_v15, %v3733_v49  ;;  %2501 = vmatmul.mubr.bf16.gmra.mrb[136].mxu1 %v5201_v58  ;;  %v1361_v52 = vpack.c.bf16 %v4418_v47, %v4418_v47  ;;  %v1446_v33 = vpack.c.bf16 %v1419_v21, %v1418_v18  ;;  %v1424_v47 = vld [vmem:[#allocation2 + $0xda] sm:$0xff] }
 0x27c   : > { %2654 = vmatmul.mubr.bf16.gmra.mrb[132].mxu0 %v5289_v36  ;;  %2508 = vmatprep.mubr.bf16.mxu1 %v5364_v26 }
 0x27d   : > { %v5371_v14 = vadd.f32 %v3735_v22, %v3623_v7  ;;  %2661 = vmatprep.mubr.bf16.mxu0 %v5203_v60 }
 0x27e   : > { %v3630_v32 = vpop.f32.mrb[32].mxu1 }
 0x27f   : > { %v3736_v43 = vpop.f32.mrb[28].mxu0  ;;  %v3631_v17 = vpop.f32.mrb[33].mxu1 }
 0x280   : > { %v3632_v51 = vadd.f32 %v3631_v17, %v3630_v32  ;;  %v3737_v58 = vpop.f32.mrb[29].mxu0  ;;  %v3633_v53 = vpop.f32.mrb[34].mxu1 }
 0x281   : > { %v3738_v36 = vadd.f32 %v3737_v58, %v3736_v43  ;;  %v3739_v11 = vpop.f32.mrb[30].mxu0  ;;  %v3634_v56 = vpop.f32.mrb[35].mxu1  ;;  %v1421_v58 = vld [vmem:[#allocation2 + $0xb2] sm:$0xff] }
 0x282   : > { %v3635_v38 = vadd.f32 %v3634_v56, %v3633_v53  ;;  %v3740_v34 = vpop.f32.mrb[31].mxu0  ;;  %v1423_v56 = vld [vmem:[#allocation2 + $0xca] sm:$0xff] }
 0x283   : > { %v5374_v24 = vadd.f32 %v3738_v36, %v3626_v9  ;;  %v3741_v31 = vadd.f32 %v3740_v34, %v3739_v11  ;;  %2509 = vmatmul.mubr.bf16.gmra.mrb[140].mxu1 %v5203_v60  ;;  %v1422_v11 = vld [vmem:[#allocation2 + $0xc2] sm:$0xff] }
 0x284   : > { %2662 = vmatmul.mubr.bf16.gmra.mrb[136].mxu0 %v5300_v2  ;;  %4150 = vmatprep.mubr.bf16.mxu1 %v1442_v39  ;;  %v1443_v2 = vpack.c.bf16 %v1413_v12, %v1412_v62 }
 0x285   : > { %v5378_v41 = vadd.f32 %v3741_v31, %v3629_v45  ;;  %2669 = vmatprep.mubr.bf16.mxu0 %v1409_v57 }
 0x286   : > { %v3636_v44 = vpop.f32.mrb[36].mxu1 }
 0x287   : > { %v3742_v19 = vpop.f32.mrb[32].mxu0  ;;  %v3637_v20 = vpop.f32.mrb[37].mxu1 }
 0x288   : > { %v3638_v27 = vadd.f32 %v3637_v20, %v3636_v44  ;;  %v3743_v35 = vpop.f32.mrb[33].mxu0  ;;  %v3639_v50 = vpop.f32.mrb[38].mxu1  ;;  %v1448_v20 = vpack.c.bf16 %v1423_v56, %v1422_v11 }
 0x289   : > { %v3744_v59 = vadd.f32 %v3743_v35, %v3742_v19  ;;  %v3745_v60 = vpop.f32.mrb[34].mxu0  ;;  %v3640_v8 = vpop.f32.mrb[39].mxu1 }
 0x28a   : > { %v3641_v10 = vadd.f32 %v3640_v8, %v3639_v50  ;;  %v3746_v37 = vpop.f32.mrb[35].mxu0  ;;  %v1426_v8 = vld [vmem:[#allocation2 + $0xf2] sm:$0xff] }
 0x28b   : > { %v5380_v7 = vadd.f32 %v3744_v59, %v3632_v51  ;;  %v3747_v25 = vadd.f32 %v3746_v37, %v3745_v60  ;;  %4151 = vmatmul.mubr.bf16.vlgmr.msra.gmra.mrb[144].mxu1 %v1443_v2  ;;  %v1420_v51 = vld [vmem:[#allocation2 + $0xaa] sm:$0xff]  ;;  %v1427_v2 = vld [vmem:[#allocation2 + $0xfa] sm:$0xff] }
 0x28c   : > { %2670 = vmatmul.mubr.bf16.gmra.mrb[140].mxu0 %v1361_v52  ;;  %4154 = vmatprep.mubr.bf16.mxu1 %v1444_v48  ;;  %v1447_v62 = vpack.c.bf16 %v1421_v58, %v1420_v51  ;;  %v1425_v52 = vld [vmem:[#allocation2 + $0xe2] sm:$0xff] }
 0x28d   : > { %v5382_v63 = vadd.f32 %v3747_v25, %v3635_v38  ;;  %v1449_v4 = vpack.c.bf16 %v1425_v52, %v1424_v47 }
 0x28e   : > { %v3642_v1 = vpop.f32.mrb[40].mxu1 }
 0x28f   : > { %v3748_v13 = vpop.f32.mrb[36].mxu0  ;;  %v3643_v9 = vpop.f32.mrb[41].mxu1 }
 0x290   : > { %v3644_v23 = vadd.f32 %v3643_v9, %v3642_v1  ;;  %v3749_v49 = vpop.f32.mrb[37].mxu0  ;;  %v3645_v55 = vpop.f32.mrb[42].mxu1  ;;  %v1450_v9 = vpack.c.bf16 %v1427_v2, %v1426_v8 }
 0x291   : > { %v3750_v45 = vadd.f32 %v3749_v49, %v3748_v13  ;;  %v3751_v15 = vpop.f32.mrb[38].mxu0  ;;  %v3646_v22 = vpop.f32.mrb[43].mxu1 }
 0x292   : > { %v3647_v32 = vadd.f32 %v3646_v22, %v3645_v55  ;;  %v3752_v30 = vpop.f32.mrb[39].mxu0  ;;  %v1428_v55 = vld [vmem:[#allocation2 + $0x10a] sm:$0xff] }
 0x293   : > { %v5384_v43 = vadd.f32 %v3750_v45, %v3638_v27  ;;  %v3753_v17 = vadd.f32 %v3752_v30, %v3751_v15  ;;  %4155 = vmatmul.mubr.bf16.gmra.mrb[148].mxu1 %v1445_v29  ;;  %v4413_v27 = vld [vmem:[#allocation9 + $0x18] sm:$0xff]   ;;  %v1429_v45 = vld [vmem:[#allocation2 + $0x112] sm:$0xff] }
 0x294   : > { %4158 = vmatprep.mubr.bf16.mxu1 %v1446_v33  ;;  %4188 = vmatprep.subr.bf16.mxu0 %v4413_v27  ;;  %v1430_v29 = vld [vmem:[#allocation2 + $0x122] sm:$0xff] }
 0x295   : > { %v5386_v0 = vadd.f32 %v3753_v17, %v3641_v10  ;;  %4189 = vmatpush3.bf16.msra.mxu0 %v4413_v27 }
 0x296   : > { %v3648_v46 = vpop.f32.mrb[44].mxu1 }
 0x297   : > { %v3754_v53 = vpop.f32.mrb[40].mxu0  ;;  %v3649_v36 = vpop.f32.mrb[45].mxu1 }
 0x298   : > { %v3650_v57 = vadd.f32 %v3649_v36, %v3648_v46  ;;  %v3755_v38 = vpop.f32.mrb[41].mxu0  ;;  %v3651_v34 = vpop.f32.mrb[46].mxu1 }
 0x299   : > { %v3756_v39 = vadd.f32 %v3755_v38, %v3754_v53  ;;  %v3757_v31 = vpop.f32.mrb[42].mxu0  ;;  %v3652_v44 = vpop.f32.mrb[47].mxu1  ;;  %v1451_v53 = vpack.c.bf16 %v1429_v45, %v1428_v55 }
 0x29a   : > { %v3653_v12 = vadd.f32 %v3652_v44, %v3651_v34  ;;  %v3758_v19 = vpop.f32.mrb[43].mxu0  ;;  %v4414_v34 = vld [vmem:[#allocation9 + $0x20] sm:$0xff]   ;;  %v1432_v44 = vld [vmem:[#allocation2 + $0x13a] sm:$0xff] }
 0x29b   : > { %v5388_v42 = vadd.f32 %v3756_v39, %v3644_v23  ;;  %v3759_v6 = vadd.f32 %v3758_v19, %v3757_v31  ;;  %4159 = vmatmul.mubr.bf16.gmra.mrb[152].mxu1 %v1447_v62  ;;  %v1433_v62 = vld [vmem:[#allocation2 + $0x142] sm:$0xff]  ;;  %4190 = vmatprep.subr.bf16.mxu0 %v4414_v34 }
 0x29c   : > { %4162 = vmatprep.mubr.bf16.mxu1 %v1448_v20  ;;  %v1434_v20 = vld [vmem:[#allocation2 + $0x152] sm:$0xff]  ;;  %4191 = vmatpush3.bf16.msra.mxu0 %v4414_v34  ;;  %v1453_v8 = vpack.c.bf16 %v1433_v62, %v1432_v44 }
 0x29d   : > { %v5390_v35 = vadd.f32 %v3759_v6, %v3647_v32  ;;  %v1431_v32 = vld [vmem:[#allocation2 + $0x12a] sm:$0xff]  ;;  %v1435_v6 = vld [vmem:[#allocation2 + $0x15a] sm:$0xff] }
 0x29e   : > { %v3654_v50 = vpop.f32.mrb[48].mxu1  ;;  %v1452_v56 = vpack.c.bf16 %v1431_v32, %v1430_v29 }
 0x29f   : > { %v3760_v59 = vpop.f32.mrb[44].mxu0  ;;  %v3655_v60 = vpop.f32.mrb[49].mxu1 }
 0x2a0   : > { %v3656_v10 = vadd.f32 %v3655_v60, %v3654_v50  ;;  %v3761_v37 = vpop.f32.mrb[45].mxu0  ;;  %v3657_v48 = vpop.f32.mrb[50].mxu1 }
 0x2a1   : > { %v3762_v25 = vadd.f32 %v3761_v37, %v3760_v59  ;;  %v3763_v61 = vpop.f32.mrb[46].mxu0  ;;  %v3658_v1 = vpop.f32.mrb[51].mxu1  ;;  %v1454_v37 = vpack.c.bf16 %v1435_v6, %v1434_v20 }
 0x2a2   : > { %v3659_v5 = vadd.f32 %v3658_v1, %v3657_v48  ;;  %v3764_v13 = vpop.f32.mrb[47].mxu0 }
 0x2a3   : > { %v5392_v18 = vadd.f32 %v3762_v25, %v3650_v57  ;;  %v3765_v21 = vadd.f32 %v3764_v13, %v3763_v61  ;;  %4163 = vmatmul.mubr.bf16.gmra.mrb[156].mxu1 %v1449_v4  ;;  %v1436_v4 = vld [vmem:[#allocation2 + $0x16a] sm:$0xff] }
 0x2a4   : > { %4166 = vmatprep.mubr.bf16.mxu1 %v1450_v9 }
 0x2a5   : > { %v5394_v23 = vadd.f32 %v3765_v21, %v3653_v12 }
 0x2a6   : > { %v3660_v49 = vpop.f32.mrb[52].mxu1 }
 0x2a7   : > { %v3766_v15 = vpop.f32.mrb[48].mxu0  ;;  %v3661_v22 = vpop.f32.mrb[53].mxu1 }
 0x2a8   : > { %v3662_v30 = vadd.f32 %v3661_v22, %v3660_v49  ;;  %v3767_v33 = vpop.f32.mrb[49].mxu0  ;;  %v3663_v17 = vpop.f32.mrb[54].mxu1 }
 0x2a9   : > { %v3768_v46 = vadd.f32 %v3767_v33, %v3766_v15  ;;  %v3769_v51 = vpop.f32.mrb[50].mxu0  ;;  %v3664_v58 = vpop.f32.mrb[55].mxu1 }
 0x2aa   : > { %v3665_v36 = vadd.f32 %v3664_v58, %v3663_v17  ;;  %v3770_v11 = vpop.f32.mrb[51].mxu0  ;;  %v4415_v58 = vld [vmem:[#allocation9 + $0x28] sm:$0xff]  }
 0x2ab   : > { %v5396_v57 = vadd.f32 %v3768_v46, %v3656_v10  ;;  %v3771_v38 = vadd.f32 %v3770_v11, %v3769_v51  ;;  %4167 = vmatmul.mubr.bf16.gmra.mrb[160].mxu1 %v1451_v53  ;;  %v1440_v46 = vld [vmem:[#allocation2 + $0x19a] sm:$0xff]  ;;  %v1441_v51 = vld [vmem:[#allocation2 + $0x1a2] sm:$0xff]  ;;  %4192 = vmatprep.subr.bf16.mxu0 %v4415_v58 }
 0x2ac   : > { %4170 = vmatprep.mubr.bf16.mxu1 %v1452_v56  ;;  %4193 = vmatpush3.bf16.msra.mxu0 %v4415_v58 }
 0x2ad   : > { %v5398_v39 = vadd.f32 %v3771_v38, %v3659_v5  ;;  %v1437_v5 = vld [vmem:[#allocation2 + $0x172] sm:$0xff]  ;;  %v1457_v38 = vpack.c.bf16 %v1441_v51, %v1440_v46 }
 0x2ae   : > { %v3666_v31 = vpop.f32.mrb[56].mxu1  ;;  %v1455_v29 = vpack.c.bf16 %v1437_v5, %v1436_v4 }
 0x2af   : > { %v3772_v12 = vpop.f32.mrb[52].mxu0  ;;  %v3667_v19 = vpop.f32.mrb[57].mxu1 }
 0x2b0   : > { %v3668_v27 = vadd.f32 %v3667_v19, %v3666_v31  ;;  %v3773_v50 = vpop.f32.mrb[53].mxu0  ;;  %v3669_v47 = vpop.f32.mrb[58].mxu1 }
 0x2b1   : > { %v3774_v52 = vadd.f32 %v3773_v50, %v3772_v12  ;;  %v3775_v59 = vpop.f32.mrb[54].mxu0  ;;  %v3670_v60 = vpop.f32.mrb[59].mxu1 }
 0x2b2   : > { %v3671_v2 = vadd.f32 %v3670_v60, %v3669_v47  ;;  %v3776_v10 = vpop.f32.mrb[55].mxu0 }
 0x2b3   : > { %v5400_v48 = vadd.f32 %v3774_v52, %v3662_v30  ;;  %v3777_v25 = vadd.f32 %v3776_v10, %v3775_v59  ;;  %4171 = vmatmul.mubr.bf16.gmra.mrb[164].mxu1 %v1453_v8 }
 0x2b4   : > { %4174 = vmatprep.mubr.bf16.mxu1 %v1454_v37 }
 0x2b5   : > { %v5402_v61 = vadd.f32 %v3777_v25, %v3665_v36 }
 0x2b6   : > { %v3672_v1 = vpop.f32.mrb[60].mxu1 }
 0x2b7   : > { %v3778_v13 = vpop.f32.mrb[56].mxu0  ;;  %v3673_v9 = vpop.f32.mrb[61].mxu1 }
 0x2b8   : > { %v3674_v21 = vadd.f32 %v3673_v9, %v3672_v1  ;;  %v3779_v49 = vpop.f32.mrb[57].mxu0  ;;  %v3675_v55 = vpop.f32.mrb[62].mxu1  ;;  %v4416_v9 = vld [vmem:[#allocation9 + $0x30] sm:$0xff]  }
 0x2b9   : > { %v3780_v45 = vadd.f32 %v3779_v49, %v3778_v13  ;;  %v3781_v15 = vpop.f32.mrb[58].mxu0  ;;  %v3676_v22 = vpop.f32.mrb[63].mxu1  ;;  %4194 = vmatprep.subr.bf16.mxu0 %v4416_v9 }
 0x2ba   : > { %v3677_v32 = vadd.f32 %v3676_v22, %v3675_v55  ;;  %v3782_v30 = vpop.f32.mrb[59].mxu0  ;;  %4195 = vmatpush3.bf16.msra.mxu0 %v4416_v9 }
 0x2bb   : > { %v5404_v33 = vadd.f32 %v3780_v45, %v3668_v27  ;;  %v3783_v17 = vadd.f32 %v3782_v30, %v3781_v15  ;;  %4175 = vmatmul.mubr.bf16.gmra.mrb[168].mxu1 %v1455_v29 }
 0x2bc   : > { %4178 = vmatprep.mubr.bf16.mxu1 %v5364_v26 }
 0x2bd   : > { %v5407_v53 = vadd.f32 %v3783_v17, %v3671_v2 }
 0x2be   : > { %v3678_v36 = vpop.f32.mrb[64].mxu1 }
 0x2bf   : > { %v3784_v11 = vpop.f32.mrb[60].mxu0  ;;  %v3679_v56 = vpop.f32.mrb[65].mxu1 }
 0x2c0   : > { %v3680_v34 = vadd.f32 %v3679_v56, %v3678_v36  ;;  %v3785_v31 = vpop.f32.mrb[61].mxu0  ;;  %v3681_v44 = vpop.f32.mrb[66].mxu1 }
 0x2c1   : > { %v3786_v62 = vadd.f32 %v3785_v31, %v3784_v11  ;;  %v3787_v12 = vpop.f32.mrb[62].mxu0  ;;  %v3682_v19 = vpop.f32.mrb[67].mxu1 }
 0x2c2   : > { %v3683_v20 = vadd.f32 %v3682_v19, %v3681_v44  ;;  %v3788_v6 = vpop.f32.mrb[63].mxu0 }
 0x2c3   : > { %v5409_v26 = vadd.f32 %v3786_v62, %v3674_v21  ;;  %v3789_v27 = vadd.f32 %v3788_v6, %v3787_v12  ;;  %4179 = vmatmul.mubr.bf16.gmra.mrb[172].mxu1 %v1457_v38 }
 0x2c5   : > { %v5411_v50 = vadd.f32 %v3789_v27, %v3677_v32 }
 0x2c6   : > { %v3684_v47 = vpop.f32.mrb[68].mxu1 }
 0x2c7   : > { %v3790_v52 = vpop.f32.mrb[64].mxu0  ;;  %v3685_v59 = vpop.f32.mrb[69].mxu1 }
 0x2c8   : > { %v3686_v60 = vadd.f32 %v3685_v59, %v3684_v47  ;;  %v3791_v8 = vpop.f32.mrb[65].mxu0  ;;  %v3687_v2 = vpop.f32.mrb[70].mxu1  ;;  %v4417_v59 = vld [vmem:[#allocation9 + $0x38] sm:$0xff]  }
 0x2c9   : > { %v3792_v10 = vadd.f32 %v3791_v8, %v3790_v52  ;;  %v3793_v37 = vpop.f32.mrb[66].mxu0  ;;  %v3688_v25 = vpop.f32.mrb[71].mxu1  ;;  %4196 = vmatprep.subr.bf16.mxu0 %v4417_v59 }
 0x2ca   : > { %v3689_v1 = vadd.f32 %v3688_v25, %v3687_v2  ;;  %v3794_v4 = vpop.f32.mrb[67].mxu0  ;;  %4197 = vmatpush3.bf16.msra.mxu0 %v4417_v59 }
 0x2cb   : > { %v5413_v5 = vadd.f32 %v3792_v10, %v3680_v34  ;;  %v3795_v13 = vadd.f32 %v3794_v4, %v3793_v37 }
 0x2cd   : > { %v5415_v21 = vadd.f32 %v3795_v13, %v3683_v20 }
 0x2ce   : > { %v3690_v49 = vpop.f32.mrb[72].mxu1 }
 0x2cf   : > { %v3796_v55 = vpop.f32.mrb[68].mxu0  ;;  %v3691_v45 = vpop.f32.mrb[73].mxu1 }
 0x2d0   : > { %v3692_v15 = vadd.f32 %v3691_v45, %v3690_v49  ;;  %v3797_v22 = vpop.f32.mrb[69].mxu0  ;;  %v3693_v29 = vpop.f32.mrb[74].mxu1 }
 0x2d1   : > { %v3798_v32 = vadd.f32 %v3797_v22, %v3796_v55  ;;  %v3799_v30 = vpop.f32.mrb[70].mxu0  ;;  %v3694_v17 = vpop.f32.mrb[75].mxu1 }
 0x2d2   : > { %v3695_v46 = vadd.f32 %v3694_v17, %v3693_v29  ;;  %v3800_v51 = vpop.f32.mrb[71].mxu0 }
 0x2d3   : > { %v5417_v58 = vadd.f32 %v3798_v32, %v3686_v60  ;;  %v3801_v36 = vadd.f32 %v3800_v51, %v3799_v30 }
 0x2d5   : > { %v5419_v11 = vadd.f32 %v3801_v36, %v3689_v1 }
 0x2d6   : > { %v3696_v56 = vpop.f32.mrb[76].mxu1 }
 0x2d7   : > { %v3802_v38 = vpop.f32.mrb[72].mxu0  ;;  %v3697_v34 = vpop.f32.mrb[77].mxu1 }
 0x2d8   : > { %v3698_v31 = vadd.f32 %v3697_v34, %v3696_v56  ;;  %v3803_v44 = vpop.f32.mrb[73].mxu0  ;;  %v3699_v62 = vpop.f32.mrb[78].mxu1 }
 0x2d9   : > { %v3804_v12 = vadd.f32 %v3803_v44, %v3802_v38  ;;  %v3805_v19 = vpop.f32.mrb[74].mxu0  ;;  %v3700_v20 = vpop.f32.mrb[79].mxu1 }
 0x2da   : > { %v3701_v6 = vadd.f32 %v3700_v20, %v3699_v62  ;;  %v3806_v27 = vpop.f32.mrb[75].mxu0 }
 0x2db   : > { %v5421_v47 = vadd.f32 %v3804_v12, %v3692_v15  ;;  %v3807_v52 = vadd.f32 %v3806_v27, %v3805_v19 }
 0x2dd   : > { %v5423_v60 = vadd.f32 %v3807_v52, %v3695_v46 }
 0x2de   : > { %v3830_v8 = vpop.f32.mrb[80].mxu1 }
 0x2df   : > { %v3808_v2 = vpop.f32.mrb[76].mxu0  ;;  %v3831_v10 = vpop.f32.mrb[81].mxu1 }
 0x2e0   : > { %v3809_v37 = vpop.f32.mrb[77].mxu0  ;;  %v3832_v25 = vadd.f32 %v3831_v10, %v3830_v8  ;;  %v3833_v1 = vpop.f32.mrb[82].mxu1 }
 0x2e1   : > { %v3810_v4 = vadd.f32 %v3809_v37, %v3808_v2  ;;  %v3811_v13 = vpop.f32.mrb[78].mxu0  ;;  %v3834_v9 = vpop.f32.mrb[83].mxu1 }
 0x2e2   : > { %v2391_v49 = vadd.f32 %v3832_v25, %v5347_v54  ;;  %v3812_v55 = vpop.f32.mrb[79].mxu0  ;;  %v3835_v45 = vadd.f32 %v3834_v9, %v3833_v1 }
 0x2e3   : > { %v5426_v15 = vadd.f32 %v3810_v4, %v3698_v31  ;;  %v3813_v22 = vadd.f32 %v3812_v55, %v3811_v13 }
 0x2e4   : > { %v2394_v29 = vadd.f32 %v3835_v45, %v5353_v28 }
 0x2e5   : > { %v5429_v32 = vadd.f32 %v3813_v22, %v3701_v6 }
 0x2e6   : > { %v3836_v30 = vpop.f32.mrb[84].mxu1 }
 0x2e7   : > { %v3942_v17 = vpop.f32.mrb[80].mxu0  ;;  %v3837_v46 = vpop.f32.mrb[85].mxu1 }
 0x2e8   : > { %v3838_v51 = vadd.f32 %v3837_v46, %v3836_v30  ;;  %v3943_v36 = vpop.f32.mrb[81].mxu0  ;;  %v3839_v56 = vpop.f32.mrb[86].mxu1 }
 0x2e9   : > { %v3944_v38 = vadd.f32 %v3943_v36, %v3942_v17  ;;  %v3945_v34 = vpop.f32.mrb[82].mxu0  ;;  %v3840_v44 = vpop.f32.mrb[87].mxu1 }
 0x2ea   : > { %v2399_v54 = vadd.f32 %v3838_v51, %v5356_v40  ;;  %v3841_v62 = vadd.f32 %v3840_v44, %v3839_v56  ;;  %v3946_v12 = vpop.f32.mrb[83].mxu0 }
 0x2eb   : > { %v3947_v31 = vadd.f32 %v3946_v12, %v3945_v34  ;;  %v5432_v19 = vadd.f32 %v3944_v38, %v2391_v49 }
 0x2ec   : > { %v2402_v28 = vadd.f32 %v3841_v62, %v5361_v3 }
 0x2ed   : > { %v5435_v20 = vadd.f32 %v3947_v31, %v2394_v29 }
 0x2ee   : > { %v3842_v6 = vpop.f32.mrb[88].mxu1 }
 0x2ef   : > { %v3948_v27 = vpop.f32.mrb[84].mxu0  ;;  %v3843_v52 = vpop.f32.mrb[89].mxu1 }
 0x2f0   : > { %v3844_v59 = vadd.f32 %v3843_v52, %v3842_v6  ;;  %v3949_v8 = vpop.f32.mrb[85].mxu0  ;;  %v3845_v2 = vpop.f32.mrb[90].mxu1 }
 0x2f1   : > { %v3950_v10 = vadd.f32 %v3949_v8, %v3948_v27  ;;  %v3951_v37 = vpop.f32.mrb[86].mxu0  ;;  %v3846_v25 = vpop.f32.mrb[91].mxu1 }
 0x2f2   : > { %v2407_v40 = vadd.f32 %v3844_v59, %v5366_v16  ;;  %v3847_v1 = vadd.f32 %v3846_v25, %v3845_v2  ;;  %v3952_v4 = vpop.f32.mrb[87].mxu0 }
 0x2f3   : > { %v3953_v13 = vadd.f32 %v3952_v4, %v3951_v37  ;;  %v5438_v9 = vadd.f32 %v3950_v10, %v2399_v54 }
 0x2f4   : > { %v2410_v3 = vadd.f32 %v3847_v1, %v5371_v14 }
 0x2f5   : > { %v5441_v49 = vadd.f32 %v3953_v13, %v2402_v28 }
 0x2f6   : > { %v3848_v55 = vpop.f32.mrb[92].mxu1 }
 0x2f7   : > { %v3954_v45 = vpop.f32.mrb[88].mxu0  ;;  %v3849_v22 = vpop.f32.mrb[93].mxu1 }
 0x2f8   : > { %v3850_v29 = vadd.f32 %v3849_v22, %v3848_v55  ;;  %v3955_v30 = vpop.f32.mrb[89].mxu0  ;;  %v3851_v17 = vpop.f32.mrb[94].mxu1 }
 0x2f9   : > { %v3956_v46 = vadd.f32 %v3955_v30, %v3954_v45  ;;  %v3957_v51 = vpop.f32.mrb[90].mxu0  ;;  %v3852_v36 = vpop.f32.mrb[95].mxu1 }
 0x2fa   : > { %v2415_v16 = vadd.f32 %v3850_v29, %v5374_v24  ;;  %v3853_v56 = vadd.f32 %v3852_v36, %v3851_v17  ;;  %v3958_v38 = vpop.f32.mrb[91].mxu0 }
 0x2fb   : > { %v3959_v34 = vadd.f32 %v3958_v38, %v3957_v51  ;;  %v5444_v44 = vadd.f32 %v3956_v46, %v2407_v40 }
 0x2fc   : > { %v2418_v14 = vadd.f32 %v3853_v56, %v5378_v41 }
 0x2fd   : > { %v5447_v54 = vadd.f32 %v3959_v34, %v2410_v3 }
 0x2fe   : > { %v3854_v62 = vpop.f32.mrb[96].mxu1 }
 0x2ff   : > { %v3960_v12 = vpop.f32.mrb[92].mxu0  ;;  %v3855_v31 = vpop.f32.mrb[97].mxu1 }
 0x300   : > { %v3856_v28 = vadd.f32 %v3855_v31, %v3854_v62  ;;  %v3961_v6 = vpop.f32.mrb[93].mxu0  ;;  %v3857_v27 = vpop.f32.mrb[98].mxu1 }
 0x301   : > { %v3962_v52 = vadd.f32 %v3961_v6, %v3960_v12  ;;  %v3963_v59 = vpop.f32.mrb[94].mxu0  ;;  %v3858_v8 = vpop.f32.mrb[99].mxu1 }
 0x302   : > { %v2423_v24 = vadd.f32 %v3856_v28, %v5380_v7  ;;  %v3859_v2 = vadd.f32 %v3858_v8, %v3857_v27  ;;  %v3964_v10 = vpop.f32.mrb[95].mxu0 }
 0x303   : > { %v3965_v37 = vadd.f32 %v3964_v10, %v3963_v59  ;;  %v5450_v25 = vadd.f32 %v3962_v52, %v2415_v16 }
 0x304   : > { %v2426_v41 = vadd.f32 %v3859_v2, %v5382_v63 }
 0x305   : > { %v5453_v40 = vadd.f32 %v3965_v37, %v2418_v14 }
 0x306   : > { %v3860_v1 = vpop.f32.mrb[100].mxu1 }
 0x307   : > { %v3966_v4 = vpop.f32.mrb[96].mxu0  ;;  %v3861_v13 = vpop.f32.mrb[101].mxu1 }
 0x308   : > { %v3862_v3 = vadd.f32 %v3861_v13, %v3860_v1  ;;  %v3967_v55 = vpop.f32.mrb[97].mxu0  ;;  %v3863_v45 = vpop.f32.mrb[102].mxu1 }
 0x309   : > { %v3968_v22 = vadd.f32 %v3967_v55, %v3966_v4  ;;  %v3969_v29 = vpop.f32.mrb[98].mxu0  ;;  %v3864_v30 = vpop.f32.mrb[103].mxu1 }
 0x30a   : > { %v2431_v7 = vadd.f32 %v3862_v3, %v5384_v43  ;;  %v3865_v17 = vadd.f32 %v3864_v30, %v3863_v45  ;;  %v3970_v46 = vpop.f32.mrb[99].mxu0 }
 0x30b   : > { %v3971_v51 = vadd.f32 %v3970_v46, %v3969_v29  ;;  %v5456_v36 = vadd.f32 %v3968_v22, %v2423_v24 }
 0x30c   : > { %v2434_v63 = vadd.f32 %v3865_v17, %v5386_v0 }
 0x30d   : > { %v5459_v16 = vadd.f32 %v3971_v51, %v2426_v41 }
 0x30e   : > { %v3866_v56 = vpop.f32.mrb[104].mxu1 }
 0x30f   : > { %v3972_v38 = vpop.f32.mrb[100].mxu0  ;;  %v3867_v34 = vpop.f32.mrb[105].mxu1 }
 0x310   : > { %v3868_v14 = vadd.f32 %v3867_v34, %v3866_v56  ;;  %v3973_v62 = vpop.f32.mrb[101].mxu0  ;;  %v3869_v12 = vpop.f32.mrb[106].mxu1 }
 0x311   : > { %v3974_v31 = vadd.f32 %v3973_v62, %v3972_v38  ;;  %v3975_v28 = vpop.f32.mrb[102].mxu0  ;;  %v3870_v6 = vpop.f32.mrb[107].mxu1 }
 0x312   : > { %v2439_v43 = vadd.f32 %v3868_v14, %v5388_v42  ;;  %v3871_v27 = vadd.f32 %v3870_v6, %v3869_v12  ;;  %v3976_v52 = vpop.f32.mrb[103].mxu0 }
 0x313   : > { %v3977_v59 = vadd.f32 %v3976_v52, %v3975_v28  ;;  %v5462_v8 = vadd.f32 %v3974_v31, %v2431_v7 }
 0x314   : > { %v2442_v0 = vadd.f32 %v3871_v27, %v5390_v35 }
 0x315   : > { %v5465_v24 = vadd.f32 %v3977_v59, %v2434_v63 }
 0x316   : > { %v3872_v2 = vpop.f32.mrb[108].mxu1 }
 0x317   : > { %v3978_v10 = vpop.f32.mrb[104].mxu0  ;;  %v3873_v37 = vpop.f32.mrb[109].mxu1 }
 0x318   : > { %v3874_v41 = vadd.f32 %v3873_v37, %v3872_v2  ;;  %v3979_v1 = vpop.f32.mrb[105].mxu0  ;;  %v3875_v4 = vpop.f32.mrb[110].mxu1 }
 0x319   : > { %v3980_v13 = vadd.f32 %v3979_v1, %v3978_v10  ;;  %v3981_v3 = vpop.f32.mrb[106].mxu0  ;;  %v3876_v55 = vpop.f32.mrb[111].mxu1 }
 0x31a   : > { %v2447_v42 = vadd.f32 %v3874_v41, %v5392_v18  ;;  %v3877_v45 = vadd.f32 %v3876_v55, %v3875_v4  ;;  %v3982_v22 = vpop.f32.mrb[107].mxu0 }
 0x31b   : > { %v3983_v29 = vadd.f32 %v3982_v22, %v3981_v3  ;;  %v5468_v30 = vadd.f32 %v3980_v13, %v2439_v43 }
 0x31c   : > { %v2450_v35 = vadd.f32 %v3877_v45, %v5394_v23 }
 0x31d   : > { %v5471_v7 = vadd.f32 %v3983_v29, %v2442_v0 }
 0x31e   : > { %v3878_v17 = vpop.f32.mrb[112].mxu1 }
 0x31f   : > { %v3984_v46 = vpop.f32.mrb[108].mxu0  ;;  %v3879_v51 = vpop.f32.mrb[113].mxu1 }
 0x320   : > { %v3880_v63 = vadd.f32 %v3879_v51, %v3878_v17  ;;  %v3985_v56 = vpop.f32.mrb[109].mxu0  ;;  %v3881_v38 = vpop.f32.mrb[114].mxu1 }
 0x321   : > { %v3986_v34 = vadd.f32 %v3985_v56, %v3984_v46  ;;  %v3987_v14 = vpop.f32.mrb[110].mxu0  ;;  %v3882_v62 = vpop.f32.mrb[115].mxu1 }
 0x322   : > { %v2455_v18 = vadd.f32 %v3880_v63, %v5396_v57  ;;  %v3883_v12 = vadd.f32 %v3882_v62, %v3881_v38  ;;  %v3988_v31 = vpop.f32.mrb[111].mxu0 }
 0x323   : > { %v3989_v28 = vadd.f32 %v3988_v31, %v3987_v14  ;;  %v5474_v6 = vadd.f32 %v3986_v34, %v2447_v42 }
 0x324   : > { %v2458_v23 = vadd.f32 %v3883_v12, %v5398_v39 }
 0x325   : > { %v5477_v43 = vadd.f32 %v3989_v28, %v2450_v35 }
 0x326   : > { %v3884_v27 = vpop.f32.mrb[116].mxu1 }
 0x327   : > { %v3990_v52 = vpop.f32.mrb[112].mxu0  ;;  %v3885_v59 = vpop.f32.mrb[117].mxu1 }
 0x328   : > { %v3886_v0 = vadd.f32 %v3885_v59, %v3884_v27  ;;  %v3991_v2 = vpop.f32.mrb[113].mxu0  ;;  %v3887_v10 = vpop.f32.mrb[118].mxu1 }
 0x329   : > { %v3992_v37 = vadd.f32 %v3991_v2, %v3990_v52  ;;  %v3993_v41 = vpop.f32.mrb[114].mxu0  ;;  %v3888_v1 = vpop.f32.mrb[119].mxu1 }
 0x32a   : > { %v2463_v57 = vadd.f32 %v3886_v0, %v5400_v48  ;;  %v3889_v4 = vadd.f32 %v3888_v1, %v3887_v10  ;;  %v3994_v13 = vpop.f32.mrb[115].mxu0 }
 0x32b   : > { %v3995_v3 = vadd.f32 %v3994_v13, %v3993_v41  ;;  %v5480_v55 = vadd.f32 %v3992_v37, %v2455_v18 }
 0x32c   : > { %v2466_v39 = vadd.f32 %v3889_v4, %v5402_v61 }
 0x32d   : > { %v5483_v42 = vadd.f32 %v3995_v3, %v2458_v23 }
 0x32e   : > { %v3890_v45 = vpop.f32.mrb[120].mxu1 }
 0x32f   : > { %v3996_v22 = vpop.f32.mrb[116].mxu0  ;;  %v3891_v29 = vpop.f32.mrb[121].mxu1 }
 0x330   : > { %v3892_v35 = vadd.f32 %v3891_v29, %v3890_v45  ;;  %v3997_v17 = vpop.f32.mrb[117].mxu0  ;;  %v3893_v46 = vpop.f32.mrb[122].mxu1 }
 0x331   : > { %v3998_v51 = vadd.f32 %v3997_v17, %v3996_v22  ;;  %v3999_v63 = vpop.f32.mrb[118].mxu0  ;;  %v3894_v56 = vpop.f32.mrb[123].mxu1 }
 0x332   : > { %v2471_v48 = vadd.f32 %v3892_v35, %v5404_v33  ;;  %v3895_v38 = vadd.f32 %v3894_v56, %v3893_v46  ;;  %v4000_v34 = vpop.f32.mrb[119].mxu0 }
 0x333   : > { %v4001_v14 = vadd.f32 %v4000_v34, %v3999_v63  ;;  %v5486_v62 = vadd.f32 %v3998_v51, %v2463_v57 }
 0x334   : > { %v2474_v61 = vadd.f32 %v3895_v38, %v5407_v53 }
 0x335   : > { %v5489_v18 = vadd.f32 %v4001_v14, %v2466_v39 }
 0x336   : > { %v3896_v12 = vpop.f32.mrb[124].mxu1 }
 0x337   : > { %v4002_v31 = vpop.f32.mrb[120].mxu0  ;;  %v3897_v28 = vpop.f32.mrb[125].mxu1 }
 0x338   : > { %v3898_v23 = vadd.f32 %v3897_v28, %v3896_v12  ;;  %v4003_v27 = vpop.f32.mrb[121].mxu0  ;;  %v3899_v52 = vpop.f32.mrb[126].mxu1 }
 0x339   : > { %v4004_v59 = vadd.f32 %v4003_v27, %v4002_v31  ;;  %v4005_v0 = vpop.f32.mrb[122].mxu0  ;;  %v3900_v2 = vpop.f32.mrb[127].mxu1 }
 0x33a   : > { %v2479_v33 = vadd.f32 %v3898_v23, %v5409_v26  ;;  %v3901_v10 = vadd.f32 %v3900_v2, %v3899_v52  ;;  %v4006_v37 = vpop.f32.mrb[123].mxu0 }
 0x33b   : > { %v4007_v41 = vadd.f32 %v4006_v37, %v4005_v0  ;;  %v5492_v1 = vadd.f32 %v4004_v59, %v2471_v48 }
 0x33c   : > { %v2482_v53 = vadd.f32 %v3901_v10, %v5411_v50 }
 0x33d   : > { %v5495_v57 = vadd.f32 %v4007_v41, %v2474_v61 }
 0x33e   : > { %v3902_v4 = vpop.f32.mrb[128].mxu1 }
 0x33f   : > { %v4008_v13 = vpop.f32.mrb[124].mxu0  ;;  %v3903_v3 = vpop.f32.mrb[129].mxu1 }
 0x340   : > { %v3904_v39 = vadd.f32 %v3903_v3, %v3902_v4  ;;  %v4009_v45 = vpop.f32.mrb[125].mxu0  ;;  %v3905_v22 = vpop.f32.mrb[130].mxu1 }
 0x341   : > { %v4010_v29 = vadd.f32 %v4009_v45, %v4008_v13  ;;  %v4011_v35 = vpop.f32.mrb[126].mxu0  ;;  %v3906_v17 = vpop.f32.mrb[131].mxu1 }
 0x342   : > { %v2487_v26 = vadd.f32 %v3904_v39, %v5413_v5  ;;  %v3907_v46 = vadd.f32 %v3906_v17, %v3905_v22  ;;  %v4012_v51 = vpop.f32.mrb[127].mxu0 }
 0x343   : > { %v4013_v63 = vadd.f32 %v4012_v51, %v4011_v35  ;;  %v5498_v56 = vadd.f32 %v4010_v29, %v2479_v33 }
 0x344   : > { %v2490_v50 = vadd.f32 %v3907_v46, %v5415_v21 }
 0x345   : > { %v5501_v48 = vadd.f32 %v4013_v63, %v2482_v53 }
 0x346   : > { %v3908_v38 = vpop.f32.mrb[132].mxu1 }
 0x347   : > { %v4014_v34 = vpop.f32.mrb[128].mxu0  ;;  %v3909_v14 = vpop.f32.mrb[133].mxu1 }
 0x348   : > { %v3910_v61 = vadd.f32 %v3909_v14, %v3908_v38  ;;  %v4015_v12 = vpop.f32.mrb[129].mxu0  ;;  %v3911_v31 = vpop.f32.mrb[134].mxu1 }
 0x349   : > { %v4016_v28 = vadd.f32 %v4015_v12, %v4014_v34  ;;  %v4017_v23 = vpop.f32.mrb[130].mxu0  ;;  %v3912_v27 = vpop.f32.mrb[135].mxu1 }
 0x34a   : > { %v2495_v5 = vadd.f32 %v3910_v61, %v5417_v58  ;;  %v3913_v52 = vadd.f32 %v3912_v27, %v3911_v31  ;;  %v4018_v59 = vpop.f32.mrb[131].mxu0 }
 0x34b   : > { %v4019_v0 = vadd.f32 %v4018_v59, %v4017_v23  ;;  %v5504_v2 = vadd.f32 %v4016_v28, %v2487_v26  ;;  %v5524_v59 = vld [vmem:[%s5831_s7] ss:$0 sm:$0xff] }
 0x34c   : > { %v2498_v21 = vadd.f32 %v3913_v52, %v5419_v11 }
 0x34d   : > { %v5507_v33 = vadd.f32 %v4019_v0, %v2490_v50 }
 0x34e   : > { %v3914_v10 = vpop.f32.mrb[136].mxu1 }
 0x34f   : > { %v4020_v37 = vpop.f32.mrb[132].mxu0  ;;  %v3915_v41 = vpop.f32.mrb[137].mxu1 }
 0x350   : > { %v3916_v53 = vadd.f32 %v3915_v41, %v3914_v10  ;;  %v4021_v4 = vpop.f32.mrb[133].mxu0  ;;  %v3917_v13 = vpop.f32.mrb[138].mxu1 }
 0x351   : > { %v4022_v3 = vadd.f32 %v4021_v4, %v4020_v37  ;;  %v4023_v39 = vpop.f32.mrb[134].mxu0  ;;  %v3918_v45 = vpop.f32.mrb[139].mxu1 }
 0x352   : > { %v2503_v58 = vadd.f32 %v3916_v53, %v5421_v47  ;;  %v3919_v22 = vadd.f32 %v3918_v45, %v3917_v13  ;;  %v4024_v29 = vpop.f32.mrb[135].mxu0 }
 0x353   : > { %v4025_v35 = vadd.f32 %v4024_v29, %v4023_v39  ;;  %v5510_v17 = vadd.f32 %v4022_v3, %v2495_v5 }
 0x354   : > { %v2506_v11 = vadd.f32 %v3919_v22, %v5423_v60 }
 0x355   : > { %v5513_v26 = vadd.f32 %v4025_v35, %v2498_v21 }
 0x356   : > { %v3920_v46 = vpop.f32.mrb[140].mxu1 }
 0x357   : > { %v4026_v51 = vpop.f32.mrb[136].mxu0  ;;  %v3921_v63 = vpop.f32.mrb[141].mxu1 }
 0x358   : > { %v3922_v50 = vadd.f32 %v3921_v63, %v3920_v46  ;;  %v4027_v38 = vpop.f32.mrb[137].mxu0  ;;  %v3923_v34 = vpop.f32.mrb[142].mxu1 }
 0x359   : > { %v4028_v14 = vadd.f32 %v4027_v38, %v4026_v51  ;;  %v4029_v61 = vpop.f32.mrb[138].mxu0  ;;  %v3924_v12 = vpop.f32.mrb[143].mxu1 }
 0x35a   : > { %v2511_v47 = vadd.f32 %v3922_v50, %v5426_v15  ;;  %v3925_v31 = vadd.f32 %v3924_v12, %v3923_v34  ;;  %v4030_v28 = vpop.f32.mrb[139].mxu0  ;;  %v5530_v15 = vld [vmem:[%s5863_s27] ss:$0 sm:$0xff]  ;;  %s3333_s27 = scalar_lea.sflag [#allocation5], %s4921_s30 }
 0x35b   : > { %v4031_v23 = vadd.f32 %v4030_v28, %v4029_v61  ;;  %v5516_v27 = vadd.f32 %v4028_v14, %v2503_v58 }
 0x35c   : > { %v2514_v60 = vadd.f32 %v3925_v31, %v5429_v32 }
 0x35d   : > { %v5519_v5 = vadd.f32 %v4031_v23, %v2506_v11 }
 0x35e   : > { %v4152_v52 = vpop.f32.mrb[144].mxu1 }
 0x35f   : > { %v4032_v0 = vpop.f32.mrb[140].mxu0  ;;  %v2721_v21 = vadd.f32 %v4152_v52, %v5438_v9  ;;  %v2712_v10 = vpop.f32.mrb[145].mxu1 }
 0x360   : > { %v4033_v37 = vpop.f32.mrb[141].mxu0  ;;  %v2713_v32 = vadd.f32 %v2712_v10, %v5432_v19  ;;  %v4153_v41 = vpop.f32.mrb[146].mxu1 }
 0x361   : > { %v2848_v53 = vmul.f32 %v5524_v59, %v2721_v21  ;;  %v4034_v4 = vadd.f32 %v4033_v37, %v4032_v0  ;;  %v4035_v13 = vpop.f32.mrb[142].mxu0  ;;  %v2724_v3 = vadd.f32 %v4153_v41, %v5441_v49  ;;  %v2715_v39 = vpop.f32.mrb[147].mxu1 }
 0x362   : > { %v2846_v45 = vmul.f32 %v5524_v59, %v2713_v32  ;;  %v4036_v9 = vpop.f32.mrb[143].mxu0  ;;  %v2716_v58 = vadd.f32 %v2715_v39, %v5435_v20 }
 0x363   : > { %v2887_v22 = vadd.f32 %v5530_v15, %v2848_v53  ;;  %v2849_v29 = vmul.f32 %v5524_v59, %v2724_v3  ;;  %v4037_v35 = vadd.f32 %v4036_v9, %v4035_v13  ;;  %v5539_v11 = vadd.f32 %v4034_v4, %v2511_v47 }
 0x364   : > { %v2885_v19 = vadd.f32 %v5530_v15, %v2846_v45  ;;  %v2847_v46 = vmul.f32 %v5524_v59, %v2716_v58 }
 0x365   : > { %v2888_v51 = vadd.f32 %v5530_v15, %v2849_v29  ;;  %v5544_v49 = vadd.f32 %v4037_v35, %v2514_v60  ;;  %v2919_v38 = vmax.f32 %v2887_v22, 0.0 }
 0x366   : > { %v2886_v63 = vadd.f32 %v5530_v15, %v2847_v46  ;;  %v4156_v50 = vpop.f32.mrb[148].mxu1  ;;  %v2917_v61 = vmax.f32 %v2885_v19, 0.0 }
 0x367   : > { %v2920_v20 = vmax.f32 %v2888_v51, 0.0  ;;  %v2737_v34 = vadd.f32 %v4156_v50, %v5450_v25  ;;  %v2728_v14 = vpop.f32.mrb[149].mxu1 }
 0x368   : > { %v2918_v12 = vmax.f32 %v2886_v63, 0.0  ;;  %v2729_v47 = vadd.f32 %v2728_v14, %v5444_v44  ;;  %v4157_v31 = vpop.f32.mrb[150].mxu1 }
 0x369   : > { %v2950_v28 = vpack.c.bf16 %v2920_v20, %v2919_v38  ;;  %v2852_v23 = vmul.f32 %v5524_v59, %v2737_v34  ;;  %v2740_v52 = vadd.f32 %v4157_v31, %v5453_v40  ;;  %v2731_v60 = vpop.f32.mrb[151].mxu1 }
 0x36a   : > { %v2850_v0 = vmul.f32 %v5524_v59, %v2729_v47  ;;  %v2732_v21 = vadd.f32 %v2731_v60, %v5447_v54  ;;  %v2949_v10 = vpack.c.bf16 %v2918_v12, %v2917_v61 }
 0x36b   : > { %v2891_v37 = vadd.f32 %v5530_v15, %v2852_v23  ;;  %v2853_v25 = vmul.f32 %v5524_v59, %v2740_v52 }
 0x36c   : > { %v2889_v32 = vadd.f32 %v5530_v15, %v2850_v0  ;;  %v2851_v44 = vmul.f32 %v5524_v59, %v2732_v21  ;;  %4198 = vmatprep.mubr.bf16.mxu0 %v2949_v10 }
 0x36d   : > { %v2892_v41 = vadd.f32 %v5530_v15, %v2853_v25  ;;  %4199 = vmatmul.mubr.bf16.vlgmr.msra.gmra.mrb[144].mxu0 %v2950_v28  ;;  %v2923_v4 = vmax.f32 %v2891_v37, 0.0 }
 0x36e   : > { %v2890_v40 = vadd.f32 %v5530_v15, %v2851_v44  ;;  %v4160_v53 = vpop.f32.mrb[152].mxu1  ;;  %v2921_v39 = vmax.f32 %v2889_v32, 0.0 }
 0x36f   : > { %v2924_v13 = vmax.f32 %v2892_v41, 0.0  ;;  %v2753_v54 = vadd.f32 %v4160_v53, %v5462_v8  ;;  %v2744_v3 = vpop.f32.mrb[153].mxu1 }
 0x370   : > { %v2922_v45 = vmax.f32 %v2890_v40, 0.0  ;;  %v2745_v9 = vadd.f32 %v2744_v3, %v5456_v36  ;;  %v4161_v58 = vpop.f32.mrb[154].mxu1 }
 0x371   : > { %v2856_v22 = vmul.f32 %v5524_v59, %v2753_v54  ;;  %v2756_v29 = vadd.f32 %v4161_v58, %v5465_v24  ;;  %v2747_v35 = vpop.f32.mrb[155].mxu1  ;;  %v2952_v19 = vpack.c.bf16 %v2924_v13, %v2923_v4 }
 0x372   : > { %v2854_v46 = vmul.f32 %v5524_v59, %v2745_v9  ;;  %v2748_v51 = vadd.f32 %v2747_v35, %v5459_v16  ;;  %v2951_v63 = vpack.c.bf16 %v2922_v45, %v2921_v39 }
 0x373   : > { %v2895_v50 = vadd.f32 %v5530_v15, %v2856_v22  ;;  %v2857_v8 = vmul.f32 %v5524_v59, %v2756_v29 }
 0x374   : > { %v2893_v38 = vadd.f32 %v5530_v15, %v2854_v46  ;;  %v2855_v36 = vmul.f32 %v5524_v59, %v2748_v51  ;;  %4202 = vmatprep.mubr.bf16.mxu0 %v2951_v63 }
 0x375   : > { %v2896_v20 = vadd.f32 %v5530_v15, %v2857_v8  ;;  %4203 = vmatmul.mubr.bf16.gmra.mrb[148].mxu0 %v2952_v19  ;;  %v2927_v14 = vmax.f32 %v2895_v50, 0.0 }
 0x376   : > { %v2894_v24 = vadd.f32 %v5530_v15, %v2855_v36  ;;  %v4164_v34 = vpop.f32.mrb[156].mxu1  ;;  %v2925_v47 = vmax.f32 %v2893_v38, 0.0 }
 0x377   : > { %v2928_v61 = vmax.f32 %v2896_v20, 0.0  ;;  %v2769_v16 = vadd.f32 %v4164_v34, %v5474_v6  ;;  %v2760_v12 = vpop.f32.mrb[157].mxu1 }
 0x378   : > { %v2926_v31 = vmax.f32 %v2894_v24, 0.0  ;;  %v2761_v28 = vadd.f32 %v2760_v12, %v5468_v30  ;;  %v4165_v23 = vpop.f32.mrb[158].mxu1 }
 0x379   : > { %v2860_v52 = vmul.f32 %v5524_v59, %v2769_v16  ;;  %v2772_v60 = vadd.f32 %v4165_v23, %v5477_v43  ;;  %v2763_v0 = vpop.f32.mrb[159].mxu1  ;;  %v2954_v21 = vpack.c.bf16 %v2928_v61, %v2927_v14 }
 0x37a   : > { %v2858_v10 = vmul.f32 %v5524_v59, %v2761_v28  ;;  %v2764_v37 = vadd.f32 %v2763_v0, %v5471_v7  ;;  %v2953_v25 = vpack.c.bf16 %v2926_v31, %v2925_v47 }
 0x37b   : > { %v2899_v32 = vadd.f32 %v5530_v15, %v2860_v52  ;;  %v2861_v6 = vmul.f32 %v5524_v59, %v2772_v60 }
 0x37c   : > { %v2897_v44 = vadd.f32 %v5530_v15, %v2858_v10  ;;  %v2859_v30 = vmul.f32 %v5524_v59, %v2764_v37  ;;  %4206 = vmatprep.mubr.bf16.mxu0 %v2953_v25 }
 0x37d   : > { %v2900_v41 = vadd.f32 %v5530_v15, %v2861_v6  ;;  %4207 = vmatmul.mubr.bf16.gmra.mrb[152].mxu0 %v2954_v21  ;;  %v2931_v53 = vmax.f32 %v2899_v32, 0.0 }
 0x37e   : > { %v2898_v43 = vadd.f32 %v5530_v15, %v2859_v30  ;;  %v4168_v40 = vpop.f32.mrb[160].mxu1  ;;  %v2929_v54 = vmax.f32 %v2897_v44, 0.0 }
 0x37f   : > { %v2932_v4 = vmax.f32 %v2900_v41, 0.0  ;;  %v2785_v7 = vadd.f32 %v4168_v40, %v5486_v62  ;;  %v2776_v13 = vpop.f32.mrb[161].mxu1 }
 0x380   : > { %v2930_v3 = vmax.f32 %v2898_v43, 0.0  ;;  %v2777_v39 = vadd.f32 %v2776_v13, %v5480_v55  ;;  %v4169_v45 = vpop.f32.mrb[162].mxu1 }
 0x381   : > { %v2864_v9 = vmul.f32 %v5524_v59, %v2785_v7  ;;  %v2788_v58 = vadd.f32 %v4169_v45, %v5489_v18  ;;  %v2779_v22 = vpop.f32.mrb[163].mxu1  ;;  %v2956_v29 = vpack.c.bf16 %v2932_v4, %v2931_v53 }
 0x382   : > { %v2862_v35 = vmul.f32 %v5524_v59, %v2777_v39  ;;  %v2780_v19 = vadd.f32 %v2779_v22, %v5483_v42  ;;  %v2955_v46 = vpack.c.bf16 %v2930_v3, %v2929_v54 }
 0x383   : > { %v2903_v51 = vadd.f32 %v5530_v15, %v2864_v9  ;;  %v2865_v62 = vmul.f32 %v5524_v59, %v2788_v58 }
 0x384   : > { %v2901_v63 = vadd.f32 %v5530_v15, %v2862_v35  ;;  %v2863_v55 = vmul.f32 %v5524_v59, %v2780_v19  ;;  %4210 = vmatprep.mubr.bf16.mxu0 %v2955_v46 }
 0x385   : > { %v2904_v50 = vadd.f32 %v5530_v15, %v2865_v62  ;;  %4211 = vmatmul.mubr.bf16.gmra.mrb[156].mxu0 %v2956_v29  ;;  %v2935_v38 = vmax.f32 %v2903_v51, 0.0 }
 0x386   : > { %v2902_v18 = vadd.f32 %v5530_v15, %v2863_v55  ;;  %v4172_v8 = vpop.f32.mrb[164].mxu1  ;;  %v2933_v24 = vmax.f32 %v2901_v63, 0.0 }
 0x387   : > { %v2936_v36 = vmax.f32 %v2904_v50, 0.0  ;;  %v2801_v42 = vadd.f32 %v4172_v8, %v5498_v56  ;;  %v2792_v20 = vpop.f32.mrb[165].mxu1 }
 0x388   : > { %v2934_v34 = vmax.f32 %v2902_v18, 0.0  ;;  %v2793_v14 = vadd.f32 %v2792_v20, %v5492_v1  ;;  %v4173_v61 = vpop.f32.mrb[166].mxu1 }
 0x389   : > { %v2868_v16 = vmul.f32 %v5524_v59, %v2801_v42  ;;  %v2804_v12 = vadd.f32 %v4173_v61, %v5501_v48  ;;  %v2795_v47 = vpop.f32.mrb[167].mxu1  ;;  %v2958_v31 = vpack.c.bf16 %v2936_v36, %v2935_v38 }
 0x38a   : > { %v2866_v28 = vmul.f32 %v5524_v59, %v2793_v14  ;;  %v2796_v23 = vadd.f32 %v2795_v47, %v5495_v57  ;;  %v2957_v52 = vpack.c.bf16 %v2934_v34, %v2933_v24 }
 0x38b   : > { %v2907_v60 = vadd.f32 %v5530_v15, %v2868_v16  ;;  %v2869_v56 = vmul.f32 %v5524_v59, %v2804_v12 }
 0x38c   : > { %v2905_v0 = vadd.f32 %v5530_v15, %v2866_v28  ;;  %v2867_v1 = vmul.f32 %v5524_v59, %v2796_v23  ;;  %4214 = vmatprep.mubr.bf16.mxu0 %v2957_v52 }
 0x38d   : > { %v2908_v21 = vadd.f32 %v5530_v15, %v2869_v56  ;;  %4215 = vmatmul.mubr.bf16.gmra.mrb[160].mxu0 %v2958_v31  ;;  %v2939_v37 = vmax.f32 %v2907_v60, 0.0 }
 0x38e   : > { %v2906_v48 = vadd.f32 %v5530_v15, %v2867_v1  ;;  %v4176_v10 = vpop.f32.mrb[168].mxu1  ;;  %v2937_v6 = vmax.f32 %v2905_v0, 0.0 }
 0x38f   : > { %v2940_v25 = vmax.f32 %v2908_v21, 0.0  ;;  %v2817_v57 = vadd.f32 %v4176_v10, %v5510_v17  ;;  %v2808_v32 = vpop.f32.mrb[169].mxu1  ;;  %v4419_v21 = vld [vmem:[%s4927_s26 + $0x10] sm:$0xff] }
 0x390   : > { %v2938_v44 = vmax.f32 %v2906_v48, 0.0  ;;  %v2809_v30 = vadd.f32 %v2808_v32, %v5504_v2  ;;  %v4177_v41 = vpop.f32.mrb[170].mxu1  ;;  %v4421_v32 = vld [vmem:[%s4927_s26 + $0x18] sm:$0xff] }
 0x391   : > { %v2872_v43 = vmul.f32 %v5524_v59, %v2817_v57  ;;  %v2820_v40 = vadd.f32 %v4177_v41, %v5513_v26  ;;  %v2811_v53 = vpop.f32.mrb[171].mxu1  ;;  %v2960_v4 = vpack.c.bf16 %v2940_v25, %v2939_v37  ;;  %v4420_v37 = vld [vmem:[%s4927_s26] sm:$0xff] }
 0x392   : > { %v2870_v7 = vmul.f32 %v5524_v59, %v2809_v30  ;;  %v2812_v13 = vadd.f32 %v2811_v53, %v5507_v33  ;;  %v2959_v54 = vpack.c.bf16 %v2938_v44, %v2937_v6  ;;  %v4422_v44 = vld [vmem:[%s4927_s26 + $0x8] sm:$0xff] }
 0x393   : > { %v2911_v3 = vadd.f32 %v5530_v15, %v2872_v43  ;;  %v2873_v17 = vmul.f32 %v5524_v59, %v2820_v40 }
 0x394   : > { %v2909_v39 = vadd.f32 %v5530_v15, %v2870_v7  ;;  %v2871_v2 = vmul.f32 %v5524_v59, %v2812_v13  ;;  %4218 = vmatprep.mubr.bf16.mxu0 %v2959_v54 }
 0x395   : > { %v2912_v45 = vadd.f32 %v5530_v15, %v2873_v17  ;;  %4219 = vmatmul.mubr.bf16.gmra.mrb[164].mxu0 %v2960_v4  ;;  %v2943_v58 = vmax.f32 %v2911_v3, 0.0 }
 0x396   : > { %v2910_v26 = vadd.f32 %v5530_v15, %v2871_v2  ;;  %v4180_v9 = vpop.f32.mrb[172].mxu1  ;;  %v2941_v35 = vmax.f32 %v2909_v39, 0.0  ;;  %v4423_v39 = vld [vmem:[%s4927_s26 + $0x30] sm:$0xff] }
 0x397   : > { %v2944_v22 = vmax.f32 %v2912_v45, 0.0  ;;  %v2833_v33 = vadd.f32 %v4180_v9, %v5539_v11  ;;  %v2824_v29 = vpop.f32.mrb[173].mxu1 }
 0x398   : > { %v2942_v19 = vmax.f32 %v2910_v26, 0.0  ;;  %v2825_v46 = vadd.f32 %v2824_v29, %v5516_v27  ;;  %v4181_v51 = vpop.f32.mrb[174].mxu1  ;;  %v4424_v26 = vld [vmem:[%s4927_s26 + $0x20] sm:$0xff]  ;;  %v4426_v29 = vld [vmem:[%s4927_s26 + $0x28] sm:$0xff] }
 0x399   : > { %v2876_v62 = vmul.f32 %v5524_v59, %v2833_v33  ;;  %v2836_v63 = vadd.f32 %v4181_v51, %v5544_v49  ;;  %v2827_v55 = vpop.f32.mrb[175].mxu1  ;;  %v2962_v50 = vpack.c.bf16 %v2944_v22, %v2943_v58  ;;  %v4425_v22 = vld [vmem:[%s4927_s26 + $0x38] sm:$0xff] }
 0x39a   : > { %v2874_v18 = vmul.f32 %v5524_v59, %v2825_v46  ;;  %v2828_v8 = vadd.f32 %v2827_v55, %v5519_v5  ;;  %v2961_v38 = vpack.c.bf16 %v2942_v19, %v2941_v35 }
 0x39b   : > { %v2915_v36 = vadd.f32 %v5530_v15, %v2876_v62  ;;  %v2877_v11 = vmul.f32 %v5524_v59, %v2836_v63 }
 0x39c   : > { %v2913_v42 = vadd.f32 %v5530_v15, %v2874_v18  ;;  %v2875_v27 = vmul.f32 %v5524_v59, %v2828_v8  ;;  %4222 = vmatprep.mubr.bf16.mxu0 %v2961_v38  ;;  %v5634_v59 = vld [vmem:[%s5864_s28] ss:$0 sm:$0xff]  ;;  %s4569_s28 = sshll.u32 %s4651_s15, 4  ;;  %s4570_s28 = int_to_ptr.vmem [resolvable:$false] %s4569_s28 }
 0x39d   : > { %v2916_v20 = vadd.f32 %v5530_v15, %v2877_v11  ;;  %4223 = vmatmul.mubr.bf16.gmra.mrb[168].mxu0 %v2962_v50  ;;  %v2947_v24 = vmax.f32 %v2915_v36, 0.0  ;;  %v4427_v36 = vld [vmem:[%s4927_s26 + $0x50] sm:$0xff]  ;;  %s4571_s13 = scalar_lea.vmem %s4570_s28, 8192  ;;  %p4572_p12 = scmp.lt.s32.totalorder %s5776_s14, %s4570_s28 }
 0x39e   : > { %v2914_v49 = vadd.f32 %v5530_v15, %v2875_v27  ;;  %v2945_v14 = vmax.f32 %v2913_v42, 0.0  ;;  %v5639_v15 = vld [vmem:[%s5865_s20] ss:$0 sm:$0xff]  ;;  %v4428_v27 = vld [vmem:[%s4927_s26 + $0x40] sm:$0xff]  ;;  %p4573_p1 = scmp.lt.s32.totalorder %s4571_s13, %s4565_s29 }
 0x39f   : > { %v2948_v34 = vmax.f32 %v2916_v20, 0.0 }
 0x3a0   : > { %v2946_v61 = vmax.f32 %v2914_v49, 0.0  ;;  %p4574_p2 = por %p4573_p1, %p4572_p12 }
 0x3a1   : > { %v2964_v5 = vpack.c.bf16 %v2948_v34, %v2947_v24  ;;  %v4429_v24 = vld [vmem:[%s4927_s26 + $0x58] sm:$0xff] }
 0x3a2   : > { %v2963_v16 = vpack.c.bf16 %v2946_v61, %v2945_v14  ;;  %v4430_v14 = vld [vmem:[%s4927_s26 + $0x48] sm:$0xff]  ;;  %p4575_p4 = pnand %p4574_p2, %p4568_p7 }
 0x3a4   : > { %4226 = vmatprep.mubr.bf16.mxu0 %v2963_v16 }
 0x3a5   : > { %4227 = vmatmul.mubr.bf16.gmra.mrb[172].mxu0 %v2964_v5 }
 0x440   : > { %v4200_v12 = vpop.f32.mrb[144].mxu0 }
 0x441   : > { %v3199_v47 = vmul.f32 %v4200_v12, %v5634_v59  ;;  %v3063_v31 = vpop.f32.mrb[145].mxu0 }
 0x442   : > { %v3197_v28 = vmul.f32 %v5634_v59, %v3063_v31  ;;  %v4201_v23 = vpop.f32.mrb[146].mxu0 }
 0x443   : > { %v3238_v52 = vadd.f32 %v5639_v15, %v3199_v47  ;;  %v3200_v60 = vmul.f32 %v4201_v23, %v5634_v59  ;;  %v3066_v56 = vpop.f32.mrb[147].mxu0 }
 0x444   : > { %v3236_v0 = vadd.f32 %v5639_v15, %v3197_v28  ;;  %v3198_v1 = vmul.f32 %v5634_v59, %v3066_v56 }
 0x445   : > { %v3270_v48 = vadd.f32 %v4419_v21, %v3238_v52  ;;  %v3239_v10 = vadd.f32 %v5639_v15, %v3200_v60 }
 0x446   : > { %v3268_v25 = vadd.f32 %v4420_v37, %v3236_v0  ;;  %v3237_v57 = vadd.f32 %v5639_v15, %v3198_v1  ;;  %v4431_v0 = vld [vmem:[%s4927_s26 + $0x70] sm:$0xff] }
 0x447   : > { %3302 = vst [vmem:[%s5653_s17 + $0x10] sm:$0xff] %v3270_v48  ;;  %v3271_v6 = vadd.f32 %v4421_v32, %v3239_v10  ;;  %v4432_v48 = vld [vmem:[%s4927_s26 + $0x60] sm:$0xff]  ;;  %v4434_v32 = vld [vmem:[%s4927_s26 + $0x68] sm:$0xff] }
 0x448   : > { %3300 = vst [vmem:[%s5653_s17] sm:$0xff] %v3268_v25  ;;  %v3269_v30 = vadd.f32 %v4422_v44, %v3237_v57  ;;  %v4204_v41 = vpop.f32.mrb[148].mxu0  ;;  %v4433_v25 = vld [vmem:[%s4927_s26 + $0x78] sm:$0xff] }
 0x449   : > { %3303 = vst [vmem:[%s5653_s17 + $0x18] sm:$0xff] %v3271_v6  ;;  %v3203_v43 = vmul.f32 %v4204_v41, %v5634_v59  ;;  %v3079_v40 = vpop.f32.mrb[149].mxu0 }
 0x44a   : > { %3301 = vst [vmem:[%s5653_s17 + $0x8] sm:$0xff] %v3269_v30  ;;  %v3201_v53 = vmul.f32 %v5634_v59, %v3079_v40  ;;  %v4205_v4 = vpop.f32.mrb[150].mxu0 }
 0x44b   : > { %v3242_v7 = vadd.f32 %v5639_v15, %v3203_v43  ;;  %v3204_v13 = vmul.f32 %v4205_v4, %v5634_v59  ;;  %v3082_v54 = vpop.f32.mrb[151].mxu0 }
 0x44c   : > { %v3240_v3 = vadd.f32 %v5639_v15, %v3201_v53  ;;  %v3202_v17 = vmul.f32 %v5634_v59, %v3082_v54 }
 0x44d   : > { %v3274_v2 = vadd.f32 %v4423_v39, %v3242_v7  ;;  %v3243_v45 = vadd.f32 %v5639_v15, %v3204_v13 }
 0x44e   : > { %v3272_v9 = vadd.f32 %v4424_v26, %v3240_v3  ;;  %v3241_v58 = vadd.f32 %v5639_v15, %v3202_v17  ;;  %v4435_v3 = vld [vmem:[%s4927_s26 + $0x90] sm:$0xff] }
 0x44f   : > { %3306 = vst [vmem:[%s5653_s17 + $0x30] sm:$0xff] %v3274_v2  ;;  %v3275_v33 = vadd.f32 %v4425_v22, %v3243_v45  ;;  %v4436_v2 = vld [vmem:[%s4927_s26 + $0x80] sm:$0xff]  ;;  %v4438_v22 = vld [vmem:[%s4927_s26 + $0x88] sm:$0xff] }
 0x450   : > { %3304 = vst [vmem:[%s5653_s17 + $0x20] sm:$0xff] %v3272_v9  ;;  %v3273_v35 = vadd.f32 %v4426_v29, %v3241_v58  ;;  %v4208_v19 = vpop.f32.mrb[152].mxu0  ;;  %v4437_v9 = vld [vmem:[%s4927_s26 + $0x98] sm:$0xff] }
 0x451   : > { %3307 = vst [vmem:[%s5653_s17 + $0x38] sm:$0xff] %v3275_v33  ;;  %v3207_v46 = vmul.f32 %v4208_v19, %v5634_v59  ;;  %v3095_v51 = vpop.f32.mrb[153].mxu0 }
 0x452   : > { %3305 = vst [vmem:[%s5653_s17 + $0x28] sm:$0xff] %v3273_v35  ;;  %v3205_v62 = vmul.f32 %v5634_v59, %v3095_v51  ;;  %v4209_v63 = vpop.f32.mrb[154].mxu0 }
 0x453   : > { %v3246_v55 = vadd.f32 %v5639_v15, %v3207_v46  ;;  %v3208_v50 = vmul.f32 %v4209_v63, %v5634_v59  ;;  %v3098_v18 = vpop.f32.mrb[155].mxu0 }
 0x454   : > { %v3244_v8 = vadd.f32 %v5639_v15, %v3205_v62  ;;  %v3206_v38 = vmul.f32 %v5634_v59, %v3098_v18 }
 0x455   : > { %v3278_v11 = vadd.f32 %v4427_v36, %v3246_v55  ;;  %v3247_v42 = vadd.f32 %v5639_v15, %v3208_v50 }
 0x456   : > { %v3276_v20 = vadd.f32 %v4428_v27, %v3244_v8  ;;  %v3245_v49 = vadd.f32 %v5639_v15, %v3206_v38  ;;  %v4439_v8 = vld [vmem:[%s4927_s26 + $0xb0] sm:$0xff] }
 0x457   : > { %3310 = vst [vmem:[%s5653_s17 + $0x50] sm:$0xff] %v3278_v11  ;;  %v3279_v34 = vadd.f32 %v4429_v24, %v3247_v42  ;;  %v4440_v11 = vld [vmem:[%s4927_s26 + $0xa0] sm:$0xff]  ;;  %v4442_v24 = vld [vmem:[%s4927_s26 + $0xa8] sm:$0xff] }
 0x458   : > { %3308 = vst [vmem:[%s5653_s17 + $0x40] sm:$0xff] %v3276_v20  ;;  %v3277_v61 = vadd.f32 %v4430_v14, %v3245_v49  ;;  %v4212_v5 = vpop.f32.mrb[156].mxu0  ;;  %v4441_v20 = vld [vmem:[%s4927_s26 + $0xb8] sm:$0xff] }
 0x459   : > { %3311 = vst [vmem:[%s5653_s17 + $0x58] sm:$0xff] %v3279_v34  ;;  %v3211_v16 = vmul.f32 %v4212_v5, %v5634_v59  ;;  %v3111_v12 = vpop.f32.mrb[157].mxu0 }
 0x45a   : > { %3309 = vst [vmem:[%s5653_s17 + $0x48] sm:$0xff] %v3277_v61  ;;  %v3209_v47 = vmul.f32 %v5634_v59, %v3111_v12  ;;  %v4213_v31 = vpop.f32.mrb[158].mxu0 }
 0x45b   : > { %v3250_v28 = vadd.f32 %v5639_v15, %v3211_v16  ;;  %v3212_v23 = vmul.f32 %v4213_v31, %v5634_v59  ;;  %v3114_v52 = vpop.f32.mrb[159].mxu0 }
 0x45c   : > { %v3248_v60 = vadd.f32 %v5639_v15, %v3209_v47  ;;  %v3210_v56 = vmul.f32 %v5634_v59, %v3114_v52 }
 0x45d   : > { %v3282_v1 = vadd.f32 %v4431_v0, %v3250_v28  ;;  %v3251_v21 = vadd.f32 %v5639_v15, %v3212_v23 }
 0x45e   : > { %v3280_v10 = vadd.f32 %v4432_v48, %v3248_v60  ;;  %v3249_v37 = vadd.f32 %v5639_v15, %v3210_v56  ;;  %v4443_v60 = vld [vmem:[%s4927_s26 + $0xd0] sm:$0xff] }
 0x45f   : > { %3314 = vst [vmem:[%s5653_s17 + $0x70] sm:$0xff] %v3282_v1  ;;  %v3283_v57 = vadd.f32 %v4433_v25, %v3251_v21  ;;  %v4444_v1 = vld [vmem:[%s4927_s26 + $0xc0] sm:$0xff]  ;;  %v4446_v25 = vld [vmem:[%s4927_s26 + $0xc8] sm:$0xff] }
 0x460   : > { %3312 = vst [vmem:[%s5653_s17 + $0x60] sm:$0xff] %v3280_v10  ;;  %v3281_v6 = vadd.f32 %v4434_v32, %v3249_v37  ;;  %v4216_v44 = vpop.f32.mrb[160].mxu0  ;;  %v4445_v10 = vld [vmem:[%s4927_s26 + $0xd8] sm:$0xff] }
 0x461   : > { %3315 = vst [vmem:[%s5653_s17 + $0x78] sm:$0xff] %v3283_v57  ;;  %v3215_v30 = vmul.f32 %v4216_v44, %v5634_v59  ;;  %v3127_v41 = vpop.f32.mrb[161].mxu0 }
 0x462   : > { %3313 = vst [vmem:[%s5653_s17 + $0x68] sm:$0xff] %v3281_v6  ;;  %v3213_v43 = vmul.f32 %v5634_v59, %v3127_v41  ;;  %v4217_v40 = vpop.f32.mrb[162].mxu0 }
 0x463   : > { %v3254_v53 = vadd.f32 %v5639_v15, %v3215_v30  ;;  %v3216_v4 = vmul.f32 %v4217_v40, %v5634_v59  ;;  %v3130_v7 = vpop.f32.mrb[163].mxu0 }
 0x464   : > { %v3252_v13 = vadd.f32 %v5639_v15, %v3213_v43  ;;  %v3214_v54 = vmul.f32 %v5634_v59, %v3130_v7 }
 0x465   : > { %v3286_v17 = vadd.f32 %v4435_v3, %v3254_v53  ;;  %v3255_v39 = vadd.f32 %v5639_v15, %v3216_v4 }
 0x466   : > { %v3284_v45 = vadd.f32 %v4436_v2, %v3252_v13  ;;  %v3253_v26 = vadd.f32 %v5639_v15, %v3214_v54  ;;  %v4447_v13 = vld [vmem:[%s4927_s26 + $0xf0] sm:$0xff] }
 0x467   : > { %3318 = vst [vmem:[%s5653_s17 + $0x90] sm:$0xff] %v3286_v17  ;;  %v3287_v58 = vadd.f32 %v4437_v9, %v3255_v39  ;;  %v4448_v17 = vld [vmem:[%s4927_s26 + $0xe0] sm:$0xff] }
 0x468   : > { %3316 = vst [vmem:[%s5653_s17 + $0x80] sm:$0xff] %v3284_v45  ;;  %v3285_v33 = vadd.f32 %v4438_v22, %v3253_v26  ;;  %v4220_v29 = vpop.f32.mrb[164].mxu0  ;;  %v4449_v45 = vld [vmem:[%s4927_s26 + $0xf8] sm:$0xff] }
 0x469   : > { %3319 = vst [vmem:[%s5653_s17 + $0x98] sm:$0xff] %v3287_v58  ;;  %v3219_v35 = vmul.f32 %v4220_v29, %v5634_v59  ;;  %v3143_v19 = vpop.f32.mrb[165].mxu0 }
 0x46a   : > { %3317 = vst [vmem:[%s5653_s17 + $0x88] sm:$0xff] %v3285_v33  ;;  %v3217_v46 = vmul.f32 %v5634_v59, %v3143_v19  ;;  %v4221_v51 = vpop.f32.mrb[166].mxu0 }
 0x46b   : > { %v3258_v62 = vadd.f32 %v5639_v15, %v3219_v35  ;;  %v3220_v63 = vmul.f32 %v4221_v51, %v5634_v59  ;;  %v3146_v55 = vpop.f32.mrb[167].mxu0 }
 0x46c   : > { %v3256_v50 = vadd.f32 %v5639_v15, %v3217_v46  ;;  %v3218_v18 = vmul.f32 %v5634_v59, %v3146_v55 }
 0x46d   : > { %v3290_v38 = vadd.f32 %v4439_v8, %v3258_v62  ;;  %v3259_v36 = vadd.f32 %v5639_v15, %v3220_v63 }
 0x46e   : > { %v3288_v42 = vadd.f32 %v4440_v11, %v3256_v50  ;;  %v3257_v27 = vadd.f32 %v5639_v15, %v3218_v18 }
 0x46f   : > { %3322 = vst [vmem:[%s5653_s17 + $0xb0] sm:$0xff] %v3290_v38  ;;  %v3291_v49 = vadd.f32 %v4441_v20, %v3259_v36 }
 0x470   : > { %3320 = vst [vmem:[%s5653_s17 + $0xa0] sm:$0xff] %v3288_v42  ;;  %v3289_v34 = vadd.f32 %v4442_v24, %v3257_v27  ;;  %v4224_v14 = vpop.f32.mrb[168].mxu0 }
 0x471   : > { %3323 = vst [vmem:[%s5653_s17 + $0xb8] sm:$0xff] %v3291_v49  ;;  %v3223_v61 = vmul.f32 %v4224_v14, %v5634_v59  ;;  %v3159_v5 = vpop.f32.mrb[169].mxu0 }
 0x472   : > { %3321 = vst [vmem:[%s5653_s17 + $0xa8] sm:$0xff] %v3289_v34  ;;  %v3221_v16 = vmul.f32 %v5634_v59, %v3159_v5  ;;  %v4225_v12 = vpop.f32.mrb[170].mxu0 }
 0x473   : > { %v3262_v47 = vadd.f32 %v5639_v15, %v3223_v61  ;;  %v3224_v31 = vmul.f32 %v4225_v12, %v5634_v59  ;;  %v3162_v28 = vpop.f32.mrb[171].mxu0 }
 0x474   : > { %v3260_v23 = vadd.f32 %v5639_v15, %v3221_v16  ;;  %v3222_v52 = vmul.f32 %v5634_v59, %v3162_v28 }
 0x475   : > { %v3294_v56 = vadd.f32 %v4443_v60, %v3262_v47  ;;  %v3263_v0 = vadd.f32 %v5639_v15, %v3224_v31 }
 0x476   : > { %v3292_v21 = vadd.f32 %v4444_v1, %v3260_v23  ;;  %v3261_v48 = vadd.f32 %v5639_v15, %v3222_v52 }
 0x477   : > { %3326 = vst [vmem:[%s5653_s17 + $0xd0] sm:$0xff] %v3294_v56  ;;  %v3295_v37 = vadd.f32 %v4445_v10, %v3263_v0 }
 0x478   : > { %3324 = vst [vmem:[%s5653_s17 + $0xc0] sm:$0xff] %v3292_v21  ;;  %v3293_v57 = vadd.f32 %v4446_v25, %v3261_v48  ;;  %v4228_v32 = vpop.f32.mrb[172].mxu0 }
 0x479   : > { %3327 = vst [vmem:[%s5653_s17 + $0xd8] sm:$0xff] %v3295_v37  ;;  %v3227_v6 = vmul.f32 %v4228_v32, %v5634_v59  ;;  %v3175_v44 = vpop.f32.mrb[173].mxu0 }
 0x47a   : > { %3325 = vst [vmem:[%s5653_s17 + $0xc8] sm:$0xff] %v3293_v57  ;;  %v3225_v30 = vmul.f32 %v5634_v59, %v3175_v44  ;;  %v4229_v41 = vpop.f32.mrb[174].mxu0 }
 0x47b   : > { %v3266_v43 = vadd.f32 %v5639_v15, %v3227_v6  ;;  %v3228_v40 = vmul.f32 %v4229_v41, %v5634_v59  ;;  %v3178_v53 = vpop.f32.mrb[175].mxu0 }
 0x47c   : > { %v3264_v4 = vadd.f32 %v5639_v15, %v3225_v30  ;;  %v3226_v7 = vmul.f32 %v5634_v59, %v3178_v53  ;;  %v4450_v59 = vld [vmem:[%s4927_s26 + $0xe8] sm:$0xff] }
 0x47d   : > { %v3298_v54 = vadd.f32 %v4447_v13, %v3266_v43  ;;  %v3267_v3 = vadd.f32 %v5639_v15, %v3228_v40 }
 0x47e   : > { %v3296_v39 = vadd.f32 %v4448_v17, %v3264_v4  ;;  %v3265_v2 = vadd.f32 %v5639_v15, %v3226_v7 }
 0x47f   : > { %3330 = vst [vmem:[%s5653_s17 + $0xf0] sm:$0xff] %v3298_v54  ;;  %v3299_v26 = vadd.f32 %v4449_v45, %v3267_v3 }
 0x480   : > { %3328 = vst [vmem:[%s5653_s17 + $0xe0] sm:$0xff] %v3296_v39  ;;  %v3297_v9 = vadd.f32 %v4450_v59, %v3265_v2 }
 0x481   : > { %3331 = vst [vmem:[%s5653_s17 + $0xf8] sm:$0xff] %v3299_v26 }
 0x482   : > { %3329 = vst [vmem:[%s5653_s17 + $0xe8] sm:$0xff] %v3297_v9 }
 0x483   : > { %4578 = shalt.err (!%p4575_p4)
}
 0x484   : > { %s4579_s26 = scalar_lea.hbm %s5774_s25, 4096  ;;  %s4583_s17 = scalar_lea.hbm %s5866_s19, 8192 }
 0x485   : > { %p4580_p9 = scmp.ne.s32.totalorder %s5774_s25, %s4579_s26  ;;  %p4584_p8 = scmp.lt.u32.totalorder %s5774_s25, %s5866_s19 }
 0x486   : > { %p4585_p13 = scmp.lt.u32.totalorder %s4583_s17, %s4579_s26  ;;  %p4587_p10 = scmp.lt.u32.totalorder %s4579_s26, %s5774_s25 }
 0x487   : > { %p4581_p0 = pnand %p4580_p9, %p4873_p5 }
 0x488   : > { %p4586_p6 = por %p4585_p13, %p4584_p8 }
 0x489   : > { %p4582_p11 = pneg %p4581_p0 }
 0x48a   : > { %p4588_p3 = por %p4587_p10, %p4586_p6 }
 0x48c   : > { %p4589_p7 = pnand %p4588_p3, %p4582_p11 }
 0x48e   : > { %4592 = shalt.err (!%p4589_p7)
}
 0x48f   : > { %s4652_s10 = smov 128   ;;  %s4653_s29 = smov 8  }
 0x490   : > { %4260 = dma.vmem_to_hbm [thread:$0]  (%p4873_p5), %s5776_s14, 4096, %s5774_s25, %s3333_s27, %s4652_s10, %s4652_s10, %s4653_s29  }
 0x491 PF: > { %s5867_s15 = sld [smem:[#allocation16_spill]]  ;;  %s5868_s28 = sld [smem:[#allocation17_spill]] }
 0x492   : > { %p5870_p1 = scmp.ge.s32.totalorder %s4639_s24, 2 }
 0x497   : > { %s3361_s13 = sand.u32 1, %s5867_s15   ;;  %p5869_p12 = scmp.ne.s32.totalorder %s5868_s28, 0 }
 0x498   : > { %s3362_s26 = scalar_lea.sflag [#allocation5], %s3361_s13 }
 0x499   : > { %p4277_p2 = pnand %p5870_p1, %p5869_p12 }
 0x49b   : > { %4622 = dma.done.wait (!%p4277_p2), %s3362_s26, 4096  }
 0x49c   : > { %4624 = vsyncadd (!%p4277_p2), %s3362_s26, 4294963200  ;;  %s5871_s16 = smov %s4859_s21  ;;  %p27_p4 = scmp.ge.s32.totalorder %s4859_s21, 4  }
 0x49d   : > { %s5872_s21 = smov %s4631_s22  ;;  %s5873_s22 = smov %s4635_s23 }
 0x49e   : > { %s5874_s23 = smov %s4869_s11  ;;  %s5875_s24 = smov %s5871_s16 }
 0x49f   :  { %29 = sbr.rel (!%p27_p4) target bundleno = 12 (0xc), region = 127 }
 0x4a6   :  { %3367 = vsyncpa [#allocation4], 1 }
 0x4a7   :  { %3369 = vsyncpa [#allocation4 + $0x1], 1 }
 0x4a8   :  { %3370 = vsyncpa [#allocation7], 1 }
 0x4a9   :  { %3371 = vsyncpa [#allocation10], 1 }
 0x4aa   :  { %3372 = vsyncpa [#allocation5], 1 }
 0x4ab   :  { %3374 = vsyncpa [#allocation5 + $0x1], 1 }

</bundles_post_ra>
